<compile_context>
chip_gen: v5e
topology: v5e:2x2
jax: 0.10.0
libtpu: 0.0.40
codegen_flags: <defaults>
</compile_context>

<pallas_src>
import functools

import jax
import jax.numpy as jnp
from jax import lax
from jax.experimental import pallas as pl
from jax.experimental.pallas import tpu as pltpu

EPS = 1e-5  # nn.BatchNorm2d default eps


# ------------------------------ kernel helpers ------------------------------ #

def _centered_stats(y):
    """Per-channel [sum, centered sum-of-squares] partials -> (2, Cp) f32."""
    n = y.shape[0]
    s = jnp.sum(y, axis=0, keepdims=True)
    d = y - s / n
    m2 = jnp.sum(d * d, axis=0, keepdims=True)
    return jnp.concatenate([s, m2], axis=0)


# ------------------------------ Pallas kernels ------------------------------ #

def _k1_conv1_stats(x_ref, w1_ref, stat_ref):
    """Pass 1: conv1 (1x1) and per-image centered BN-1 partial statistics."""
    y1 = jnp.dot(x_ref[0], w1_ref[...], preferred_element_type=jnp.float32)
    stat_ref[0] = _centered_stats(y1)


def _k2_conv2(img_w, x_ref, w1s_ref, b1_ref, w2k_ref, y2_ref, stat_ref, halo_ref):
    """Pass 2: conv1 (BN1 scale folded into weights) + bias + ReLU, then 3x3 conv via a
    halo scratch and 3 K-stacked MXU matmuls.  Emits y2 (bf16) and BN-2 partials."""
    hw, cp = x_ref.shape[1], x_ref.shape[2]
    w = img_w

    # conv1' + bias + ReLU (BN1 scale already baked into w1s), cast once to bf16.
    y1 = jnp.dot(x_ref[0], w1s_ref[...], preferred_element_type=jnp.float32)
    a = jnp.maximum(y1 + b1_ref[...], 0.0).astype(jnp.bfloat16)

    # dx = -1 / +1 variants: zero the W-edge source column once per dx (2 selects total,
    # not 6), then shift by +-1 row.  The single-row concat is the only per-variant copy.
    col = lax.broadcasted_iota(jnp.int32, (hw, cp), 0) % w
    zero_row = jnp.zeros((1, cp), jnp.bfloat16)
    a_m = jnp.where(col == w - 1, jnp.zeros_like(a), a)        # source col W-1 -> 0 (dx=-1)
    a_p = jnp.where(col == 0, jnp.zeros_like(a), a)            # source col 0   -> 0 (dx=+1)
    v_m = jnp.concatenate([zero_row, a_m[: hw - 1]], axis=0)   # shifted down one row
    v_p = jnp.concatenate([a_p[1:], zero_row], axis=0)         # shifted up one row

    # Halo scratch: rows [0,W) / [W+HW, W+2W) zero (dy = -1/+1 image boundary), data rows
    # [W, W+HW); lane blocks [0:Cp) / [Cp:2Cp) / [2Cp:3Cp) hold the dx = -1 / 0 / +1 taps.
    halo_ref[pl.ds(0, w), :] = jnp.zeros((w, 3 * cp), jnp.bfloat16)
    halo_ref[pl.ds(w + hw, w), :] = jnp.zeros((w, 3 * cp), jnp.bfloat16)
    halo_ref[pl.ds(w, hw), pl.ds(0, cp)] = v_m
    halo_ref[pl.ds(w, hw), pl.ds(cp, cp)] = a
    halo_ref[pl.ds(w, hw), pl.ds(2 * cp, cp)] = v_p

    # 3 K-stacked matmuls (K = 3*Cp), one per kernel row ky; static aligned read offsets.
    acc = jnp.zeros((hw, cp), jnp.float32)
    for ky in range(3):
        taps = halo_ref[pl.ds(ky * w, hw), :]                  # (HW, 3*Cp)
        acc = acc + jnp.dot(taps, w2k_ref[ky], preferred_element_type=jnp.float32)

    y2_ref[0] = acc.astype(jnp.bfloat16)
    stat_ref[0] = _centered_stats(acc)


def _k3_epilogue(y2_ref, x_ref, s2_ref, b2_ref, o_ref):
    """Pass 3: elementwise BN-2 affine + residual + ReLU (no conv recompute)."""
    z = y2_ref[0].astype(jnp.float32) * s2_ref[...] + b2_ref[...]
    z = z + x_ref[0].astype(jnp.float32)
    o_ref[0] = jnp.maximum(z, 0.0).astype(o_ref.dtype)


# ------------------------------ Python wrapper ------------------------------ #

def identity_block_x2(x_nchw, w1, g1, b1, w2, g2, b2):
    """Forward pass matching the PyTorch module (training-mode BatchNorm)."""
    N, C, H, W = x_nchw.shape
    HW = H * W
    Cp = ((C + 127) // 128) * 128            # lane-dense channel padding
    count = float(N * HW)

    # layout glue: NCHW -> (N, H*W, Cp) bf16
    x_nhwc = jnp.transpose(x_nchw, (0, 2, 3, 1))
    x_p = jnp.pad(x_nhwc, ((0, 0), (0, 0), (0, 0), (0, Cp - C)))
    x_p = x_p.reshape(N, HW, Cp).astype(jnp.bfloat16)

    # conv_1 weight (Cout, Cin, 1, 1) -> (Cin, Cout) f32 (kept f32 for the BN1 fold);
    # conv_2 weight (Cout, Cin, 3, 3) -> (ky, kx, Cin, Cout) -> K-stacked (3, 3*Cp, Cp).
    w1_f = jnp.zeros((Cp, Cp), jnp.float32).at[:C, :C].set(jnp.transpose(w1[:, :, 0, 0]))
    w2_t = jnp.zeros((3, 3, Cp, Cp), jnp.float32).at[:, :, :C, :C].set(
        jnp.transpose(w2, (2, 3, 1, 0)))
    w2k = w2_t.reshape(3, 3 * Cp, Cp).astype(jnp.bfloat16)

    pad_c = lambda v: jnp.zeros((Cp,), jnp.float32).at[:C].set(v.astype(jnp.float32))
    g1p, b1p, g2p, b2p = pad_c(g1), pad_c(b1), pad_c(g2), pad_c(b2)

    img_spec = pl.BlockSpec((1, HW, Cp), lambda i: (i, 0, 0))
    w1_spec = pl.BlockSpec((Cp, Cp), lambda i: (0, 0))
    w2_spec = pl.BlockSpec((3, 3 * Cp, Cp), lambda i: (0, 0, 0))
    vec_spec = pl.BlockSpec((1, Cp), lambda i: (0, 0))
    stat_spec = pl.BlockSpec((1, 2, Cp), lambda i: (i, 0, 0))
    stat_shape = jax.ShapeDtypeStruct((N, 2, Cp), jnp.float32)
    cparams = pltpu.CompilerParams(dimension_semantics=("parallel",))

    def fold_bn(stats, gamma, beta):
        # Parallel-variance combination of per-image centered partials (no E[x^2]-E[x]^2
        # cancellation): var = (sum_b M2_b + n_b * sum_b (mean_b - mean)^2) / (N*HW).
        s = stats[:, 0, :]                    # (N, Cp) per-image sums
        m2 = stats[:, 1, :]                   # (N, Cp) per-image centered ssq
        mean = jnp.sum(s, axis=0) / count
        mean_b = s / HW
        var = (jnp.sum(m2, axis=0)
               + HW * jnp.sum(jnp.square(mean_b - mean), axis=0)) / count
        var = jnp.maximum(var, 0.0)
        scale = gamma * lax.rsqrt(var + EPS)
        bias = beta - scale * mean
        return scale, bias

    # pass 1: BN-1 statistics of conv1 output
    stats1 = pl.pallas_call(
        _k1_conv1_stats,
        out_shape=stat_shape,
        grid=(N,),
        in_specs=[img_spec, w1_spec],
        out_specs=stat_spec,
        compiler_params=cparams,
    )(x_p, w1_f.astype(jnp.bfloat16))
    scale1, bias1 = fold_bn(stats1, g1p, b1p)

    # fold BN-1 scale into conv1 weights (per output channel); bias stays as an add.
    w1s = (w1_f * scale1[None, :]).astype(jnp.bfloat16)

    # pass 2: conv1' + ReLU + 3x3 conv; stash y2 (bf16) + BN-2 partial statistics
    y2, stats2 = pl.pallas_call(
        functools.partial(_k2_conv2, W),
        out_shape=(jax.ShapeDtypeStruct((N, HW, Cp), jnp.bfloat16), stat_shape),
        grid=(N,),
        in_specs=[img_spec, w1_spec, vec_spec, w2_spec],
        out_specs=(img_spec, stat_spec),
        scratch_shapes=[pltpu.VMEM((HW + 2 * W, 3 * Cp), jnp.bfloat16)],
        compiler_params=cparams,
    )(x_p, w1s, bias1.reshape(1, Cp), w2k)
    scale2, bias2 = fold_bn(stats2, g2p, b2p)

    # pass 3: elementwise epilogue (BN-2 affine + residual + ReLU), bf16 output.
    # Residual comes from the bf16 x_p (skip path carries ~2^-8 relative rounding,
    # well inside the tolerance gate; output is bf16-quantized anyway).
    out_p = pl.pallas_call(
        _k3_epilogue,
        out_shape=jax.ShapeDtypeStruct((N, HW, Cp), jnp.bfloat16),
        grid=(N,),
        in_specs=[img_spec, img_spec, vec_spec, vec_spec],
        out_specs=img_spec,
        compiler_params=cparams,
    )(y2, x_p, scale2.reshape(1, Cp), bias2.reshape(1, Cp))

    out = out_p.reshape(N, H, W, Cp)[..., :C]
    return jnp.transpose(out, (0, 3, 1, 2)).astype(jnp.float32)


# ------------------------------ Pure-JAX reference --------------------------- #

def _bn_train(x_nchw, gamma, beta):
    mean = jnp.mean(x_nchw, axis=(0, 2, 3), keepdims=True)
    var = jnp.mean(jnp.square(x_nchw - mean), axis=(0, 2, 3), keepdims=True)
    xh = (x_nchw - mean) * lax.rsqrt(var + EPS)
    return xh * gamma.reshape(1, -1, 1, 1) + beta.reshape(1, -1, 1, 1)


def reference_forward(x, w1, g1, b1, w2, g2, b2):
    dn = ('NCHW', 'OIHW', 'NCHW')
    y = lax.conv_general_dilated(x, w1, (1, 1), 'VALID', dimension_numbers=dn)
    y = jnp.maximum(_bn_train(y, g1, b1), 0.0)
    y = lax.conv_general_dilated(y, w2, (1, 1), ((1, 1), (1, 1)),
                                 dimension_numbers=dn)
    y = _bn_train(y, g2, b2) + x
    return jnp.maximum(y, 0.0)


# ----------------------------------- main ------------------------------------ #

if __name__ == "__main__":
    N, C, H, W = 2, 4, 16, 16

    key = jax.random.PRNGKey(0)
    k_x, k_w1, k_w2, k_g1, k_b1, k_g2, k_b2 = jax.random.split(key, 7)

    x = jax.random.normal(k_x, (N, C, H, W), dtype=jnp.float32)
    w1 = 0.2 * jax.random.normal(k_w1, (C, C, 1, 1), dtype=jnp.float32)
    w2 = 0.1 * jax.random.normal(k_w2, (C, C, 3, 3), dtype=jnp.float32)
    g1 = 1.0 + 0.1 * jax.random.normal(k_g1, (C,), dtype=jnp.float32)
    b1 = 0.1 * jax.random.normal(k_b1, (C,), dtype=jnp.float32)
    g2 = 1.0 + 0.1 * jax.random.normal(k_g2, (C,), dtype=jnp.float32)
    b2 = 0.1 * jax.random.normal(k_b2, (C,), dtype=jnp.float32)

    fwd = jax.jit(identity_block_x2)
    out = jax.block_until_ready(fwd(x, w1, g1, b1, w2, g2, b2))

    ref = jax.block_until_ready(reference_forward(x, w1, g1, b1, w2, g2, b2))
    assert out.shape == ref.shape == (N, C, H, W)
    # Tolerance reflects bf16 MXU operands and the bf16 y2/output stashes; stats/BN in f32.
    err = jnp.max(jnp.abs(out - ref))
    assert jnp.allclose(out, ref, atol=5e-2, rtol=5e-2), f"max abs err = {err}"

    print("KERNEL_OK")
</pallas_src>

<mosaic_0001>
module attributes {stable_mosaic.version = 11 : i64} {
  func.func @_k1_conv1_stats(%arg0: i32, %arg1: memref<1x256x128xbf16, #tpu.memory_space<vmem>>, %arg2: memref<128x128xbf16, #tpu.memory_space<vmem>>, %arg3: memref<1x2x128xf32, #tpu.memory_space<vmem>>) attributes {dimension_semantics = [#tpu.dimension_semantics<parallel>], iteration_bounds = array<i64: 2>, scalar_prefetch = 0 : i64, scratch_operands = 0 : i64, tpu.core_type = #tpu.core_type<tc>, window_params = [{transform_indices = @transform_0, window_bounds = array<i64: 1, 256, 128>}, {pipeline_mode = #tpu.pipeline_mode<synchronous>, transform_indices = @transform_1, window_bounds = array<i64: 128, 128>}, {transform_indices = @transform_2, window_bounds = array<i64: 1, 2, 128>}]} {
    %c0 = arith.constant 0 : index
    %c0_0 = arith.constant 0 : index
    %c0_1 = arith.constant 0 : index
    %0 = vector.load %arg1[%c0, %c0_0, %c0_1] : memref<1x256x128xbf16, #tpu.memory_space<vmem>>, vector<1x256x128xbf16>
    %1 = vector.shape_cast %0 : vector<1x256x128xbf16> to vector<256x128xbf16>
    %c0_2 = arith.constant 0 : index
    %c0_3 = arith.constant 0 : index
    %2 = vector.load %arg2[%c0_2, %c0_3] : memref<128x128xbf16, #tpu.memory_space<vmem>>, vector<128x128xbf16>
    %cst = arith.constant dense<0.000000e+00> : vector<256x128xf32>
    %3 = tpu.matmul %1, %2, %cst {dimension_numbers = #tpu.dot_dimension_numbers<[1], [0], [0], [1], [0, 0, 1, 1], [], []>} : vector<256x128xbf16>, vector<128x128xbf16>, vector<256x128xf32> -> vector<256x128xf32>
    %cst_4 = arith.constant dense<0.000000e+00> : vector<128xf32>
    %4 = vector.multi_reduction <add>, %3, %cst_4 [0] : vector<256x128xf32> to vector<128xf32>
    %5 = vector.shape_cast %4 : vector<128xf32> to vector<1x128xf32>
    %cst_5 = arith.constant 2.560000e+02 : f32
    %6 = vector.broadcast %cst_5 : f32 to vector<1x128xf32>
    %7 = arith.divf %5, %6 : vector<1x128xf32>
    %8 = vector.broadcast %7 : vector<1x128xf32> to vector<256x128xf32>
    %9 = arith.subf %3, %8 : vector<256x128xf32>
    %10 = arith.mulf %9, %9 : vector<256x128xf32>
    %cst_6 = arith.constant dense<0.000000e+00> : vector<128xf32>
    %11 = vector.multi_reduction <add>, %10, %cst_6 [0] : vector<256x128xf32> to vector<128xf32>
    %12 = vector.shape_cast %11 : vector<128xf32> to vector<1x128xf32>
    %13 = tpu.concatenate %5, %12 in 0 : vector<1x128xf32>, vector<1x128xf32> -> vector<2x128xf32>
    %c0_7 = arith.constant 0 : index
    %c0_8 = arith.constant 0 : index
    %c0_9 = arith.constant 0 : index
    %14 = vector.load %arg3[%c0_7, %c0_8, %c0_9] : memref<1x2x128xf32, #tpu.memory_space<vmem>>, vector<1x2x128xf32>
    %15 = vector.shape_cast %14 : vector<1x2x128xf32> to vector<2x128xf32>
    %16 = vector.shape_cast %13 : vector<2x128xf32> to vector<1x2x128xf32>
    tpu.vector_store %arg3[%c0_7, %c0_8, %c0_9], %16 {strides = array<i32>} : memref<1x2x128xf32, #tpu.memory_space<vmem>>, vector<1x2x128xf32>,
    return
  }
  func.func @transform_0(%arg0: i32) -> (i32, i32, i32) {
    %c0_i32 = arith.constant 0 : i32
    %c0_i32_0 = arith.constant 0 : i32
    %c0_i32_1 = arith.constant 0 : i32
    return %arg0, %c0_i32, %c0_i32_0 : i32, i32, i32
  }
  func.func @transform_1(%arg0: i32) -> (i32, i32) {
    %c0_i32 = arith.constant 0 : i32
    %c0_i32_0 = arith.constant 0 : i32
    %c0_i32_1 = arith.constant 0 : i32
    return %c0_i32, %c0_i32_0 : i32, i32
  }
  func.func @transform_2(%arg0: i32) -> (i32, i32, i32) {
    %c0_i32 = arith.constant 0 : i32
    %c0_i32_0 = arith.constant 0 : i32
    %c0_i32_1 = arith.constant 0 : i32
    return %arg0, %c0_i32, %c0_i32_0 : i32, i32, i32
  }
}

module attributes {stable_mosaic.version = 11 : i64} {
  func.func @_k2_conv2(%arg0: i32, %arg1: memref<1x256x128xbf16, #tpu.memory_space<vmem>>, %arg2: memref<128x128xbf16, #tpu.memory_space<vmem>>, %arg3: memref<1x128xf32, #tpu.memory_space<vmem>>, %arg4: memref<3x384x128xbf16, #tpu.memory_space<vmem>>, %arg5: memref<1x256x128xbf16, #tpu.memory_space<vmem>>, %arg6: memref<1x2x128xf32, #tpu.memory_space<vmem>>, %arg7: memref<288x384xbf16, #tpu.memory_space<vmem>>) attributes {dimension_semantics = [#tpu.dimension_semantics<parallel>], iteration_bounds = array<i64: 2>, scalar_prefetch = 0 : i64, scratch_operands = 1 : i64, tpu.core_type = #tpu.core_type<tc>, window_params = [{transform_indices = @transform_0, window_bounds = array<i64: 1, 256, 128>}, {pipeline_mode = #tpu.pipeline_mode<synchronous>, transform_indices = @transform_1, window_bounds = array<i64: 128, 128>}, {pipeline_mode = #tpu.pipeline_mode<synchronous>, transform_indices = @transform_2, window_bounds = array<i64: 1, 128>}, {pipeline_mode = #tpu.pipeline_mode<synchronous>, transform_indices = @transform_3, window_bounds = array<i64: 3, 384, 128>}, {transform_indices = @transform_4, window_bounds = array<i64: 1, 256, 128>}, {transform_indices = @transform_5, window_bounds = array<i64: 1, 2, 128>}]} {
    %c0 = arith.constant 0 : index
    %c0_0 = arith.constant 0 : index
    %c0_1 = arith.constant 0 : index
    %0 = vector.load %arg1[%c0, %c0_0, %c0_1] : memref<1x256x128xbf16, #tpu.memory_space<vmem>>, vector<1x256x128xbf16>
    %1 = vector.shape_cast %0 : vector<1x256x128xbf16> to vector<256x128xbf16>
    %c0_2 = arith.constant 0 : index
    %c0_3 = arith.constant 0 : index
    %2 = vector.load %arg2[%c0_2, %c0_3] : memref<128x128xbf16, #tpu.memory_space<vmem>>, vector<128x128xbf16>
    %cst = arith.constant dense<0.000000e+00> : vector<256x128xf32>
    %3 = tpu.matmul %1, %2, %cst {dimension_numbers = #tpu.dot_dimension_numbers<[1], [0], [0], [1], [0, 0, 1, 1], [], []>} : vector<256x128xbf16>, vector<128x128xbf16>, vector<256x128xf32> -> vector<256x128xf32>
    %c0_4 = arith.constant 0 : index
    %c0_5 = arith.constant 0 : index
    %4 = vector.load %arg3[%c0_4, %c0_5] : memref<1x128xf32, #tpu.memory_space<vmem>>, vector<1x128xf32>
    %5 = vector.broadcast %4 : vector<1x128xf32> to vector<256x128xf32>
    %6 = arith.addf %3, %5 : vector<256x128xf32>
    %cst_6 = arith.constant 0.000000e+00 : f32
    %7 = vector.broadcast %cst_6 : f32 to vector<256x128xf32>
    %8 = arith.maximumf %6, %7 : vector<256x128xf32>
    %9 = arith.truncf %8 : vector<256x128xf32> to vector<256x128xbf16>
    %10 = tpu.iota {dimensions = array<i32: 0>} : vector<256x128xi32>
    %c16_i32 = arith.constant 16 : i32
    %c0_i32 = arith.constant 0 : i32
    %11 = arith.cmpi eq, %c16_i32, %c0_i32 : i32
    %c1_i32 = arith.constant 1 : i32
    %12 = arith.select %11, %c1_i32, %c16_i32 : i32
    %13 = vector.broadcast %12 : i32 to vector<256x128xi32>
    %14 = arith.remsi %10, %13 : vector<256x128xi32>
    %c0_i32_7 = arith.constant 0 : i32
    %15 = vector.broadcast %c0_i32_7 : i32 to vector<256x128xi32>
    %16 = arith.cmpi ne, %14, %15 : vector<256x128xi32>
    %c0_i32_8 = arith.constant 0 : i32
    %17 = vector.broadcast %c0_i32_8 : i32 to vector<256x128xi32>
    %18 = arith.cmpi slt, %14, %17 : vector<256x128xi32>
    %c0_i32_9 = arith.constant 0 : i32
    %19 = arith.cmpi slt, %12, %c0_i32_9 : i32
    %20 = vector.broadcast %19 : i1 to vector<256x128xi1>
    %21 = vector.broadcast %20 : vector<256x128xi1> to vector<256x128xi1>
    %22 = arith.xori %18, %21 : vector<256x128xi1>
    %23 = arith.andi %22, %16 : vector<256x128xi1>
    %24 = vector.broadcast %12 : i32 to vector<256x128xi32>
    %25 = arith.addi %14, %24 : vector<256x128xi32>
    %26 = arith.select %23, %25, %14 : vector<256x128xi1>, vector<256x128xi32>
    %cst_10 = arith.constant 0.000000e+00 : bf16
    %27 = vector.broadcast %cst_10 : bf16 to vector<1x128xbf16>
    %c15_i32 = arith.constant 15 : i32
    %28 = vector.broadcast %c15_i32 : i32 to vector<256x128xi32>
    %29 = arith.cmpi eq, %26, %28 : vector<256x128xi32>
    %cst_11 = arith.constant 0.000000e+00 : bf16
    %30 = vector.broadcast %cst_11 : bf16 to vector<256x128xbf16>
    %31 = arith.select %29, %30, %9 : vector<256x128xi1>, vector<256x128xbf16>
    %c0_i32_12 = arith.constant 0 : i32
    %32 = vector.broadcast %c0_i32_12 : i32 to vector<256x128xi32>
    %33 = arith.cmpi eq, %26, %32 : vector<256x128xi32>
    %cst_13 = arith.constant 0.000000e+00 : bf16
    %34 = vector.broadcast %cst_13 : bf16 to vector<256x128xbf16>
    %35 = arith.select %33, %34, %9 : vector<256x128xi1>, vector<256x128xbf16>
    %36 = vector.extract_strided_slice %31 {offsets = [0, 0], sizes = [255, 128], strides = [1, 1]} : vector<256x128xbf16> to vector<255x128xbf16>
    %37 = tpu.concatenate %27, %36 in 0 : vector<1x128xbf16>, vector<255x128xbf16> -> vector<256x128xbf16>
    %38 = vector.extract_strided_slice %35 {offsets = [1, 0], sizes = [255, 128], strides = [1, 1]} : vector<256x128xbf16> to vector<255x128xbf16>
    %39 = tpu.concatenate %38, %27 in 0 : vector<255x128xbf16>, vector<1x128xbf16> -> vector<256x128xbf16>
    %cst_14 = arith.constant 0.000000e+00 : bf16
    %40 = vector.broadcast %cst_14 : bf16 to vector<16x384xbf16>
    %c0_15 = arith.constant 0 : index
    %c0_16 = arith.constant 0 : index
    %41 = vector.load %arg7[%c0_15, %c0_16] : memref<288x384xbf16, #tpu.memory_space<vmem>>, vector<16x384xbf16>
    tpu.vector_store %arg7[%c0_15, %c0_16], %40 {strides = array<i32>} : memref<288x384xbf16, #tpu.memory_space<vmem>>, vector<16x384xbf16>,
    %cst_17 = arith.constant 0.000000e+00 : bf16
    %42 = vector.broadcast %cst_17 : bf16 to vector<16x384xbf16>
    %c272 = arith.constant 272 : index
    %c0_18 = arith.constant 0 : index
    %43 = vector.load %arg7[%c272, %c0_18] : memref<288x384xbf16, #tpu.memory_space<vmem>>, vector<16x384xbf16>
    tpu.vector_store %arg7[%c272, %c0_18], %42 {strides = array<i32>} : memref<288x384xbf16, #tpu.memory_space<vmem>>, vector<16x384xbf16>,
    %c16 = arith.constant 16 : index
    %c0_19 = arith.constant 0 : index
    %44 = vector.load %arg7[%c16, %c0_19] : memref<288x384xbf16, #tpu.memory_space<vmem>>, vector<256x128xbf16>
    tpu.vector_store %arg7[%c16, %c0_19], %37 {strides = array<i32>} : memref<288x384xbf16, #tpu.memory_space<vmem>>, vector<256x128xbf16>,
    %c16_20 = arith.constant 16 : index
    %c128 = arith.constant 128 : index
    %45 = vector.load %arg7[%c16_20, %c128] : memref<288x384xbf16, #tpu.memory_space<vmem>>, vector<256x128xbf16>
    tpu.vector_store %arg7[%c16_20, %c128], %9 {strides = array<i32>} : memref<288x384xbf16, #tpu.memory_space<vmem>>, vector<256x128xbf16>,
    %c16_21 = arith.constant 16 : index
    %c256 = arith.constant 256 : index
    %46 = vector.load %arg7[%c16_21, %c256] : memref<288x384xbf16, #tpu.memory_space<vmem>>, vector<256x128xbf16>
    tpu.vector_store %arg7[%c16_21, %c256], %39 {strides = array<i32>} : memref<288x384xbf16, #tpu.memory_space<vmem>>, vector<256x128xbf16>,
    %cst_22 = arith.constant 0.000000e+00 : f32
    %47 = vector.broadcast %cst_22 : f32 to vector<256x128xf32>
    %c0_23 = arith.constant 0 : index
    %c0_24 = arith.constant 0 : index
    %48 = vector.load %arg7[%c0_23, %c0_24] : memref<288x384xbf16, #tpu.memory_space<vmem>>, vector<256x384xbf16>
    %c0_25 = arith.constant 0 : index
    %c0_26 = arith.constant 0 : index
    %c0_27 = arith.constant 0 : index
    %49 = vector.load %arg4[%c0_25, %c0_26, %c0_27] : memref<3x384x128xbf16, #tpu.memory_space<vmem>>, vector<1x384x128xbf16>
    %50 = vector.shape_cast %49 : vector<1x384x128xbf16> to vector<384x128xbf16>
    %cst_28 = arith.constant dense<0.000000e+00> : vector<256x128xf32>
    %51 = tpu.matmul %48, %50, %cst_28 {dimension_numbers = #tpu.dot_dimension_numbers<[1], [0], [0], [1], [0, 0, 1, 1], [], []>} : vector<256x384xbf16>, vector<384x128xbf16>, vector<256x128xf32> -> vector<256x128xf32>
    %52 = arith.addf %47, %51 : vector<256x128xf32>
    %c16_29 = arith.constant 16 : index
    %c0_30 = arith.constant 0 : index
    %53 = vector.load %arg7[%c16_29, %c0_30] : memref<288x384xbf16, #tpu.memory_space<vmem>>, vector<256x384xbf16>
    %c1 = arith.constant 1 : index
    %c0_31 = arith.constant 0 : index
    %c0_32 = arith.constant 0 : index
    %54 = vector.load %arg4[%c1, %c0_31, %c0_32] : memref<3x384x128xbf16, #tpu.memory_space<vmem>>, vector<1x384x128xbf16>
    %55 = vector.shape_cast %54 : vector<1x384x128xbf16> to vector<384x128xbf16>
    %cst_33 = arith.constant dense<0.000000e+00> : vector<256x128xf32>
    %56 = tpu.matmul %53, %55, %cst_33 {dimension_numbers = #tpu.dot_dimension_numbers<[1], [0], [0], [1], [0, 0, 1, 1], [], []>} : vector<256x384xbf16>, vector<384x128xbf16>, vector<256x128xf32> -> vector<256x128xf32>
    %57 = arith.addf %52, %56 : vector<256x128xf32>
    %c32 = arith.constant 32 : index
    %c0_34 = arith.constant 0 : index
    %58 = vector.load %arg7[%c32, %c0_34] : memref<288x384xbf16, #tpu.memory_space<vmem>>, vector<256x384xbf16>
    %c2 = arith.constant 2 : index
    %c0_35 = arith.constant 0 : index
    %c0_36 = arith.constant 0 : index
    %59 = vector.load %arg4[%c2, %c0_35, %c0_36] : memref<3x384x128xbf16, #tpu.memory_space<vmem>>, vector<1x384x128xbf16>
    %60 = vector.shape_cast %59 : vector<1x384x128xbf16> to vector<384x128xbf16>
    %cst_37 = arith.constant dense<0.000000e+00> : vector<256x128xf32>
    %61 = tpu.matmul %58, %60, %cst_37 {dimension_numbers = #tpu.dot_dimension_numbers<[1], [0], [0], [1], [0, 0, 1, 1], [], []>} : vector<256x384xbf16>, vector<384x128xbf16>, vector<256x128xf32> -> vector<256x128xf32>
    %62 = arith.addf %57, %61 : vector<256x128xf32>
    %63 = arith.truncf %62 : vector<256x128xf32> to vector<256x128xbf16>
    %c0_38 = arith.constant 0 : index
    %c0_39 = arith.constant 0 : index
    %c0_40 = arith.constant 0 : index
    %64 = vector.load %arg5[%c0_38, %c0_39, %c0_40] : memref<1x256x128xbf16, #tpu.memory_space<vmem>>, vector<1x256x128xbf16>
    %65 = vector.shape_cast %64 : vector<1x256x128xbf16> to vector<256x128xbf16>
    %66 = vector.shape_cast %63 : vector<256x128xbf16> to vector<1x256x128xbf16>
    tpu.vector_store %arg5[%c0_38, %c0_39, %c0_40], %66 {strides = array<i32>} : memref<1x256x128xbf16, #tpu.memory_space<vmem>>, vector<1x256x128xbf16>,
    %cst_41 = arith.constant dense<0.000000e+00> : vector<128xf32>
    %67 = vector.multi_reduction <add>, %62, %cst_41 [0] : vector<256x128xf32> to vector<128xf32>
    %68 = vector.shape_cast %67 : vector<128xf32> to vector<1x128xf32>
    %cst_42 = arith.constant 2.560000e+02 : f32
    %69 = vector.broadcast %cst_42 : f32 to vector<1x128xf32>
    %70 = arith.divf %68, %69 : vector<1x128xf32>
    %71 = vector.broadcast %70 : vector<1x128xf32> to vector<256x128xf32>
    %72 = arith.subf %62, %71 : vector<256x128xf32>
    %73 = arith.mulf %72, %72 : vector<256x128xf32>
    %cst_43 = arith.constant dense<0.000000e+00> : vector<128xf32>
    %74 = vector.multi_reduction <add>, %73, %cst_43 [0] : vector<256x128xf32> to vector<128xf32>
    %75 = vector.shape_cast %74 : vector<128xf32> to vector<1x128xf32>
    %76 = tpu.concatenate %68, %75 in 0 : vector<1x128xf32>, vector<1x128xf32> -> vector<2x128xf32>
    %c0_44 = arith.constant 0 : index
    %c0_45 = arith.constant 0 : index
    %c0_46 = arith.constant 0 : index
    %77 = vector.load %arg6[%c0_44, %c0_45, %c0_46] : memref<1x2x128xf32, #tpu.memory_space<vmem>>, vector<1x2x128xf32>
    %78 = vector.shape_cast %77 : vector<1x2x128xf32> to vector<2x128xf32>
    %79 = vector.shape_cast %76 : vector<2x128xf32> to vector<1x2x128xf32>
    tpu.vector_store %arg6[%c0_44, %c0_45, %c0_46], %79 {strides = array<i32>} : memref<1x2x128xf32, #tpu.memory_space<vmem>>, vector<1x2x128xf32>,
    return
  }
  func.func @transform_0(%arg0: i32) -> (i32, i32, i32) {
    %c0_i32 = arith.constant 0 : i32
    %c0_i32_0 = arith.constant 0 : i32
    %c0_i32_1 = arith.constant 0 : i32
    return %arg0, %c0_i32, %c0_i32_0 : i32, i32, i32
  }
  func.func @transform_1(%arg0: i32) -> (i32, i32) {
    %c0_i32 = arith.constant 0 : i32
    %c0_i32_0 = arith.constant 0 : i32
    %c0_i32_1 = arith.constant 0 : i32
    return %c0_i32, %c0_i32_0 : i32, i32
  }
  func.func @transform_2(%arg0: i32) -> (i32, i32) {
    %c0_i32 = arith.constant 0 : i32
    %c0_i32_0 = arith.constant 0 : i32
    %c0_i32_1 = arith.constant 0 : i32
    return %c0_i32, %c0_i32_0 : i32, i32
  }
  func.func @transform_3(%arg0: i32) -> (i32, i32, i32) {
    %c0_i32 = arith.constant 0 : i32
    %c0_i32_0 = arith.constant 0 : i32
    %c0_i32_1 = arith.constant 0 : i32
    %c0_i32_2 = arith.constant 0 : i32
    return %c0_i32, %c0_i32_0, %c0_i32_1 : i32, i32, i32
  }
  func.func @transform_4(%arg0: i32) -> (i32, i32, i32) {
    %c0_i32 = arith.constant 0 : i32
    %c0_i32_0 = arith.constant 0 : i32
    %c0_i32_1 = arith.constant 0 : i32
    return %arg0, %c0_i32, %c0_i32_0 : i32, i32, i32
  }
  func.func @transform_5(%arg0: i32) -> (i32, i32, i32) {
    %c0_i32 = arith.constant 0 : i32
    %c0_i32_0 = arith.constant 0 : i32
    %c0_i32_1 = arith.constant 0 : i32
    return %arg0, %c0_i32, %c0_i32_0 : i32, i32, i32
  }
}

module attributes {stable_mosaic.version = 11 : i64} {
  func.func @_k3_epilogue(%arg0: i32, %arg1: memref<1x256x128xbf16, #tpu.memory_space<vmem>>, %arg2: memref<1x256x128xbf16, #tpu.memory_space<vmem>>, %arg3: memref<1x128xf32, #tpu.memory_space<vmem>>, %arg4: memref<1x128xf32, #tpu.memory_space<vmem>>, %arg5: memref<1x256x128xbf16, #tpu.memory_space<vmem>>) attributes {dimension_semantics = [#tpu.dimension_semantics<parallel>], iteration_bounds = array<i64: 2>, scalar_prefetch = 0 : i64, scratch_operands = 0 : i64, tpu.core_type = #tpu.core_type<tc>, window_params = [{transform_indices = @transform_0, window_bounds = array<i64: 1, 256, 128>}, {transform_indices = @transform_1, window_bounds = array<i64: 1, 256, 128>}, {pipeline_mode = #tpu.pipeline_mode<synchronous>, transform_indices = @transform_2, window_bounds = array<i64: 1, 128>}, {pipeline_mode = #tpu.pipeline_mode<synchronous>, transform_indices = @transform_3, window_bounds = array<i64: 1, 128>}, {transform_indices = @transform_4, window_bounds = array<i64: 1, 256, 128>}]} {
    %c0 = arith.constant 0 : index
    %c0_0 = arith.constant 0 : index
    %c0_1 = arith.constant 0 : index
    %0 = vector.load %arg1[%c0, %c0_0, %c0_1] : memref<1x256x128xbf16, #tpu.memory_space<vmem>>, vector<1x256x128xbf16>
    %1 = vector.shape_cast %0 : vector<1x256x128xbf16> to vector<256x128xbf16>
    %2 = arith.extf %1 : vector<256x128xbf16> to vector<256x128xf32>
    %c0_2 = arith.constant 0 : index
    %c0_3 = arith.constant 0 : index
    %3 = vector.load %arg3[%c0_2, %c0_3] : memref<1x128xf32, #tpu.memory_space<vmem>>, vector<1x128xf32>
    %4 = vector.broadcast %3 : vector<1x128xf32> to vector<256x128xf32>
    %5 = arith.mulf %2, %4 : vector<256x128xf32>
    %c0_4 = arith.constant 0 : index
    %c0_5 = arith.constant 0 : index
    %6 = vector.load %arg4[%c0_4, %c0_5] : memref<1x128xf32, #tpu.memory_space<vmem>>, vector<1x128xf32>
    %7 = vector.broadcast %6 : vector<1x128xf32> to vector<256x128xf32>
    %8 = arith.addf %5, %7 : vector<256x128xf32>
    %c0_6 = arith.constant 0 : index
    %c0_7 = arith.constant 0 : index
    %c0_8 = arith.constant 0 : index
    %9 = vector.load %arg2[%c0_6, %c0_7, %c0_8] : memref<1x256x128xbf16, #tpu.memory_space<vmem>>, vector<1x256x128xbf16>
    %10 = vector.shape_cast %9 : vector<1x256x128xbf16> to vector<256x128xbf16>
    %11 = arith.extf %10 : vector<256x128xbf16> to vector<256x128xf32>
    %12 = arith.addf %8, %11 : vector<256x128xf32>
    %cst = arith.constant 0.000000e+00 : f32
    %13 = vector.broadcast %cst : f32 to vector<256x128xf32>
    %14 = arith.maximumf %12, %13 : vector<256x128xf32>
    %15 = arith.truncf %14 : vector<256x128xf32> to vector<256x128xbf16>
    %c0_9 = arith.constant 0 : index
    %c0_10 = arith.constant 0 : index
    %c0_11 = arith.constant 0 : index
    %16 = vector.load %arg5[%c0_9, %c0_10, %c0_11] : memref<1x256x128xbf16, #tpu.memory_space<vmem>>, vector<1x256x128xbf16>
    %17 = vector.shape_cast %16 : vector<1x256x128xbf16> to vector<256x128xbf16>
    %18 = vector.shape_cast %15 : vector<256x128xbf16> to vector<1x256x128xbf16>
    tpu.vector_store %arg5[%c0_9, %c0_10, %c0_11], %18 {strides = array<i32>} : memref<1x256x128xbf16, #tpu.memory_space<vmem>>, vector<1x256x128xbf16>,
    return
  }
  func.func @transform_0(%arg0: i32) -> (i32, i32, i32) {
    %c0_i32 = arith.constant 0 : i32
    %c0_i32_0 = arith.constant 0 : i32
    %c0_i32_1 = arith.constant 0 : i32
    return %arg0, %c0_i32, %c0_i32_0 : i32, i32, i32
  }
  func.func @transform_1(%arg0: i32) -> (i32, i32, i32) {
    %c0_i32 = arith.constant 0 : i32
    %c0_i32_0 = arith.constant 0 : i32
    %c0_i32_1 = arith.constant 0 : i32
    return %arg0, %c0_i32, %c0_i32_0 : i32, i32, i32
  }
  func.func @transform_2(%arg0: i32) -> (i32, i32) {
    %c0_i32 = arith.constant 0 : i32
    %c0_i32_0 = arith.constant 0 : i32
    %c0_i32_1 = arith.constant 0 : i32
    return %c0_i32, %c0_i32_0 : i32, i32
  }
  func.func @transform_3(%arg0: i32) -> (i32, i32) {
    %c0_i32 = arith.constant 0 : i32
    %c0_i32_0 = arith.constant 0 : i32
    %c0_i32_1 = arith.constant 0 : i32
    return %c0_i32, %c0_i32_0 : i32, i32
  }
  func.func @transform_4(%arg0: i32) -> (i32, i32, i32) {
    %c0_i32 = arith.constant 0 : i32
    %c0_i32_0 = arith.constant 0 : i32
    %c0_i32_1 = arith.constant 0 : i32
    return %arg0, %c0_i32, %c0_i32_0 : i32, i32, i32
  }
}

</mosaic_0001>

<bundles_post_ra>
// kernel: identity_block_x2.3
= control target key start
LH: loop header
LB: loop body
LE: loop exit
PB: predicated region body
PF: predicated region fallthrough
CT: control target
= control target key end

     0   :  { %s815_s9 = smov 0   ;;  %s1048_s0 = inlined_call_operand.vmem [shape: bf16[2,256,128], index: 0, kind: input, shape index: {}]   ;;  %s1049_s1 = inlined_call_operand.vmem [shape: bf16[128,128], index: 1, kind: input, shape index: {}]   ;;  %s1050_s2 = inlined_call_operand.vmem [shape: f32[2,2,128], index: 2, kind: output, shape index: {}]  }
   0x1 LB: > { %s625_s10 = sadd.s32 4294967295, %s797_s9   ;;  %p629_p0 = scmp.ge.s32.totalorder %s797_s9, 1  ;;  %s797_s9 = sphi %s815_s9, %s12_s9  }
   0x2   : > { %p112_p1 = scmp.lt.s32.totalorder %s797_s9, 3 }
   0x4   : > { %p113_p2 = pnand %p629_p0, %p112_p1 }
   0x5   : > { %p133_p3 = scmp.lt.s32.totalorder (!%p113_p2), %s625_s10, 1 }
   0x6   : > { %116 = sbr.rel (%p113_p2) target bundleno = 369 (0x171), region = 28 }
   0xb   : > { %v755_v0 = vld [vmem:[%s1049_s1 + $0x38] sm:$0xff]  ;;  %v754_v1 = vld [vmem:[%s1049_s1 + $0x30] sm:$0xff]  ;;  %v753_v2 = vld [vmem:[%s1049_s1 + $0x28] sm:$0xff]  ;;  %s1052_s10 = smov (!%p133_p3, %s625_s10), 1  ;;  %vm569_vm1 = vcmask 1040384  }
   0xc   : > { %334 = vmatpush.bf16.msra.mxu0 %v755_v0  ;;  %756 = vmatpush.bf16.msra.mxu1 %v755_v0  ;;  %v752_v3 = vld [vmem:[%s1049_s1 + $0x20] sm:$0xff]  ;;  %v751_v4 = vld [vmem:[%s1049_s1 + $0x18] sm:$0xff]  ;;  %v750_v5 = vld [vmem:[%s1049_s1 + $0x10] sm:$0xff]  ;;  %s731_s25 = sshll.u32 %s1052_s10, 7  ;;  %s632_s3 = sshll.u32 %s1052_s10, 1 }
   0xd   : > { %757 = vmatpush.bf16.msra.mxu2 %v755_v0  ;;  %758 = vmatpush.bf16.msra.mxu3 %v755_v0  ;;  %v749_v6 = vld [vmem:[%s1049_s1 + $0x8] sm:$0xff]  ;;  %v748_v7 = vld [vmem:[%s1049_s1] sm:$0xff]  ;;  %s857_s30 = scalar_lea.vmem %s1048_s0, %s731_s25  ;;  %s141_s6 = scalar_lea.vmem %s1050_s2, %s632_s3 }
   0xe   : > { %v732_v8 = vld [vmem:[%s857_s30] sm:$0xff]  ;;  %v733_v12 = vld [vmem:[%s857_s30 + $0x8] sm:$0xff]  ;;  %v734_v16 = vld [vmem:[%s857_s30 + $0x10] sm:$0xff] }
   0xf   : > { %v736_v9 = vld [vmem:[%s857_s30 + $0x20] sm:$0xff]  ;;  %v737_v13 = vld [vmem:[%s857_s30 + $0x28] sm:$0xff]  ;;  %v738_v17 = vld [vmem:[%s857_s30 + $0x30] sm:$0xff] }
  0x10   : > { %335 = vmatpush.bf16.msra.mxu0 %v754_v1  ;;  %759 = vmatpush.bf16.msra.mxu1 %v754_v1  ;;  %v740_v10 = vld [vmem:[%s857_s30 + $0x40] sm:$0xff]  ;;  %v741_v14 = vld [vmem:[%s857_s30 + $0x48] sm:$0xff]  ;;  %v742_v18 = vld [vmem:[%s857_s30 + $0x50] sm:$0xff] }
  0x11   : > { %760 = vmatpush.bf16.msra.mxu2 %v754_v1  ;;  %761 = vmatpush.bf16.msra.mxu3 %v754_v1  ;;  %v744_v11 = vld [vmem:[%s857_s30 + $0x60] sm:$0xff]  ;;  %v745_v15 = vld [vmem:[%s857_s30 + $0x68] sm:$0xff]  ;;  %v746_v19 = vld [vmem:[%s857_s30 + $0x70] sm:$0xff] }
  0x12   : > { %v735_v20 = vld [vmem:[%s857_s30 + $0x18] sm:$0xff] }
  0x13   : > { %v739_v21 = vld [vmem:[%s857_s30 + $0x38] sm:$0xff] }
  0x14   : > { %336 = vmatpush.bf16.msra.mxu0 %v753_v2  ;;  %762 = vmatpush.bf16.msra.mxu1 %v753_v2  ;;  %v743_v22 = vld [vmem:[%s857_s30 + $0x58] sm:$0xff] }
  0x15   : > { %763 = vmatpush.bf16.msra.mxu2 %v753_v2  ;;  %764 = vmatpush.bf16.msra.mxu3 %v753_v2  ;;  %v747_v23 = vld [vmem:[%s857_s30 + $0x78] sm:$0xff] }
  0x18   : > { %337 = vmatpush.bf16.msra.mxu0 %v752_v3  ;;  %765 = vmatpush.bf16.msra.mxu1 %v752_v3 }
  0x19   : > { %766 = vmatpush.bf16.msra.mxu2 %v752_v3  ;;  %767 = vmatpush.bf16.msra.mxu3 %v752_v3 }
  0x1c   : > { %338 = vmatpush.bf16.msra.mxu0 %v751_v4  ;;  %768 = vmatpush.bf16.msra.mxu1 %v751_v4 }
  0x1d   : > { %769 = vmatpush.bf16.msra.mxu2 %v751_v4  ;;  %770 = vmatpush.bf16.msra.mxu3 %v751_v4 }
  0x20   : > { %339 = vmatpush.bf16.msra.mxu0 %v750_v5  ;;  %771 = vmatpush.bf16.msra.mxu1 %v750_v5 }
  0x21   : > { %772 = vmatpush.bf16.msra.mxu2 %v750_v5  ;;  %773 = vmatpush.bf16.msra.mxu3 %v750_v5 }
  0x24   : > { %340 = vmatpush.bf16.msra.mxu0 %v749_v6  ;;  %774 = vmatpush.bf16.msra.mxu1 %v749_v6 }
  0x25   : > { %775 = vmatpush.bf16.msra.mxu2 %v749_v6  ;;  %776 = vmatpush.bf16.msra.mxu3 %v749_v6 }
  0x28   : > { %341 = vmatpush.bf16.msra.mxu0 %v748_v7  ;;  %777 = vmatpush.bf16.msra.mxu1 %v748_v7 }
  0x29   : > { %778 = vmatpush.bf16.msra.mxu2 %v748_v7  ;;  %779 = vmatpush.bf16.msra.mxu3 %v748_v7 }
  0x2b   : > { %342 = vmatmul.bf16.vlgmr.msra.gmra.mxu0 %v732_v8  ;;  %362 = vmatmul.bf16.vlgmr.msra.gmra.mxu1 %v736_v9 }
  0x2c   : > { %382 = vmatmul.bf16.vlgmr.msra.gmra.mxu2 %v740_v10  ;;  %402 = vmatmul.bf16.vlgmr.msra.gmra.mxu3 %v744_v11 }
  0x3b   : > { %347 = vmatmul.bf16.gmra.mxu0 %v733_v12  ;;  %367 = vmatmul.bf16.gmra.mxu1 %v737_v13 }
  0x3c   : > { %387 = vmatmul.bf16.gmra.mxu2 %v741_v14  ;;  %407 = vmatmul.bf16.gmra.mxu3 %v745_v15 }
  0x4b   : > { %352 = vmatmul.bf16.gmra.mxu0 %v734_v16  ;;  %372 = vmatmul.bf16.gmra.mxu1 %v738_v17 }
  0x4c   : > { %392 = vmatmul.bf16.gmra.mxu2 %v742_v18  ;;  %412 = vmatmul.bf16.gmra.mxu3 %v746_v19  ;;  %v799_v18 = vmov 256.0  }
  0x4d   : > { %789 = vrcp.f32 %v799_v18 }
  0x5b   : > { %357 = vmatmul.bf16.gmra.mxu0 %v735_v20  ;;  %377 = vmatmul.bf16.gmra.mxu1 %v739_v21  ;;  %v790_v21 = vpop.eup %789 }
  0x5c   : > { %397 = vmatmul.bf16.gmra.mxu2 %v743_v22  ;;  %417 = vmatmul.bf16.gmra.mxu3 %v747_v23  ;;  %vm465_vm0 = vweird.f32 %v790_v21 }
  0xa8   : > { %v875_v24 = vpop.f32.mrf.mxu0  ;;  %v877_v25 = vpop.f32.mrf.mxu1 }
  0xaf   : > { %v885_v29 = vpop.f32.mrf.mxu2  ;;  %v897_v35 = vpop.f32.mrf.mxu3 }
  0xb0   : > { %v879_v26 = vpop.f32.mrf.mxu0  ;;  %v881_v27 = vpop.f32.mrf.mxu1 }
  0xb1   : > { %v423_v40 = vadd.f32 %v879_v26, %v875_v24 }
  0xb7   : > { %v891_v32 = vpop.f32.mrf.mxu2  ;;  %v905_v39 = vpop.f32.mrf.mxu3 }
  0xb8   : > { %v883_v28 = vpop.f32.mrf.mxu0  ;;  %v887_v30 = vpop.f32.mrf.mxu1 }
  0xb9   : > { %v424_v41 = vadd.f32 %v423_v40, %v883_v28 }
  0xbf   : > { %v899_v36 = vpop.f32.mrf.mxu2  ;;  %v919_v48 = vpop.f32.mrf.mxu3 }
  0xc0   : > { %v889_v31 = vpop.f32.mrf.mxu0  ;;  %v895_v34 = vpop.f32.mrf.mxu1 }
  0xc1   : > { %v425_v44 = vadd.f32 %v424_v41, %v889_v31  ;;  %v461_v41 = vmul.f32 256.0, %v790_v21 }
  0xc7   : > { %v912_v43 = vpop.f32.mrf.mxu2  ;;  %v932_v57 = vpop.f32.mrf.mxu3 }
  0xc8   : > { %v893_v33 = vpop.f32.mrf.mxu0  ;;  %v903_v38 = vpop.f32.mrf.mxu1 }
  0xc9   : > { %v426_v45 = vadd.f32 %v425_v44, %v893_v33 }
  0xcf   : > { %v925_v52 = vpop.f32.mrf.mxu2  ;;  %v943_v1 = vpop.f32.mrf.mxu3 }
  0xd0   : > { %v901_v37 = vpop.f32.mrf.mxu0  ;;  %v916_v46 = vpop.f32.mrf.mxu1 }
  0xd1   : > { %v427_v47 = vadd.f32 %v426_v45, %v901_v37 }
  0xd7   : > { %v936_v60 = vpop.f32.mrf.mxu2  ;;  %v952_v8 = vpop.f32.mrf.mxu3 }
  0xd8   : > { %v910_v42 = vpop.f32.mrf.mxu0  ;;  %v929_v55 = vpop.f32.mrf.mxu1 }
  0xd9   : > { %v428_v49 = vadd.f32 %v427_v47, %v910_v42  ;;  %v462_v47 = vsub.f32 1.0, %v461_v41 }
  0xdf   : > { %v947_v4 = vpop.f32.mrf.mxu2  ;;  %v961_v15 = vpop.f32.mrf.mxu3 }
  0xe0   : > { %v922_v50 = vpop.f32.mrf.mxu0  ;;  %v940_v63 = vpop.f32.mrf.mxu1 }
  0xe1   : > { %v429_v51 = vadd.f32 %v428_v49, %v922_v50 }
  0xe3   : > { %v430_v53 = vadd.f32 %v429_v51, %v877_v25 }
  0xe5   : > { %v431_v54 = vadd.f32 %v430_v53, %v881_v27  ;;  %v463_v53 = vmul.f32 %v790_v21, %v462_v47 }
  0xe7   : > { %v432_v56 = vadd.f32 %v431_v54, %v887_v30  ;;  %v956_v11 = vpop.f32.mrf.mxu2  ;;  %v968_v23 = vpop.f32.mrf.mxu3 }
  0xe9   : > { %v433_v58 = vadd.f32 %v432_v56, %v895_v34  ;;  %v464_v56 = vadd.f32 %v790_v21, %v463_v53 }
  0xeb   : > { %v434_v59 = vadd.f32 %v433_v58, %v903_v38 }
  0xed   : > { %v435_v61 = vadd.f32 %v434_v59, %v916_v46  ;;  %v466_v59 = vsel %vm465_vm0, %v790_v21, %v464_v56 }
  0xef   : > { %v436_v62 = vadd.f32 %v435_v61, %v929_v55 }
  0xf1   : > { %v437_v0 = vadd.f32 %v436_v62, %v940_v63 }
  0xf3   : > { %v438_v2 = vadd.f32 %v437_v0, %v885_v29 }
  0xf5   : > { %v439_v3 = vadd.f32 %v438_v2, %v891_v32 }
  0xf7   : > { %v440_v5 = vadd.f32 %v439_v3, %v899_v36 }
  0xf9   : > { %v441_v6 = vadd.f32 %v440_v5, %v912_v43 }
  0xfb   : > { %v442_v7 = vadd.f32 %v441_v6, %v925_v52 }
  0xfd   : > { %v443_v9 = vadd.f32 %v442_v7, %v936_v60 }
  0xff   : > { %v444_v10 = vadd.f32 %v443_v9, %v947_v4 }
 0x101   : > { %v445_v12 = vadd.f32 %v444_v10, %v956_v11 }
 0x103   : > { %v446_v13 = vadd.f32 %v445_v12, %v897_v35 }
 0x105   : > { %v447_v14 = vadd.f32 %v446_v13, %v905_v39 }
 0x107   : > { %v448_v16 = vadd.f32 %v447_v14, %v919_v48 }
 0x109   : > { %v449_v17 = vadd.f32 %v448_v16, %v932_v57 }
 0x10b   : > { %v450_v19 = vadd.f32 %v449_v17, %v943_v1 }
 0x10d   : > { %v451_v20 = vadd.f32 %v450_v19, %v952_v8 }
 0x10f   : > { %v452_v22 = vadd.f32 %v451_v20, %v961_v15 }
 0x111   : > { %v453_v40 = vadd.f32 %v452_v22, %v968_v23 }
 0x113   : > { %v454_v44 = vrot.slane %v453_v40, 4 }
 0x115   : > { %v455_v45 = vadd.f32 %v454_v44, %v453_v40 }
 0x117   : > { %v456_v49 = vrot.slane %v455_v45, 2 }
 0x119   : > { %v457_v51 = vadd.f32 %v456_v49, %v455_v45 }
 0x11b   : > { %v458_v54 = vrot.slane %v457_v51, 1 }
 0x11d   : > { %v971_v58 = vadd.f32 %v458_v54, %v457_v51 }
 0x11f   : > { %v974_v61 = vmul.f32 %v466_v59, %v971_v58 }
 0x121   : > { %v468_v62 = vsub.f32 %v875_v24, %v974_v61  ;;  %v469_v0 = vsub.f32 %v879_v26, %v974_v61  ;;  %v470_v2 = vsub.f32 %v883_v28, %v974_v61  ;;  %v471_v6 = vsub.f32 %v889_v31, %v974_v61 }
 0x122   : > { %v472_v7 = vsub.f32 %v893_v33, %v974_v61  ;;  %v473_v12 = vsub.f32 %v901_v37, %v974_v61  ;;  %v474_v26 = vsub.f32 %v910_v42, %v974_v61  ;;  %v475_v16 = vsub.f32 %v922_v50, %v974_v61 }
 0x123   : > { %v500_v3 = vmul.f32 %v468_v62, %v468_v62  ;;  %v501_v5 = vmul.f32 %v469_v0, %v469_v0  ;;  %v502_v9 = vmul.f32 %v470_v2, %v470_v2  ;;  %v503_v24 = vmul.f32 %v471_v6, %v471_v6 }
 0x124   : > { %v504_v14 = vmul.f32 %v472_v7, %v472_v7  ;;  %v505_v17 = vmul.f32 %v473_v12, %v473_v12  ;;  %v476_v33 = vsub.f32 %v877_v25, %v974_v61  ;;  %v506_v18 = vmul.f32 %v474_v26, %v474_v26 }
 0x125   : > { %v532_v10 = vadd.f32 %v501_v5, %v500_v3  ;;  %v477_v37 = vsub.f32 %v881_v27, %v974_v61  ;;  %v507_v20 = vmul.f32 %v475_v16, %v475_v16  ;;  %v478_v42 = vsub.f32 %v887_v30, %v974_v61 }
 0x126   : > { %v508_v22 = vmul.f32 %v476_v33, %v476_v33  ;;  %v479_v50 = vsub.f32 %v895_v34, %v974_v61  ;;  %v480_v25 = vsub.f32 %v903_v38, %v974_v61  ;;  %v481_v27 = vsub.f32 %v916_v46, %v974_v61 }
 0x127   : > { %v533_v13 = vadd.f32 %v532_v10, %v502_v9  ;;  %v509_v41 = vmul.f32 %v477_v37, %v477_v37  ;;  %v510_v45 = vmul.f32 %v478_v42, %v478_v42  ;;  %v482_v30 = vsub.f32 %v929_v55, %v974_v61 }
 0x128   : > { %v511_v49 = vmul.f32 %v479_v50, %v479_v50  ;;  %v512_v53 = vmul.f32 %v480_v25, %v480_v25  ;;  %v483_v34 = vsub.f32 %v940_v63, %v974_v61  ;;  %v513_v56 = vmul.f32 %v481_v27, %v481_v27 }
 0x129   : > { %v534_v28 = vadd.f32 %v533_v13, %v503_v24  ;;  %v484_v38 = vsub.f32 %v885_v29, %v974_v61  ;;  %v514_v62 = vmul.f32 %v482_v30, %v482_v30  ;;  %v485_v46 = vsub.f32 %v891_v32, %v974_v61 }
 0x12a   : > { %v515_v2 = vmul.f32 %v483_v34, %v483_v34  ;;  %v486_v55 = vsub.f32 %v899_v36, %v974_v61  ;;  %v487_v63 = vsub.f32 %v912_v43, %v974_v61  ;;  %v488_v29 = vsub.f32 %v925_v52, %v974_v61 }
 0x12b   : > { %v535_v31 = vadd.f32 %v534_v28, %v504_v14  ;;  %v516_v5 = vmul.f32 %v484_v38, %v484_v38  ;;  %v517_v7 = vmul.f32 %v485_v46, %v485_v46  ;;  %v489_v32 = vsub.f32 %v936_v60, %v974_v61 }
 0x12c   : > { %v518_v10 = vmul.f32 %v486_v55, %v486_v55  ;;  %v519_v24 = vmul.f32 %v487_v63, %v487_v63  ;;  %v490_v36 = vsub.f32 %v947_v4, %v974_v61  ;;  %v520_v26 = vmul.f32 %v488_v29, %v488_v29 }
 0x12d   : > { %v536_v19 = vadd.f32 %v535_v31, %v505_v17  ;;  %v491_v43 = vsub.f32 %v956_v11, %v974_v61  ;;  %v521_v28 = vmul.f32 %v489_v32, %v489_v32  ;;  %v492_v52 = vsub.f32 %v897_v35, %v974_v61 }
 0x12e   : > { %v522_v17 = vmul.f32 %v490_v36, %v490_v36  ;;  %v493_v60 = vsub.f32 %v905_v39, %v974_v61  ;;  %v494_v4 = vsub.f32 %v919_v48, %v974_v61  ;;  %v495_v11 = vsub.f32 %v932_v57, %v974_v61 }
 0x12f   : > { %v537_v21 = vadd.f32 %v536_v19, %v506_v18  ;;  %v523_v33 = vmul.f32 %v491_v43, %v491_v43  ;;  %v524_v19 = vmul.f32 %v492_v52, %v492_v52  ;;  %v496_v35 = vsub.f32 %v943_v1, %v974_v61 }
 0x130   : > { %v526_v42 = vmul.f32 %v494_v4, %v494_v4  ;;  %v497_v39 = vsub.f32 %v952_v8, %v974_v61  ;;  %v498_v48 = vsub.f32 %v961_v15, %v974_v61  ;;  %v499_v57 = vsub.f32 %v968_v23, %v974_v61 }
 0x131   : > { %v538_v40 = vadd.f32 %v537_v21, %v507_v20  ;;  %v525_v20 = vmul.f32 %v493_v60, %v493_v60 }
 0x132   : > { %v529_v25 = vmul.f32 %v497_v39, %v497_v39  ;;  %v531_v27 = vmul.f32 %v499_v57, %v499_v57 }
 0x133   : > { %v539_v44 = vadd.f32 %v538_v40, %v508_v22  ;;  %v527_v40 = vmul.f32 %v495_v11, %v495_v11 }
 0x135   : > { %v540_v47 = vadd.f32 %v539_v44, %v509_v41  ;;  %v528_v41 = vmul.f32 %v496_v35, %v496_v35 }
 0x137   : > { %v541_v51 = vadd.f32 %v540_v47, %v510_v45  ;;  %v530_v47 = vmul.f32 %v498_v48, %v498_v48 }
 0x139   : > { %v542_v54 = vadd.f32 %v541_v51, %v511_v49 }
 0x13b   : > { %v543_v59 = vadd.f32 %v542_v54, %v512_v53 }
 0x13d   : > { %v544_v0 = vadd.f32 %v543_v59, %v513_v56 }
 0x13f   : > { %v545_v3 = vadd.f32 %v544_v0, %v514_v62 }
 0x141   : > { %v546_v6 = vadd.f32 %v545_v3, %v515_v2 }
 0x143   : > { %v547_v9 = vadd.f32 %v546_v6, %v516_v5 }
 0x145   : > { %v548_v12 = vadd.f32 %v547_v9, %v517_v7 }
 0x147   : > { %v549_v13 = vadd.f32 %v548_v12, %v518_v10 }
 0x149   : > { %v550_v14 = vadd.f32 %v549_v13, %v519_v24 }
 0x14b   : > { %v551_v16 = vadd.f32 %v550_v14, %v520_v26 }
 0x14d   : > { %v552_v31 = vadd.f32 %v551_v16, %v521_v28 }
 0x14f   : > { %v553_v18 = vadd.f32 %v552_v31, %v522_v17 }
 0x151   : > { %v554_v37 = vadd.f32 %v553_v18, %v523_v33 }
 0x153   : > { %v555_v21 = vadd.f32 %v554_v37, %v524_v19 }
 0x155   : > { %v556_v22 = vadd.f32 %v555_v21, %v525_v20 }
 0x157   : > { %v557_v50 = vadd.f32 %v556_v22, %v526_v42 }
 0x159   : > { %v558_v44 = vadd.f32 %v557_v50, %v527_v40 }
 0x15b   : > { %v559_v45 = vadd.f32 %v558_v44, %v528_v41 }
 0x15d   : > { %v560_v1 = vadd.f32 %v559_v45, %v529_v25 }
 0x15f   : > { %v561_v49 = vadd.f32 %v560_v1, %v530_v47 }
 0x161   : > { %v562_v51 = vadd.f32 %v561_v49, %v531_v27 }
 0x163   : > { %v563_v30 = vrot.slane %v562_v51, 4 }
 0x165   : > { %v564_v8 = vadd.f32 %v563_v30, %v562_v51 }
 0x167   : > { %v565_v53 = vrot.slane %v564_v8, 2 }
 0x169   : > { %v566_v54 = vadd.f32 %v565_v53, %v564_v8 }
 0x16b   : > { %v567_v34 = vrot.slane %v566_v54, 1 }
 0x16d   : > { %v568_v15 = vadd.f32 %v567_v34, %v566_v54 }
 0x16f   : > { %v570_v23 = vsel %vm569_vm1, %v971_v58, %v568_v15 }
 0x170   : > { %571 = vst [vmem:[%s141_s6] sm:$0x3] %v570_v23 }
 0x171 PF: > { %s12_s9 = sadd.s32 1, %s797_s9  }
 0x172   : > { %p9_p4 = scmp.ge.s32.totalorder %s12_s9, 4  }
 0x174   :  { %11 = sbr.rel (!%p9_p4) target bundleno = 1 (0x1), region = 58 }

// kernel: identity_block_x2.5
= control target key start
LH: loop header
LB: loop body
LE: loop exit
PB: predicated region body
PF: predicated region fallthrough
CT: control target
= control target key end

     0   :  { %s925_s15 = smov 0   ;;  %s1078_s0 = inlined_call_operand.vmem [shape: bf16[2,256,128], index: 0, kind: input, shape index: {}]   ;;  %s1079_s1 = inlined_call_operand.vmem [shape: bf16[2,256,128], index: 1, kind: input, shape index: {}]   ;;  %s1080_s2 = inlined_call_operand.vmem [shape: f32[1,128], index: 2, kind: input, shape index: {}]   ;;  %s1081_s3 = inlined_call_operand.vmem [shape: f32[1,128], index: 3, kind: input, shape index: {}]   ;;  %s1082_s4 = inlined_call_operand.vmem [shape: bf16[2,256,128], index: 4, kind: output, shape index: {}]  }
   0x1 LB: > { %s613_s16 = sadd.s32 4294967295, %s898_s15   ;;  %p617_p0 = scmp.ge.s32.totalorder %s898_s15, 1  ;;  %s898_s15 = sphi %s925_s15, %s14_s15  }
   0x2   : > { %p172_p1 = scmp.lt.s32.totalorder %s898_s15, 3 }
   0x4   : > { %p173_p2 = pnand %p617_p0, %p172_p1 }
   0x5   : > { %p203_p3 = scmp.lt.s32.totalorder (!%p173_p2), %s613_s16, 1 }
   0x6   : > { %176 = sbr.rel (%p173_p2) target bundleno = 74 (0x4a), region = 36 }
   0xb   : > { %s1084_s16 = smov (!%p203_p3, %s613_s16), 1  ;;  %v950_v0 = vld [vmem:[%s1080_s2] ss:$0 sm:$0xff] }
   0xc   : > { %s933_s17 = sshll.u32 %s1084_s16, 7  ;;  %v955_v1 = vld [vmem:[%s1081_s3] ss:$0 sm:$0xff] }
   0xd   : > { %s939_s20 = scalar_lea.vmem %s1078_s0, %s933_s17  ;;  %s945_s23 = scalar_lea.vmem %s1079_s1, %s933_s17 }
   0xe   : > { %v630_v2 = vld [vmem:[%s939_s20] sm:$0xff]   ;;  %v837_v4 = vld [vmem:[%s939_s20 + $0x8] sm:$0xff]   ;;  %v838_v10 = vld [vmem:[%s939_s20 + $0x10] sm:$0xff]   ;;  %s984_s30 = scalar_lea.vmem %s1082_s4, %s933_s17 }
   0xf   : > { %v694_v3 = vld [vmem:[%s945_s23] sm:$0xff]   ;;  %v631_v5 = vunpack.c.l.bf16 %v630_v2  ;;  %v632_v6 = vunpack.c.h.bf16 %v630_v2  ;;  %v852_v9 = vld [vmem:[%s945_s23 + $0x8] sm:$0xff]   ;;  %v853_v11 = vld [vmem:[%s945_s23 + $0x10] sm:$0xff]   ;;  %v635_v12 = vunpack.c.l.bf16 %v837_v4  ;;  %v636_v13 = vunpack.c.h.bf16 %v837_v4 }
  0x10   : > { %v695_v7 = vunpack.c.l.bf16 %v694_v3  ;;  %v696_v8 = vunpack.c.h.bf16 %v694_v3  ;;  %v699_v14 = vunpack.c.l.bf16 %v852_v9  ;;  %v700_v15 = vunpack.c.h.bf16 %v852_v9  ;;  %v839_v20 = vld [vmem:[%s939_s20 + $0x18] sm:$0xff]   ;;  %v840_v46 = vld [vmem:[%s939_s20 + $0x20] sm:$0xff]   ;;  %v841_v56 = vld [vmem:[%s939_s20 + $0x28] sm:$0xff]  }
  0x11   : > { %v286_v16 = vmul.f32 %v950_v0, %v631_v5  ;;  %v287_v17 = vmul.f32 %v950_v0, %v632_v6  ;;  %v639_v18 = vunpack.c.l.bf16 %v838_v10  ;;  %v640_v19 = vunpack.c.h.bf16 %v838_v10  ;;  %v854_v41 = vld [vmem:[%s945_s23 + $0x18] sm:$0xff]   ;;  %v855_v51 = vld [vmem:[%s945_s23 + $0x20] sm:$0xff]   ;;  %v856_v61 = vld [vmem:[%s945_s23 + $0x28] sm:$0xff]  }
  0x12   : > { %v288_v21 = vmul.f32 %v950_v0, %v635_v12  ;;  %v289_v22 = vmul.f32 %v950_v0, %v636_v13  ;;  %v703_v23 = vunpack.c.l.bf16 %v853_v11  ;;  %v704_v24 = vunpack.c.h.bf16 %v853_v11  ;;  %v857_v9 = vld [vmem:[%s945_s23 + $0x30] sm:$0xff]  }
  0x13   : > { %v322_v25 = vadd.f32 %v955_v1, %v286_v16  ;;  %v323_v26 = vadd.f32 %v955_v1, %v287_v17  ;;  %v290_v27 = vmul.f32 %v950_v0, %v639_v18  ;;  %v291_v28 = vmul.f32 %v950_v0, %v640_v19 }
  0x14   : > { %v324_v29 = vadd.f32 %v955_v1, %v288_v21  ;;  %v325_v30 = vadd.f32 %v955_v1, %v289_v22  ;;  %v643_v31 = vunpack.c.l.bf16 %v839_v20  ;;  %v644_v32 = vunpack.c.h.bf16 %v839_v20  ;;  %v843_v22 = vld [vmem:[%s939_s20 + $0x38] sm:$0xff]  }
  0x15   : > { %v418_v33 = vadd.f32 %v695_v7, %v322_v25  ;;  %v419_v34 = vadd.f32 %v696_v8, %v323_v26  ;;  %v326_v35 = vadd.f32 %v955_v1, %v290_v27  ;;  %v327_v36 = vadd.f32 %v955_v1, %v291_v28  ;;  %v842_v8 = vld [vmem:[%s939_s20 + $0x30] sm:$0xff]  }
  0x16   : > { %v420_v37 = vadd.f32 %v699_v14, %v324_v29  ;;  %v421_v38 = vadd.f32 %v700_v15, %v325_v30  ;;  %v292_v39 = vmul.f32 %v950_v0, %v643_v31  ;;  %v293_v40 = vmul.f32 %v950_v0, %v644_v32  ;;  %v858_v31 = vld [vmem:[%s945_s23 + $0x38] sm:$0xff]  }
  0x17   : > { %v450_v42 = vmax.f32 %v418_v33, 0.0  ;;  %v451_v43 = vmax.f32 %v419_v34, 0.0  ;;  %v422_v44 = vadd.f32 %v703_v23, %v326_v35  ;;  %v423_v45 = vadd.f32 %v704_v24, %v327_v36 }
  0x18   : > { %v452_v47 = vmax.f32 %v420_v37, 0.0  ;;  %v453_v48 = vmax.f32 %v421_v38, 0.0  ;;  %v328_v49 = vadd.f32 %v955_v1, %v292_v39  ;;  %v329_v50 = vadd.f32 %v955_v1, %v293_v40  ;;  %v844_v40 = vld [vmem:[%s939_s20 + $0x40] sm:$0xff]  }
  0x19   : > { %v760_v52 = vpack.c.bf16 %v451_v43, %v450_v42  ;;  %v454_v53 = vmax.f32 %v422_v44, 0.0  ;;  %v455_v54 = vmax.f32 %v423_v45, 0.0  ;;  %v707_v55 = vunpack.c.l.bf16 %v854_v41 }
  0x1a   : > { %v765_v57 = vpack.c.bf16 %v453_v48, %v452_v47  ;;  %v708_v58 = vunpack.c.h.bf16 %v854_v41  ;;  %v647_v59 = vunpack.c.l.bf16 %v840_v46  ;;  %v648_v60 = vunpack.c.h.bf16 %v840_v46 }
  0x1b   : > { %761 = vst [vmem:[%s984_s30] sm:$0xff] %v760_v52   ;;  %v770_v62 = vpack.c.bf16 %v455_v54, %v454_v53  ;;  %v424_v63 = vadd.f32 %v707_v55, %v328_v49  ;;  %v711_v2 = vunpack.c.l.bf16 %v855_v51  ;;  %v712_v3 = vunpack.c.h.bf16 %v855_v51  ;;  %v859_v49 = vld [vmem:[%s945_s23 + $0x40] sm:$0xff]   ;;  %v845_v54 = vld [vmem:[%s939_s20 + $0x48] sm:$0xff]  }
  0x1c   : > { %867 = vst [vmem:[%s984_s30 + $0x8] sm:$0xff] %v765_v57   ;;  %v425_v4 = vadd.f32 %v708_v58, %v329_v50  ;;  %v294_v5 = vmul.f32 %v950_v0, %v647_v59  ;;  %v295_v6 = vmul.f32 %v950_v0, %v648_v60  ;;  %v651_v7 = vunpack.c.l.bf16 %v841_v56 }
  0x1d   : > { %868 = vst [vmem:[%s984_s30 + $0x10] sm:$0xff] %v770_v62   ;;  %v456_v10 = vmax.f32 %v424_v63, 0.0  ;;  %v652_v11 = vunpack.c.h.bf16 %v841_v56  ;;  %v715_v12 = vunpack.c.l.bf16 %v856_v61  ;;  %v716_v13 = vunpack.c.h.bf16 %v856_v61  ;;  %v860_v63 = vld [vmem:[%s945_s23 + $0x48] sm:$0xff]  }
  0x1e   : > { %v457_v14 = vmax.f32 %v425_v4, 0.0  ;;  %v330_v15 = vadd.f32 %v955_v1, %v294_v5  ;;  %v331_v16 = vadd.f32 %v955_v1, %v295_v6  ;;  %v296_v17 = vmul.f32 %v950_v0, %v651_v7  ;;  %v846_v6 = vld [vmem:[%s939_s20 + $0x50] sm:$0xff]  }
  0x1f   : > { %v297_v18 = vmul.f32 %v950_v0, %v652_v11  ;;  %v655_v19 = vunpack.c.l.bf16 %v842_v8  ;;  %v656_v20 = vunpack.c.h.bf16 %v842_v8  ;;  %v719_v21 = vunpack.c.l.bf16 %v857_v9  ;;  %v861_v11 = vld [vmem:[%s945_s23 + $0x50] sm:$0xff]  }
  0x20   : > { %v775_v23 = vpack.c.bf16 %v457_v14, %v456_v10  ;;  %v426_v24 = vadd.f32 %v711_v2, %v330_v15  ;;  %v427_v25 = vadd.f32 %v712_v3, %v331_v16  ;;  %v332_v26 = vadd.f32 %v955_v1, %v296_v17 }
  0x21   : > { %v333_v27 = vadd.f32 %v955_v1, %v297_v18  ;;  %v298_v28 = vmul.f32 %v950_v0, %v655_v19  ;;  %v299_v29 = vmul.f32 %v950_v0, %v656_v20  ;;  %v720_v30 = vunpack.c.h.bf16 %v857_v9  ;;  %v847_v20 = vld [vmem:[%s939_s20 + $0x58] sm:$0xff]  }
  0x22   : > { %869 = vst [vmem:[%s984_s30 + $0x18] sm:$0xff] %v775_v23   ;;  %v458_v32 = vmax.f32 %v426_v24, 0.0  ;;  %v459_v33 = vmax.f32 %v427_v25, 0.0  ;;  %v428_v34 = vadd.f32 %v715_v12, %v332_v26  ;;  %v659_v35 = vunpack.c.l.bf16 %v843_v22 }
  0x23   : > { %v429_v36 = vadd.f32 %v716_v13, %v333_v27  ;;  %v334_v37 = vadd.f32 %v955_v1, %v298_v28  ;;  %v335_v38 = vadd.f32 %v955_v1, %v299_v29  ;;  %v660_v39 = vunpack.c.h.bf16 %v843_v22  ;;  %v862_v29 = vld [vmem:[%s945_s23 + $0x58] sm:$0xff]  }
  0x24   : > { %v780_v41 = vpack.c.bf16 %v459_v33, %v458_v32  ;;  %v460_v42 = vmax.f32 %v428_v34, 0.0  ;;  %v300_v43 = vmul.f32 %v950_v0, %v659_v35  ;;  %v723_v44 = vunpack.c.l.bf16 %v858_v31 }
  0x25   : > { %v461_v45 = vmax.f32 %v429_v36, 0.0  ;;  %v430_v46 = vadd.f32 %v719_v21, %v334_v37  ;;  %v431_v47 = vadd.f32 %v720_v30, %v335_v38  ;;  %v301_v48 = vmul.f32 %v950_v0, %v660_v39  ;;  %v848_v38 = vld [vmem:[%s939_s20 + $0x60] sm:$0xff]  }
  0x26   : > { %870 = vst [vmem:[%s984_s30 + $0x20] sm:$0xff] %v780_v41   ;;  %v336_v50 = vadd.f32 %v955_v1, %v300_v43  ;;  %v724_v51 = vunpack.c.h.bf16 %v858_v31  ;;  %v663_v52 = vunpack.c.l.bf16 %v844_v40  ;;  %v664_v53 = vunpack.c.h.bf16 %v844_v40  ;;  %v863_v43 = vld [vmem:[%s945_s23 + $0x60] sm:$0xff]  }
  0x27   : > { %v785_v55 = vpack.c.bf16 %v461_v45, %v460_v42  ;;  %v462_v56 = vmax.f32 %v430_v46, 0.0  ;;  %v463_v57 = vmax.f32 %v431_v47, 0.0  ;;  %v337_v58 = vadd.f32 %v955_v1, %v301_v48 }
  0x28   : > { %v432_v59 = vadd.f32 %v723_v44, %v336_v50  ;;  %v302_v60 = vmul.f32 %v950_v0, %v663_v52  ;;  %v303_v61 = vmul.f32 %v950_v0, %v664_v53  ;;  %v727_v62 = vunpack.c.l.bf16 %v859_v49  ;;  %v849_v52 = vld [vmem:[%s939_s20 + $0x68] sm:$0xff]  }
  0x29   : > { %871 = vst [vmem:[%s984_s30 + $0x28] sm:$0xff] %v785_v55   ;;  %v790_v2 = vpack.c.bf16 %v463_v57, %v462_v56  ;;  %v433_v3 = vadd.f32 %v724_v51, %v337_v58  ;;  %v728_v4 = vunpack.c.h.bf16 %v859_v49  ;;  %v667_v5 = vunpack.c.l.bf16 %v845_v54 }
  0x2a   : > { %v464_v7 = vmax.f32 %v432_v59, 0.0  ;;  %v338_v8 = vadd.f32 %v955_v1, %v302_v60  ;;  %v339_v9 = vadd.f32 %v955_v1, %v303_v61  ;;  %v668_v10 = vunpack.c.h.bf16 %v845_v54  ;;  %v864_v61 = vld [vmem:[%s945_s23 + $0x68] sm:$0xff]  }
  0x2b   : > { %872 = vst [vmem:[%s984_s30 + $0x30] sm:$0xff] %v790_v2   ;;  %v465_v12 = vmax.f32 %v433_v3, 0.0  ;;  %v304_v13 = vmul.f32 %v950_v0, %v667_v5  ;;  %v731_v14 = vunpack.c.l.bf16 %v860_v63  ;;  %v732_v15 = vunpack.c.h.bf16 %v860_v63 }
  0x2c   : > { %v434_v16 = vadd.f32 %v727_v62, %v338_v8  ;;  %v435_v17 = vadd.f32 %v728_v4, %v339_v9  ;;  %v305_v18 = vmul.f32 %v950_v0, %v668_v10  ;;  %v671_v19 = vunpack.c.l.bf16 %v846_v6  ;;  %v850_v4 = vld [vmem:[%s939_s20 + $0x70] sm:$0xff]  }
  0x2d   : > { %v795_v21 = vpack.c.bf16 %v465_v12, %v464_v7  ;;  %v340_v22 = vadd.f32 %v955_v1, %v304_v13  ;;  %v672_v23 = vunpack.c.h.bf16 %v846_v6  ;;  %v735_v24 = vunpack.c.l.bf16 %v861_v11  ;;  %v865_v13 = vld [vmem:[%s945_s23 + $0x70] sm:$0xff]  }
  0x2e   : > { %v466_v25 = vmax.f32 %v434_v16, 0.0  ;;  %v467_v26 = vmax.f32 %v435_v17, 0.0  ;;  %v341_v27 = vadd.f32 %v955_v1, %v305_v18  ;;  %v306_v28 = vmul.f32 %v950_v0, %v671_v19 }
  0x2f   : > { %873 = vst [vmem:[%s984_s30 + $0x38] sm:$0xff] %v795_v21   ;;  %v436_v30 = vadd.f32 %v731_v14, %v340_v22  ;;  %v307_v31 = vmul.f32 %v950_v0, %v672_v23  ;;  %v736_v32 = vunpack.c.h.bf16 %v861_v11  ;;  %v675_v33 = vunpack.c.l.bf16 %v847_v20  ;;  %v851_v22 = vld [vmem:[%s939_s20 + $0x78] sm:$0xff]  }
  0x30   : > { %v800_v34 = vpack.c.bf16 %v467_v26, %v466_v25  ;;  %v437_v35 = vadd.f32 %v732_v15, %v341_v27  ;;  %v342_v36 = vadd.f32 %v955_v1, %v306_v28  ;;  %v676_v37 = vunpack.c.h.bf16 %v847_v20  ;;  %v866_v27 = vld [vmem:[%s945_s23 + $0x78] sm:$0xff]  }
  0x31   : > { %v468_v39 = vmax.f32 %v436_v30, 0.0  ;;  %v343_v40 = vadd.f32 %v955_v1, %v307_v31  ;;  %v308_v41 = vmul.f32 %v950_v0, %v675_v33  ;;  %v739_v42 = vunpack.c.l.bf16 %v862_v29 }
  0x32   : > { %874 = vst [vmem:[%s984_s30 + $0x40] sm:$0xff] %v800_v34   ;;  %v469_v44 = vmax.f32 %v437_v35, 0.0  ;;  %v438_v45 = vadd.f32 %v735_v24, %v342_v36  ;;  %v309_v46 = vmul.f32 %v950_v0, %v676_v37  ;;  %v740_v47 = vunpack.c.h.bf16 %v862_v29 }
  0x33   : > { %v439_v48 = vadd.f32 %v736_v32, %v343_v40  ;;  %v344_v49 = vadd.f32 %v955_v1, %v308_v41  ;;  %v679_v50 = vunpack.c.l.bf16 %v848_v38  ;;  %v680_v51 = vunpack.c.h.bf16 %v848_v38 }
  0x34   : > { %v805_v53 = vpack.c.bf16 %v469_v44, %v468_v39  ;;  %v470_v54 = vmax.f32 %v438_v45, 0.0  ;;  %v345_v55 = vadd.f32 %v955_v1, %v309_v46  ;;  %v743_v56 = vunpack.c.l.bf16 %v863_v43 }
  0x35   : > { %v471_v57 = vmax.f32 %v439_v48, 0.0  ;;  %v440_v58 = vadd.f32 %v739_v42, %v344_v49  ;;  %v310_v59 = vmul.f32 %v950_v0, %v679_v50  ;;  %v311_v60 = vmul.f32 %v950_v0, %v680_v51 }
  0x36   : > { %875 = vst [vmem:[%s984_s30 + $0x48] sm:$0xff] %v805_v53   ;;  %v441_v62 = vadd.f32 %v740_v47, %v345_v55  ;;  %v744_v63 = vunpack.c.h.bf16 %v863_v43  ;;  %v683_v2 = vunpack.c.l.bf16 %v849_v52  ;;  %v684_v3 = vunpack.c.h.bf16 %v849_v52 }
  0x37   : > { %v810_v5 = vpack.c.bf16 %v471_v57, %v470_v54  ;;  %v472_v6 = vmax.f32 %v440_v58, 0.0  ;;  %v346_v7 = vadd.f32 %v955_v1, %v310_v59  ;;  %v347_v8 = vadd.f32 %v955_v1, %v311_v60 }
  0x38   : > { %v473_v9 = vmax.f32 %v441_v62, 0.0  ;;  %v312_v10 = vmul.f32 %v950_v0, %v683_v2  ;;  %v313_v11 = vmul.f32 %v950_v0, %v684_v3  ;;  %v747_v12 = vunpack.c.l.bf16 %v864_v61 }
  0x39   : > { %876 = vst [vmem:[%s984_s30 + $0x50] sm:$0xff] %v810_v5   ;;  %v442_v14 = vadd.f32 %v743_v56, %v346_v7  ;;  %v443_v15 = vadd.f32 %v744_v63, %v347_v8  ;;  %v748_v16 = vunpack.c.h.bf16 %v864_v61  ;;  %v687_v17 = vunpack.c.l.bf16 %v850_v4 }
  0x3a   : > { %v815_v18 = vpack.c.bf16 %v473_v9, %v472_v6  ;;  %v348_v19 = vadd.f32 %v955_v1, %v312_v10  ;;  %v349_v20 = vadd.f32 %v955_v1, %v313_v11  ;;  %v688_v21 = vunpack.c.h.bf16 %v850_v4 }
  0x3b   : > { %v474_v23 = vmax.f32 %v442_v14, 0.0  ;;  %v475_v24 = vmax.f32 %v443_v15, 0.0  ;;  %v314_v25 = vmul.f32 %v950_v0, %v687_v17  ;;  %v751_v26 = vunpack.c.l.bf16 %v865_v13 }
  0x3c   : > { %877 = vst [vmem:[%s984_s30 + $0x58] sm:$0xff] %v815_v18   ;;  %v444_v28 = vadd.f32 %v747_v12, %v348_v19  ;;  %v445_v29 = vadd.f32 %v748_v16, %v349_v20  ;;  %v315_v30 = vmul.f32 %v950_v0, %v688_v21  ;;  %v752_v31 = vunpack.c.h.bf16 %v865_v13 }
  0x3d   : > { %v820_v32 = vpack.c.bf16 %v475_v24, %v474_v23  ;;  %v350_v33 = vadd.f32 %v955_v1, %v314_v25  ;;  %v691_v34 = vunpack.c.l.bf16 %v851_v22  ;;  %v692_v35 = vunpack.c.h.bf16 %v851_v22 }
  0x3e   : > { %v476_v36 = vmax.f32 %v444_v28, 0.0  ;;  %v477_v37 = vmax.f32 %v445_v29, 0.0  ;;  %v351_v38 = vadd.f32 %v955_v1, %v315_v30  ;;  %v755_v39 = vunpack.c.l.bf16 %v866_v27 }
  0x3f   : > { %878 = vst [vmem:[%s984_s30 + $0x60] sm:$0xff] %v820_v32   ;;  %v446_v40 = vadd.f32 %v751_v26, %v350_v33  ;;  %v316_v41 = vmul.f32 %v950_v0, %v691_v34  ;;  %v317_v42 = vmul.f32 %v950_v0, %v692_v35  ;;  %v756_v43 = vunpack.c.h.bf16 %v866_v27 }
  0x40   : > { %v825_v44 = vpack.c.bf16 %v477_v37, %v476_v36  ;;  %v447_v45 = vadd.f32 %v752_v31, %v351_v38 }
  0x41   : > { %v478_v46 = vmax.f32 %v446_v40, 0.0  ;;  %v352_v47 = vadd.f32 %v955_v1, %v316_v41  ;;  %v353_v48 = vadd.f32 %v955_v1, %v317_v42 }
  0x42   : > { %879 = vst [vmem:[%s984_s30 + $0x68] sm:$0xff] %v825_v44   ;;  %v479_v49 = vmax.f32 %v447_v45, 0.0 }
  0x43   : > { %v448_v50 = vadd.f32 %v755_v39, %v352_v47  ;;  %v449_v51 = vadd.f32 %v756_v43, %v353_v48 }
  0x44   : > { %v830_v52 = vpack.c.bf16 %v479_v49, %v478_v46 }
  0x45   : > { %v480_v53 = vmax.f32 %v448_v50, 0.0  ;;  %v481_v54 = vmax.f32 %v449_v51, 0.0 }
  0x46   : > { %880 = vst [vmem:[%s984_s30 + $0x70] sm:$0xff] %v830_v52  }
  0x47   : > { %v835_v55 = vpack.c.bf16 %v481_v54, %v480_v53 }
  0x49   : > { %881 = vst [vmem:[%s984_s30 + $0x78] sm:$0xff] %v835_v55  }
  0x4a PF: > { %s14_s15 = sadd.s32 1, %s898_s15  }
  0x4b   : > { %p11_p4 = scmp.ge.s32.totalorder %s14_s15, 4  }
  0x4d   :  { %13 = sbr.rel (!%p11_p4) target bundleno = 1 (0x1), region = 69 }

// kernel: identity_block_x2.4
= control target key start
LH: loop header
LB: loop body
LE: loop exit
PB: predicated region body
PF: predicated region fallthrough
CT: control target
= control target key end

     0   :  { %s5539_s18 = smov 0   ;;  %s7161_s0 = inlined_call_operand.vmem [shape: bf16[2,256,128], index: 0, kind: input, shape index: {}]   ;;  %s7162_s1 = inlined_call_operand.vmem [shape: bf16[128,128], index: 1, kind: input, shape index: {}]   ;;  %s7163_s2 = inlined_call_operand.vmem [shape: f32[1,128], index: 2, kind: input, shape index: {}]   ;;  %s7164_s3 = inlined_call_operand.vmem [shape: bf16[3,384,128], index: 3, kind: input, shape index: {}]   ;;  %s7165_s4 = inlined_call_operand.vmem [shape: bf16[2,256,128], index: 4, kind: output, shape index: {0}]   ;;  %s7166_s5 = inlined_call_operand.vmem [shape: f32[2,2,128], index: 5, kind: output, shape index: {1}]  }
   0x1 LB: > { %s4287_s19 = sadd.s32 4294967295, %s5504_s18   ;;  %p4291_p0 = scmp.ge.s32.totalorder %s5504_s18, 1  ;;  %s5504_s18 = sphi %s5539_s18, %s16_s18  }
   0x2   : > { %p190_p1 = scmp.lt.s32.totalorder %s5504_s18, 3 }
   0x4   : > { %p191_p2 = pnand %p4291_p0, %p190_p1 }
   0x6   : > { %194 = sbr.rel (%p191_p2) target bundleno = 1202 (0x4b2), region = 36 }
   0xb   : > { %v5200_v0 = vld [vmem:[%s7162_s1 + $0x38] sm:$0xff]  ;;  %v5199_v1 = vld [vmem:[%s7162_s1 + $0x30] sm:$0xff]  ;;  %v5198_v2 = vld [vmem:[%s7162_s1 + $0x28] sm:$0xff]  ;;  %p222_p3 = scmp.lt.s32.totalorder %s4287_s19, 1  ;;  %v5506_v41 = vmov 0   ;;  %v586_v45 = vlaneseq  ;;  %vm5507_vm1 = vmmov 0  }
   0xc   : > { %433 = vmatpush.bf16.msra.mxu0 %v5200_v0  ;;  %5467 = vmatpush.bf16.msra.mxu2 %v5200_v0  ;;  %v5197_v3 = vld [vmem:[%s7162_s1 + $0x20] sm:$0xff]  ;;  %v5196_v4 = vld [vmem:[%s7162_s1 + $0x18] sm:$0xff]  ;;  %v5195_v5 = vld [vmem:[%s7162_s1 + $0x10] sm:$0xff]  ;;  %1619 = vst [vmem:[#allocation2] sm:$0xff] %v5506_v41  ;;  %vm1275_vm6 = vsmask.f32 256 }
   0xd   : > { %s7322_s19 = smov (!%p222_p3, %s4287_s19), 1  ;;  %v5194_v6 = vld [vmem:[%s7162_s1 + $0x8] sm:$0xff]  ;;  %v5193_v7 = vld [vmem:[%s7162_s1] sm:$0xff]  ;;  %v5291_v20 = vld [vmem:[%s7164_s3 + $0x138] sm:$0xff]  ;;  %1621 = vst [vmem:[#allocation2 + $0xc] sm:$0xff] %v5506_v41  ;;  %v5665_v50 = vshrl.u32 %v586_v45, 7 }
   0xe   : > { %s5175_s9 = sshll.u32 %s7322_s19, 7  ;;  %v5256_v21 = vld [vmem:[%s7164_s3 + $0x38] sm:$0xff]  ;;  %v5290_v22 = vld [vmem:[%s7164_s3 + $0x130] sm:$0xff]  ;;  %v5289_v26 = vld [vmem:[%s7164_s3 + $0x128] sm:$0xff]  ;;  %1620 = vst [vmem:[#allocation2 + $0x8] sm:$0xf] %v5506_v41 }
   0xf   : > { %s5579_s14 = scalar_lea.vmem %s7161_s0, %s5175_s9  ;;  %v5255_v23 = vld [vmem:[%s7164_s3 + $0x30] sm:$0xff]  ;;  %v5254_v27 = vld [vmem:[%s7164_s3 + $0x28] sm:$0xff]  ;;  %v5288_v28 = vld [vmem:[%s7164_s3 + $0x120] sm:$0xff]  ;;  %1622 = vst [vmem:[#allocation2 + $0x14] sm:$0xf] %v5506_v41  ;;  %v588_v55 = vadd.s32 8, %v5665_v50  ;;  %s6808_s11 = scalar_lea.vmem %s7165_s4, %s5175_s9 }
  0x10   : > { %434 = vmatpush.bf16.msra.mxu0 %v5199_v1  ;;  %5468 = vmatpush.bf16.msra.mxu2 %v5199_v1  ;;  %v5177_v8 = vld [vmem:[%s5579_s14] sm:$0xff]  ;;  %v5178_v10 = vld [vmem:[%s5579_s14 + $0x8] sm:$0xff]  ;;  %v5179_v12 = vld [vmem:[%s5579_s14 + $0x10] sm:$0xff]  ;;  %1623 = vst [vmem:[#allocation2 + $0x198] sm:$0xff] %v5506_v41  ;;  %v623_v56 = vand.u32 15, %v5665_v50  ;;  %vm1404_vm7 = vcmask 1040384  }
  0x11   : > { %v5185_v9 = vld [vmem:[%s5579_s14 + $0x40] sm:$0xff]  ;;  %v5186_v11 = vld [vmem:[%s5579_s14 + $0x48] sm:$0xff]  ;;  %v5187_v13 = vld [vmem:[%s5579_s14 + $0x50] sm:$0xff]  ;;  %1624 = vst [vmem:[#allocation2 + $0x1a0] sm:$0xf] %v5506_v41  ;;  %v630_v60 = vand.u32 15, %v588_v55 }
  0x12   : > { %v5180_v14 = vld [vmem:[%s5579_s14 + $0x18] sm:$0xff]  ;;  %v5181_v16 = vld [vmem:[%s5579_s14 + $0x20] sm:$0xff]  ;;  %v5182_v18 = vld [vmem:[%s5579_s14 + $0x28] sm:$0xff]  ;;  %1625 = vst [vmem:[#allocation2 + $0x1a4] sm:$0xff] %v5506_v41  ;;  %vm5676_vm0 = vcmp.eq.s32.totalorder %v623_v56, 0  ;;  %s4296_s9 = sshll.u32 %s7322_s19, 1 }
  0x13   : > { %v5188_v15 = vld [vmem:[%s5579_s14 + $0x58] sm:$0xff]  ;;  %v5189_v17 = vld [vmem:[%s5579_s14 + $0x60] sm:$0xff]  ;;  %v5190_v19 = vld [vmem:[%s5579_s14 + $0x68] sm:$0xff]  ;;  %1626 = vst [vmem:[#allocation2 + $0x1ac] sm:$0xf] %v5506_v41  ;;  %vm1004_vm4 = vcmp.eq.s32.totalorder %v630_v60, 15  ;;  %s235_s15 = scalar_lea.vmem %s7166_s5, %s4296_s9 }
  0x14   : > { %435 = vmatpush.bf16.msra.mxu0 %v5198_v2  ;;  %5469 = vmatpush.bf16.msra.mxu2 %v5198_v2  ;;  %v5183_v24 = vld [vmem:[%s5579_s14 + $0x30] sm:$0xff]  ;;  %v5253_v29 = vld [vmem:[%s7164_s3 + $0x20] sm:$0xff]  ;;  %v5283_v30 = vld [vmem:[%s7164_s3 + $0xf8] sm:$0xff] }
  0x15   : > { %v5191_v25 = vld [vmem:[%s5579_s14 + $0x70] sm:$0xff]  ;;  %v5287_v31 = vld [vmem:[%s7164_s3 + $0x118] sm:$0xff]  ;;  %2482 = vmatpush.bf16.msra.mxu1 %v5283_v30  ;;  %5475 = vmatpush.bf16.msra.mxu3 %v5283_v30  ;;  %v5281_v38 = vld [vmem:[%s7164_s3 + $0xe8] sm:$0xff] }
  0x16   : > { %v5252_v32 = vld [vmem:[%s7164_s3 + $0x18] sm:$0xff]  ;;  %v5282_v33 = vld [vmem:[%s7164_s3 + $0xf0] sm:$0xff]  ;;  %v5285_v39 = vld [vmem:[%s7164_s3 + $0x108] sm:$0xff] }
  0x17   : > { %v5286_v34 = vld [vmem:[%s7164_s3 + $0x110] sm:$0xff]  ;;  %v5184_v36 = vld [vmem:[%s5579_s14 + $0x38] sm:$0xff]  ;;  %v5250_v40 = vld [vmem:[%s7164_s3 + $0x8] sm:$0xff] }
  0x18   : > { %436 = vmatpush.bf16.msra.mxu0 %v5197_v3  ;;  %5470 = vmatpush.bf16.msra.mxu2 %v5197_v3  ;;  %v5251_v35 = vld [vmem:[%s7164_s3 + $0x10] sm:$0xff]  ;;  %v5192_v37 = vld [vmem:[%s5579_s14 + $0x78] sm:$0xff]  ;;  %v5280_v42 = vld [vmem:[%s7164_s3 + $0xe0] sm:$0xff]  ;;  %v589_v3 = vadd.s32 16, %v5665_v50 }
  0x19   : > { %2483 = vmatpush.bf16.msra.mxu1 %v5282_v33  ;;  %5476 = vmatpush.bf16.msra.mxu3 %v5282_v33  ;;  %v5284_v43 = vld [vmem:[%s7164_s3 + $0x100] sm:$0xff]  ;;  %v5279_v46 = vld [vmem:[%s7164_s3 + $0xd8] sm:$0xff]  ;;  %v5202_v48 = vld [vmem:[#allocation2 + $0x8] sm:$0xf0]  ;;  %v591_v33 = vadd.s32 32, %v5665_v50 }
  0x1a   : > { %v5249_v44 = vld [vmem:[%s7164_s3] sm:$0xff]  ;;  %v5278_v51 = vld [vmem:[%s7164_s3 + $0xd0] sm:$0xff]  ;;  %v5277_v57 = vld [vmem:[%s7164_s3 + $0xc8] sm:$0xff] }
  0x1b   : > { %v4731_v47 = vld [vmem:[#allocation2] sm:$0xf]  ;;  %vm5683_vm2 = vmpackc.low %vm5507_vm1, %vm5507_vm1  ;;  %v651_v55 = vand.u32 15, %v591_v33 }
  0x1c   : > { %437 = vmatpush.bf16.msra.mxu0 %v5196_v4  ;;  %5471 = vmatpush.bf16.msra.mxu2 %v5196_v4  ;;  %v5663_v49 = vld [vmem:[%s7163_s2] ss:$0 sm:$0xff]  ;;  %v4732_v52 = vor.u32 %v5202_v48, %v4731_v47  ;;  %vm1131_vm3 = vmpackc.low %vm5676_vm0, %vm5676_vm0 }
  0x1d   : > { %2484 = vmatpush.bf16.msra.mxu1 %v5281_v38  ;;  %5477 = vmatpush.bf16.msra.mxu3 %v5281_v38  ;;  %v5276_v63 = vld [vmem:[%s7164_s3 + $0xc0] sm:$0xff]  ;;  %vm1036_vm5 = vmpackc.low %vm1004_vm4, %vm1004_vm4  ;;  %vm5766_vm1 = vcmp.eq.s32.totalorder %v651_v55, 0 }
  0x1e   : > { %vm5708_vm8 = vmand %vm1404_vm7, %vm1275_vm6 }
  0x20   : > { %438 = vmatpush.bf16.msra.mxu0 %v5195_v5  ;;  %5472 = vmatpush.bf16.msra.mxu2 %v5195_v5 }
  0x21   : > { %2485 = vmatpush.bf16.msra.mxu1 %v5280_v42  ;;  %5478 = vmatpush.bf16.msra.mxu3 %v5280_v42 }
  0x24   : > { %439 = vmatpush.bf16.msra.mxu0 %v5194_v6  ;;  %5473 = vmatpush.bf16.msra.mxu2 %v5194_v6 }
  0x25   : > { %2486 = vmatpush.bf16.msra.mxu1 %v5279_v46  ;;  %5479 = vmatpush.bf16.msra.mxu3 %v5279_v46 }
  0x28   : > { %440 = vmatpush.bf16.msra.mxu0 %v5193_v7  ;;  %5474 = vmatpush.bf16.msra.mxu2 %v5193_v7 }
  0x29   : > { %2487 = vmatpush.bf16.msra.mxu1 %v5278_v51  ;;  %5480 = vmatpush.bf16.msra.mxu3 %v5278_v51 }
  0x2b   : > { %441 = vmatmul.bf16.vlgmr.msra.gmra.mxu0 %v5177_v8  ;;  %481 = vmatmul.bf16.vlgmr.msra.gmra.mxu2 %v5185_v9  ;;  %v637_v8 = vand.u32 15, %v589_v3  ;;  %v590_v9 = vadd.s32 24, %v5665_v50 }
  0x2c   : > { %2571 = vmatpush.bf16.msrb.mxu2 %v5291_v20  ;;  %2909 = vmatpush.bf16.msrb.mxu0 %v5256_v21 }
  0x2d   : > { %2488 = vmatpush.bf16.msra.mxu1 %v5277_v57  ;;  %5481 = vmatpush.bf16.msra.mxu3 %v5277_v57  ;;  %vm5718_vm10 = vcmp.eq.s32.totalorder %v637_v8, 0 }
  0x2e   : > { %vm1133_vm15 = vmpackc.low %vm5718_vm10, %vm5718_vm10 }
  0x30   : > { %2572 = vmatpush.bf16.msrb.mxu2 %v5290_v22  ;;  %2910 = vmatpush.bf16.msrb.mxu0 %v5255_v23  ;;  %v604_v22 = vadd.s32 136, %v5665_v50 }
  0x31   : > { %2489 = vmatpush.bf16.msra.mxu1 %v5276_v63  ;;  %5482 = vmatpush.bf16.msra.mxu3 %v5276_v63 }
  0x32   : > { %v742_v30 = vand.u32 15, %v604_v22 }
  0x34   : > { %2573 = vmatpush.bf16.msrb.mxu2 %v5289_v26  ;;  %2911 = vmatpush.bf16.msrb.mxu0 %v5254_v27  ;;  %vm5725_vm12 = vcmp.eq.s32.totalorder %v742_v30, 15 }
  0x35   : > { %vm1052_vm14 = vmpackc.low %vm5725_vm12, %vm5725_vm12 }
  0x38   : > { %2574 = vmatpush.bf16.msrb.mxu2 %v5288_v28  ;;  %2912 = vmatpush.bf16.msrb.mxu0 %v5253_v29  ;;  %v644_v28 = vand.u32 15, %v590_v9 }
  0x3a   : > { %vm5729_vm13 = vcmp.eq.s32.totalorder %v644_v28, 15 }
  0x3b   : > { %446 = vmatmul.bf16.gmra.mxu0 %v5178_v10  ;;  %486 = vmatmul.bf16.gmra.mxu2 %v5186_v11  ;;  %vm1038_vm0 = vmpackc.low %vm5729_vm13, %vm5729_vm13 }
  0x3c   : > { %2575 = vmatpush.bf16.msrb.mxu2 %v5287_v31  ;;  %2913 = vmatpush.bf16.msrb.mxu0 %v5252_v32 }
  0x40   : > { %2576 = vmatpush.bf16.msrb.mxu2 %v5286_v34  ;;  %2914 = vmatpush.bf16.msrb.mxu0 %v5251_v35  ;;  %v5704_v34 = vadd.s32 40, %v5665_v50 }
  0x42   : > { %v658_v56 = vand.u32 15, %v5704_v34 }
  0x44   : > { %2577 = vmatpush.bf16.msrb.mxu2 %v5285_v39  ;;  %2915 = vmatpush.bf16.msrb.mxu0 %v5250_v40  ;;  %vm5793_vm4 = vcmp.eq.s32.totalorder %v658_v56, 15 }
  0x48   : > { %2578 = vmatpush.bf16.msrb.mxu2 %v5284_v43  ;;  %2916 = vmatpush.bf16.msrb.mxu0 %v5249_v44 }
  0x4b   : > { %451 = vmatmul.bf16.gmra.mxu0 %v5179_v12  ;;  %491 = vmatmul.bf16.gmra.mxu2 %v5187_v13 }
  0x5b   : > { %456 = vmatmul.bf16.gmra.mxu0 %v5180_v14  ;;  %496 = vmatmul.bf16.gmra.mxu2 %v5188_v15 }
  0x6b   : > { %461 = vmatmul.bf16.gmra.mxu0 %v5181_v16  ;;  %501 = vmatmul.bf16.gmra.mxu2 %v5189_v17 }
  0x7b   : > { %466 = vmatmul.bf16.gmra.mxu0 %v5182_v18  ;;  %506 = vmatmul.bf16.gmra.mxu2 %v5190_v19  ;;  %v603_v19 = vadd.s32 128, %v5665_v50 }
  0x7d   : > { %v735_v26 = vand.u32 15, %v603_v19 }
  0x7f   : > { %vm5712_vm9 = vcmp.eq.s32.totalorder %v735_v26, 0 }
  0x80   : > { %vm1147_vm11 = vmpackc.low %vm5712_vm9, %vm5712_vm9 }
  0x8b   : > { %471 = vmatmul.bf16.gmra.mxu0 %v5183_v24  ;;  %511 = vmatmul.bf16.gmra.mxu2 %v5191_v25 }
  0x9b   : > { %476 = vmatmul.bf16.gmra.mxu0 %v5184_v36  ;;  %516 = vmatmul.bf16.gmra.mxu2 %v5192_v37 }
  0xa8   : > { %v442_v53 = vpop.f32.mrf.mxu0 }
  0xa9   : > { %v443_v54 = vadd.f32 %v5663_v49, %v442_v53 }
  0xab   : > { %v522_v58 = vmax.f32 %v443_v54, 0.0  ;;  %2917 = vmatmul.bf16.vlgmr.msrb.gmra.mxu0 %v4732_v52 }
  0xad   : > { %v554_v59 = vpack.c.bf16 %v522_v58, %v522_v58 }
  0xae   : > { %v482_v62 = vpop.f32.mrf.mxu2 }
  0xaf   : > { %1756 = vst [vmem:[#allocation2 + $0x1c] sm:$0xf] %v554_v59  ;;  %v1067_v5 = vsel %vm5683_vm2, 0, %v554_v59  ;;  %v1163_v6 = vsel %vm1131_vm3, 0, %v554_v59  ;;  %v483_v18 = vadd.f32 %v5663_v49, %v482_v62  ;;  %vm1487_vm3 = vsmask.f32 7424 }
  0xb0   : > { %v444_v1 = vpop.f32.mrf.mxu0  ;;  %v1227_v11 = vunpack.c.l.b16 %v1067_v5  ;;  %v1439_v12 = vunpack.c.l.b16 %v1163_v6 }
  0xb1   : > { %v445_v2 = vadd.f32 %v5663_v49, %v444_v1  ;;  %v538_v25 = vmax.f32 %v483_v18, 0.0  ;;  %v5771_v18 = vadd.s32 48, %v5665_v50 }
  0xb3   : > { %v523_v4 = vmax.f32 %v445_v2, 0.0  ;;  %v570_v38 = vpack.c.bf16 %v538_v25, %v538_v25 }
  0xb5   : > { %v555_v7 = vpack.c.bf16 %v523_v4, %v523_v4  ;;  %v1083_v51 = vsel %vm5683_vm2, 0, %v570_v38  ;;  %1772 = vst [vmem:[#allocation2 + $0xdc] sm:$0xf] %v570_v38  ;;  %v1179_v58 = vsel %vm1147_vm11, 0, %v570_v38  ;;  %vm1040_vm11 = vmpackc.low %vm5793_vm4, %vm5793_vm4 }
  0xb6   : > { %v484_v10 = vpop.f32.mrf.mxu2  ;;  %v5204_v37 = vld [vmem:[#allocation2 + $0x1c] sm:$0xf]  ;;  %v1243_v59 = vunpack.c.l.b16 %v1083_v51  ;;  %v1455_v62 = vunpack.c.l.b16 %v1179_v58 }
  0xb7   : > { %v1068_v13 = vsel %vm1036_vm5, 0, %v555_v7  ;;  %v1164_v14 = vsel %vm5683_vm2, 0, %v555_v7  ;;  %1757 = vst [vmem:[#allocation2 + $0x28] sm:$0xf] %v555_v7  ;;  %v485_v21 = vadd.f32 %v5663_v49, %v484_v10 }
  0xb8   : > { %v1228_v15 = vunpack.c.l.b16 %v1068_v13  ;;  %v1440_v16 = vunpack.c.l.b16 %v1164_v14  ;;  %v447_v17 = vpop.f32.mrf.mxu0 }
  0xb9   : > { %v448_v20 = vadd.f32 %v5663_v49, %v447_v17  ;;  %v539_v29 = vmax.f32 %v485_v21, 0.0 }
  0xba   : > { %v1259_v23 = vpack.c.b16 %v1228_v15, %v1227_v11  ;;  %v1471_v24 = vpack.c.b16 %v1440_v16, %v1439_v12 }
  0xbb   : > { %v524_v27 = vmax.f32 %v448_v20, 0.0  ;;  %v571_v40 = vpack.c.bf16 %v539_v29, %v539_v29 }
  0xbc   : > { %v1277_v31 = vshrl.u32 %v1259_v23, 16  ;;  %v1491_v32 = vshll.u32 %v1471_v24, 16  ;;  %v1280_v42 = vshll.u32 %v1259_v23, 16  ;;  %v1489_v6 = vshrl.u32 %v1471_v24, 16 }
  0xbd   : > { %v556_v36 = vpack.c.bf16 %v524_v27, %v524_v27  ;;  %v1084_v60 = vsel %vm1052_vm14, 0, %v571_v40  ;;  %1773 = vst [vmem:[#allocation2 + $0xe8] sm:$0xf] %v571_v40  ;;  %v1180_v63 = vsel %vm5683_vm2, 0, %v571_v40 }
  0xbe   : > { %v5716_v41 = vrot.slane %v1277_v31, 7  ;;  %v4445_v44 = vld [vmem:[#allocation2 + $0x24] sm:$0xf0]  ;;  %v487_v46 = vpop.f32.mrf.mxu2  ;;  %v1493_v53 = vrot.slane %v1491_v32, 1  ;;  %v1244_v1 = vunpack.c.l.b16 %v1084_v60  ;;  %v1456_v5 = vunpack.c.l.b16 %v1180_v63 }
  0xbf   : > { %1758 = vst [vmem:[#allocation2 + $0x34] sm:$0xf] %v556_v36  ;;  %v5733_v48 = vor.u32 %v5204_v37, %v4445_v44  ;;  %v1069_v7 = vsel %vm5683_vm2, 0, %v556_v36  ;;  %v1165_v8 = vsel %vm1133_vm15, 0, %v556_v36  ;;  %v488_v30 = vadd.f32 %v5663_v49, %v487_v46 }
  0xc0   : > { %v1282_v52 = vor.u32 %v1280_v42, %v5716_v41  ;;  %v449_v54 = vpop.f32.mrf.mxu0  ;;  %v1267_v10 = vpack.c.b16 %v1244_v1, %v1243_v59  ;;  %v1479_v14 = vpack.c.b16 %v1456_v5, %v1455_v62  ;;  %v1494_v15 = vor.u32 %v1493_v53, %v1489_v6 }
  0xc1   : > { %v450_v57 = vadd.f32 %v5663_v49, %v449_v54  ;;  %2579 = vmatmul.bf16.vlgmr.msrb.gmra.mxu2 %v5733_v48  ;;  %v1229_v20 = vunpack.c.l.b16 %v1069_v7  ;;  %v1441_v21 = vunpack.c.l.b16 %v1165_v8  ;;  %v605_v31 = vadd.s32 144, %v5665_v50 }
  0xc2   : > { %v1406_v61 = vsel %vm5708_vm8, 0, %v1282_v52  ;;  %v1340_v16 = vshrl.u32 %v1267_v10, 16  ;;  %v1343_v17 = vshll.u32 %v1267_v10, 16  ;;  %v1552_v28 = vshll.u32 %v1479_v14, 16  ;;  %vm1135_vm8 = vmpackc.low %vm5766_vm1, %vm5766_vm1 }
  0xc3   : > { %v1628_v2 = vunpack.c.l.b16 %v1406_v61  ;;  %v1629_v3 = vunpack.c.h.b16 %v1406_v61  ;;  %v525_v4 = vmax.f32 %v450_v57, 0.0  ;;  %v5786_v32 = vadd.s32 56, %v5665_v50 }
  0xc4   : > { %v5780_v27 = vrot.slane %v1340_v16, 7  ;;  %v540_v39 = vmax.f32 %v488_v30, 0.0  ;;  %v749_v40 = vand.u32 15, %v605_v31  ;;  %v665_v42 = vand.u32 15, %v5771_v18 }
  0xc5   : > { %v1660_v11 = vpack.c.b16 %v1628_v2, %v1628_v2  ;;  %v1661_v12 = vpack.c.b16 %v1629_v3, %v1629_v3  ;;  %v557_v13 = vpack.c.bf16 %v525_v4, %v525_v4  ;;  %v5800_v45 = vrot.slane %v1552_v28, 1 }
  0xc6   : > { %v489_v19 = vpop.f32.mrf.mxu2  ;;  %v5791_v35 = vor.u32 %v1343_v17, %v5780_v27  ;;  %v1556_v46 = vshrl.u32 %v1479_v14, 16  ;;  %v672_v53 = vand.u32 15, %v5786_v32  ;;  %v572_v56 = vpack.c.bf16 %v540_v39, %v540_v39  ;;  %v5207_v10 = vld [vmem:[#allocation2 + $0x34] sm:$0xf] }
  0xc7   : > { %1724 = vst [vmem:[#allocation2 + $0x18] sm:$0xf] %v1660_v11  ;;  %v1070_v22 = vsel %vm1038_vm0, 0, %v557_v13  ;;  %v1166_v23 = vsel %vm5683_vm2, 0, %v557_v13  ;;  %v490_v37 = vadd.f32 %v5663_v49, %v489_v19  ;;  %vm5807_vm5 = vcmp.eq.s32.totalorder %v749_v40, 0 }
  0xc8   : > { %1725 = vst [vmem:[#allocation2 + $0x24] sm:$0xf] %v1661_v12  ;;  %v1230_v24 = vunpack.c.l.b16 %v1070_v22  ;;  %v1442_v25 = vunpack.c.l.b16 %v1166_v23  ;;  %v452_v26 = vpop.f32.mrf.mxu0  ;;  %v5820_v1 = vor.u32 %v1556_v46, %v5800_v45  ;;  %v606_v4 = vadd.s32 152, %v5665_v50  ;;  %vm1149_vm9 = vmpackc.low %vm5807_vm5, %vm5807_vm5 }
  0xc9   : > { %1759 = vst [vmem:[#allocation2 + $0x40] sm:$0xf] %v557_v13  ;;  %v453_v29 = vadd.f32 %v5663_v49, %v452_v26  ;;  %v541_v52 = vmax.f32 %v490_v37, 0.0  ;;  %vm5838_vm10 = vcmp.eq.s32.totalorder %v665_v42, 0  ;;  %v1181_v9 = vsel %vm1149_vm9, 0, %v572_v56 }
  0xca   : > { %v1260_v33 = vpack.c.b16 %v1230_v24, %v1229_v20  ;;  %v5788_v34 = vpack.c.b16 %v1442_v25, %v1441_v21  ;;  %1774 = vst [vmem:[#allocation2 + $0xf4] sm:$0xf] %v572_v56  ;;  %v756_v21 = vand.u32 15, %v606_v4  ;;  %v1457_v24 = vunpack.c.l.b16 %v1181_v9  ;;  %vm1137_vm15 = vmpackc.low %vm5838_vm10, %vm5838_vm10 }
  0xcb   : > { %v526_v38 = vmax.f32 %v453_v29, 0.0  ;;  %v573_v61 = vpack.c.bf16 %v541_v52, %v541_v52  ;;  %v5870_v57 = vadd.s32 160, %v5665_v50  ;;  %vm5874_vm14 = vcmp.eq.s32.totalorder %v672_v53, 15 }
  0xcc   : > { %v1284_v43 = vshrl.u32 %v1260_v33, 16  ;;  %v1496_v44 = vshll.u32 %v5788_v34, 16  ;;  %v1287_v47 = vshll.u32 %v1260_v33, 16  ;;  %v1500_v26 = vshrl.u32 %v5788_v34, 16  ;;  %vm1042_vm0 = vmpackc.low %vm5874_vm14, %vm5874_vm14 }
  0xcd   : > { %v558_v51 = vpack.c.bf16 %v526_v38, %v526_v38  ;;  %1775 = vst [vmem:[#allocation2 + $0x100] sm:$0xf] %v573_v61  ;;  %v1182_v25 = vsel %vm5683_vm2, 0, %v573_v61  ;;  %vm1022_vm12 = vcmp.eq.s32.totalorder %v756_v21, 15  ;;  %v5854_v38 = vadd.s32 64, %v5665_v50 }
  0xce   : > { %v5803_v54 = vrot.slane %v1284_v43, 7  ;;  %v5805_v55 = vrot.slane %v1496_v44, 1  ;;  %v5811_v58 = vpop.f32.mrf.mxu2  ;;  %v4443_v59 = vld [vmem:[#allocation2 + $0x18] sm:$0xf]  ;;  %v1458_v29 = vunpack.c.l.b16 %v1182_v25  ;;  %vm1054_vm13 = vmpackc.low %vm1022_vm12, %vm1022_vm12 }
  0xcf   : > { %1760 = vst [vmem:[#allocation2 + $0x4c] sm:$0xf] %v558_v51  ;;  %v5205_v60 = vld [vmem:[#allocation2 + $0x20] sm:$0xf0]  ;;  %v1071_v7 = vsel %vm5683_vm2, 0, %v558_v51  ;;  %v1167_v12 = vsel %vm1135_vm8, 0, %v558_v51  ;;  %v5867_v36 = vadd.f32 %v5663_v49, %v5811_v58 }
  0xd0   : > { %v1289_v62 = vor.u32 %v1287_v47, %v5803_v54  ;;  %v1499_v63 = vsel %vm1487_vm3, %v1494_v15, %v5805_v55  ;;  %v454_v2 = vpop.f32.mrf.mxu0  ;;  %v4457_v3 = vld [vmem:[#allocation2 + $0x3c] sm:$0xf0]  ;;  %v4444_v13 = vor.u32 %v5205_v60, %v4443_v59  ;;  %v1231_v31 = vunpack.c.l.b16 %v1071_v7 }
  0xd1   : > { %v1789_v5 = vunpack.c.l.b16 %v1499_v63  ;;  %v1790_v6 = vunpack.c.h.b16 %v1499_v63  ;;  %v455_v8 = vadd.f32 %v5663_v49, %v454_v2  ;;  %v5836_v14 = vor.u32 %v5207_v10, %v4457_v3 }
  0xd2   : > { %v1290_v11 = vsel %vm1275_vm6, %v5716_v41, %v1289_v62  ;;  %2490 = vmatmul.bf16.vlgmr.msra.gmra.mxu1 %v4444_v13  ;;  %v1085_v41 = vsel %vm5683_vm2, 0, %v572_v56  ;;  %2922 = vmatmul.bf16.gmra.mxu0 %v4444_v13  ;;  %v1443_v33 = vunpack.c.l.b16 %v1167_v12  ;;  %v1086_v42 = vsel %vm1054_vm13, 0, %v573_v61 }
  0xd3   : > { %v1630_v15 = vunpack.c.l.b16 %v1290_v11  ;;  %v1631_v16 = vunpack.c.h.b16 %v1290_v11  ;;  %v1821_v17 = vpack.c.b16 %v1789_v5, %v1789_v5  ;;  %v1822_v18 = vpack.c.b16 %v1790_v6, %v1790_v6  ;;  %2584 = vmatmul.bf16.gmra.mxu2 %v5836_v14 }
  0xd4   : > { %v527_v20 = vmax.f32 %v455_v8, 0.0  ;;  %v1245_v37 = vunpack.c.l.b16 %v1085_v41  ;;  %v1480_v43 = vpack.c.b16 %v1458_v29, %v1457_v24  ;;  %v1246_v51 = vunpack.c.l.b16 %v1086_v42 }
  0xd5   : > { %v1662_v22 = vpack.c.b16 %v1630_v15, %v1630_v15  ;;  %v1663_v23 = vpack.c.b16 %v1631_v16, %v1631_v16  ;;  %1885 = vst [vmem:[#allocation2 + $0x20] sm:$0xf] %v1821_v17  ;;  %v1502_v52 = vor.u32 %v1500_v26, %v5805_v55  ;;  %v542_v3 = vmax.f32 %v5867_v36, 0.0 }
  0xd6   : > { %1886 = vst [vmem:[#allocation2 + $0x2c] sm:$0xf] %v1822_v18  ;;  %v559_v28 = vpack.c.bf16 %v527_v20, %v527_v20  ;;  %v5851_v30 = vpop.f32.mrf.mxu2  ;;  %v1560_v56 = vshll.u32 %v1480_v43, 16  ;;  %v1268_v62 = vpack.c.b16 %v1246_v51, %v1245_v37  ;;  %v1564_v55 = vshrl.u32 %v1480_v43, 16 }
  0xd7   : > { %1726 = vst [vmem:[#allocation2 + $0x30] sm:$0xf] %v1662_v22  ;;  %v763_v58 = vand.u32 15, %v5870_v57  ;;  %v679_v7 = vand.u32 15, %v5854_v38 }
  0xd8   : > { %1727 = vst [vmem:[#allocation2 + $0x3c] sm:$0xf] %v1663_v23  ;;  %v1072_v34 = vsel %vm1040_vm11, 0, %v559_v28  ;;  %v1168_v39 = vsel %vm5683_vm2, 0, %v559_v28  ;;  %v457_v40 = vpop.f32.mrf.mxu0  ;;  %v1562_v2 = vrot.slane %v1560_v56, 1  ;;  %v1348_v32 = vshrl.u32 %v1268_v62, 16 }
  0xd9   : > { %v1232_v44 = vunpack.c.l.b16 %v1072_v34  ;;  %v1444_v46 = vunpack.c.l.b16 %v1168_v39  ;;  %1761 = vst [vmem:[#allocation2 + $0x58] sm:$0xf] %v559_v28  ;;  %v458_v47 = vadd.f32 %v5663_v49, %v457_v40  ;;  %v1351_v53 = vshll.u32 %v1268_v62, 16 }
  0xda   : > { %v1563_v10 = vsel %vm1487_vm3, %v5820_v1, %v1562_v2  ;;  %v5890_v17 = vrot.slane %v1348_v32, 7  ;;  %v5892_v18 = vor.u32 %v1564_v55, %v1562_v2  ;;  %vm1119_vm1 = vcmp.eq.s32.totalorder %v763_v58, 0 }
  0xdb   : > { %v1261_v59 = vpack.c.b16 %v1232_v44, %v1231_v31  ;;  %v1473_v60 = vpack.c.b16 %v1444_v46, %v1443_v33  ;;  %v528_v61 = vmax.f32 %v458_v47, 0.0  ;;  %v1805_v15 = vunpack.c.l.b16 %v1563_v10  ;;  %v5210_v46 = vld [vmem:[#allocation2 + $0x4c] sm:$0xf]  ;;  %vm1151_vm4 = vmpackc.low %vm1119_vm1, %vm1119_vm1 }
  0xdc   : > { %v1806_v20 = vunpack.c.h.b16 %v1563_v10  ;;  %v1353_v28 = vor.u32 %v1351_v53, %v5890_v17  ;;  %vm5931_vm5 = vcmp.eq.s32.totalorder %v679_v7, 0 }
  0xdd   : > { %v1292_v4 = vshrl.u32 %v1261_v59, 16  ;;  %v1295_v5 = vshll.u32 %v1261_v59, 16  ;;  %v1504_v6 = vshll.u32 %v1473_v60, 16  ;;  %v560_v8 = vpack.c.bf16 %v528_v61, %v528_v61  ;;  %vm1139_vm8 = vmpackc.low %vm5931_vm5, %vm5931_vm5 }
  0xde   : > { %v1508_v13 = vshrl.u32 %v1473_v60, 16  ;;  %v5894_v9 = vpop.f32.mrf.mxu2  ;;  %v4455_v29 = vld [vmem:[#allocation2 + $0x30] sm:$0xf]  ;;  %v1837_v34 = vpack.c.b16 %v1805_v15, %v1805_v15  ;;  %v1838_v39 = vpack.c.b16 %v1806_v20, %v1806_v20  ;;  %v1354_v47 = vsel %vm1275_vm6, %v5780_v27, %v1353_v28 }
  0xdf   : > { %v5886_v11 = vrot.slane %v1292_v4, 7  ;;  %v1506_v12 = vrot.slane %v1504_v6, 1  ;;  %v1073_v16 = vsel %vm5683_vm2, 0, %v560_v8  ;;  %1762 = vst [vmem:[#allocation2 + $0x64] sm:$0xf] %v560_v8  ;;  %v1169_v23 = vsel %vm1137_vm15, 0, %v560_v8 }
  0xe0   : > { %v459_v41 = vpop.f32.mrf.mxu0  ;;  %v1233_v26 = vunpack.c.l.b16 %v1073_v16  ;;  %v5208_v31 = vld [vmem:[#allocation2 + $0x38] sm:$0xf0]  ;;  %v4469_v33 = vld [vmem:[#allocation2 + $0x54] sm:$0xf0]  ;;  %1901 = vst [vmem:[#allocation2 + $0xe0] sm:$0xf] %v1837_v34  ;;  %v1647_v59 = vunpack.c.h.b16 %v1354_v47  ;;  %v1445_v60 = vunpack.c.l.b16 %v1169_v23  ;;  %v574_v27 = vpack.c.bf16 %v542_v3, %v542_v3 }
  0xe1   : > { %v1297_v21 = vor.u32 %v1295_v5, %v5886_v11  ;;  %v1507_v1 = vsel %vm1487_vm3, %v1502_v52, %v1506_v12  ;;  %v5898_v22 = vor.u32 %v1508_v13, %v1506_v12  ;;  %v460_v40 = vadd.f32 %v5663_v49, %v459_v41  ;;  %1902 = vst [vmem:[#allocation2 + $0xec] sm:$0xf] %v1838_v39 }
  0xe2   : > { %v1791_v24 = vunpack.c.l.b16 %v1507_v1  ;;  %v1792_v25 = vunpack.c.h.b16 %v1507_v1  ;;  %v4456_v52 = vor.u32 %v5208_v31, %v4455_v29  ;;  %v5911_v56 = vor.u32 %v5210_v46, %v4469_v33  ;;  %1776 = vst [vmem:[#allocation2 + $0x10c] sm:$0xf] %v574_v27 }
  0xe3   : > { %v1298_v37 = vsel %vm1275_vm6, %v5803_v54, %v1297_v21  ;;  %v529_v51 = vmax.f32 %v460_v40, 0.0  ;;  %v1646_v54 = vunpack.c.l.b16 %v1354_v47  ;;  %v1679_v2 = vpack.c.b16 %v1647_v59, %v1647_v59 }
  0xe4   : > { %v1632_v42 = vunpack.c.l.b16 %v1298_v37  ;;  %v1633_v43 = vunpack.c.h.b16 %v1298_v37  ;;  %v1823_v19 = vpack.c.b16 %v1791_v24, %v1791_v24  ;;  %v1824_v44 = vpack.c.b16 %v1792_v25, %v1792_v25  ;;  %2495 = vmatmul.bf16.gmra.mxu1 %v4456_v52  ;;  %2589 = vmatmul.bf16.gmra.mxu2 %v5911_v56 }
  0xe5   : > { %v561_v61 = vpack.c.bf16 %v529_v51, %v529_v51  ;;  %v1678_v62 = vpack.c.b16 %v1646_v54, %v1646_v54  ;;  %2927 = vmatmul.bf16.gmra.mxu0 %v4456_v52  ;;  %v495_v4 = vadd.f32 %v5663_v49, %v5851_v30  ;;  %v608_v5 = vadd.s32 168, %v5665_v50  ;;  %1743 = vst [vmem:[#allocation2 + $0xfc] sm:$0xf] %v1679_v2 }
  0xe6   : > { %v1664_v36 = vpack.c.b16 %v1632_v42, %v1632_v42  ;;  %v1665_v57 = vpack.c.b16 %v1633_v43, %v1633_v43  ;;  %1887 = vst [vmem:[#allocation2 + $0x38] sm:$0xf] %v1823_v19  ;;  %v1087_v58 = vsel %vm5683_vm2, 0, %v574_v27  ;;  %v1183_v8 = vsel %vm1151_vm4, 0, %v574_v27  ;;  %v5935_v63 = vpop.f32.mrf.mxu2 }
  0xe7   : > { %1888 = vst [vmem:[#allocation2 + $0x44] sm:$0xf] %v1824_v44  ;;  %v1074_v6 = vsel %vm1042_vm0, 0, %v561_v61  ;;  %v1170_v3 = vsel %vm5683_vm2, 0, %v561_v61  ;;  %v1247_v30 = vunpack.c.l.b16 %v1087_v58  ;;  %v543_v13 = vmax.f32 %v495_v4, 0.0 }
  0xe8   : > { %1728 = vst [vmem:[#allocation2 + $0x48] sm:$0xf] %v1664_v36  ;;  %v462_v55 = vpop.f32.mrf.mxu0  ;;  %v1234_v32 = vunpack.c.l.b16 %v1074_v6  ;;  %v1446_v53 = vunpack.c.l.b16 %v1170_v3  ;;  %v770_v15 = vand.u32 15, %v608_v5  ;;  %v596_v16 = vadd.s32 72, %v5665_v50 }
  0xe9   : > { %1729 = vst [vmem:[#allocation2 + $0x54] sm:$0xf] %v1665_v57  ;;  %v463_v12 = vadd.f32 %v5663_v49, %v462_v55  ;;  %v1459_v21 = vunpack.c.l.b16 %v1183_v8  ;;  %v5941_v38 = vadd.f32 %v5663_v49, %v5894_v9  ;;  %v575_v1 = vpack.c.bf16 %v543_v13, %v543_v13 }
  0xea   : > { %1742 = vst [vmem:[#allocation2 + $0xf0] sm:$0xf] %v1678_v62  ;;  %v1262_v20 = vpack.c.b16 %v1234_v32, %v1233_v26  ;;  %v1474_v41 = vpack.c.b16 %v1446_v53, %v1445_v60  ;;  %vm1024_vm9 = vcmp.eq.s32.totalorder %v770_v15, 15  ;;  %v686_v23 = vand.u32 15, %v596_v16  ;;  %v5213_v15 = vld [vmem:[#allocation2 + $0x64] sm:$0xf] }
  0xeb   : > { %1763 = vst [vmem:[#allocation2 + $0x70] sm:$0xf] %v561_v61  ;;  %v530_v7 = vmax.f32 %v463_v12, 0.0  ;;  %vm1056_vm10 = vmpackc.low %vm1024_vm9, %vm1024_vm9  ;;  %v609_v26 = vadd.s32 176, %v5665_v50  ;;  %v1184_v33 = vsel %vm5683_vm2, 0, %v575_v1  ;;  %v544_v4 = vmax.f32 %v5941_v38, 0.0 }
  0xec   : > { %v1300_v24 = vshrl.u32 %v1262_v20, 16  ;;  %v1303_v25 = vshll.u32 %v1262_v20, 16  ;;  %v1512_v28 = vshll.u32 %v1474_v41, 16  ;;  %v1516_v29 = vshrl.u32 %v1474_v41, 16  ;;  %1777 = vst [vmem:[#allocation2 + $0x118] sm:$0xf] %v575_v1 }
  0xed   : > { %v562_v31 = vpack.c.bf16 %v530_v7, %v530_v7  ;;  %v1088_v9 = vsel %vm1056_vm10, 0, %v575_v1  ;;  %v1460_v40 = vunpack.c.l.b16 %v1184_v33  ;;  %vm5961_vm11 = vcmp.eq.s32.totalorder %v686_v23, 15 }
  0xee   : > { %v5949_v37 = vrot.slane %v1300_v24, 7  ;;  %v1514_v34 = vrot.slane %v1512_v28, 1  ;;  %v1248_v39 = vunpack.c.l.b16 %v1088_v9  ;;  %v5973_v5 = vpop.f32.mrf.mxu2  ;;  %vm1044_vm12 = vmpackc.low %vm5961_vm11, %vm5961_vm11  ;;  %v777_v16 = vand.u32 15, %v609_v26 }
  0xef   : > { %v4467_v43 = vld [vmem:[#allocation2 + $0x48] sm:$0xf]  ;;  %v1075_v44 = vsel %vm5683_vm2, 0, %v562_v31  ;;  %v5958_v46 = vsel %vm1139_vm8, 0, %v562_v31  ;;  %1764 = vst [vmem:[#allocation2 + $0x7c] sm:$0xf] %v562_v31  ;;  %v1481_v2 = vpack.c.b16 %v1460_v40, %v1459_v21  ;;  %v576_v38 = vpack.c.bf16 %v544_v4, %v544_v4 }
  0xf0   : > { %v464_v42 = vpop.f32.mrf.mxu0  ;;  %v5211_v19 = vld [vmem:[#allocation2 + $0x50] sm:$0xf0]  ;;  %v1305_v52 = vor.u32 %v1303_v25, %v5949_v37  ;;  %v1515_v36 = vsel %vm1487_vm3, %v5898_v22, %v1514_v34  ;;  %v5968_v57 = vor.u32 %v1516_v29, %v1514_v34  ;;  %v1235_v61 = vunpack.c.l.b16 %v1075_v44 }
  0xf1   : > { %v465_v47 = vadd.f32 %v5663_v49, %v464_v42  ;;  %v4468_v54 = vor.u32 %v5211_v19, %v4467_v43  ;;  %v1793_v59 = vunpack.c.l.b16 %v1515_v36  ;;  %v1794_v60 = vunpack.c.h.b16 %v1515_v36  ;;  %1778 = vst [vmem:[#allocation2 + $0x124] sm:$0xf] %v576_v38 }
  0xf2   : > { %v1269_v27 = vpack.c.b16 %v1248_v39, %v1247_v30  ;;  %v1306_v62 = vsel %vm1275_vm6, %v5886_v11, %v1305_v52  ;;  %v4481_v8 = vld [vmem:[#allocation2 + $0x6c] sm:$0xf0]  ;;  %v1568_v10 = vshll.u32 %v1481_v2, 16  ;;  %v1572_v12 = vshrl.u32 %v1481_v2, 16 }
  0xf3   : > { %v531_v55 = vmax.f32 %v465_v47, 0.0  ;;  %v1634_v6 = vunpack.c.l.b16 %v1306_v62  ;;  %v1635_v3 = vunpack.c.h.b16 %v1306_v62  ;;  %v1825_v58 = vpack.c.b16 %v1793_v59, %v1793_v59 }
  0xf4   : > { %v1826_v22 = vpack.c.b16 %v1794_v60, %v1794_v60  ;;  %v1356_v32 = vshrl.u32 %v1269_v27, 16  ;;  %v1359_v53 = vshll.u32 %v1269_v27, 16  ;;  %2500 = vmatmul.bf16.gmra.mxu1 %v4468_v54  ;;  %v1570_v41 = vrot.slane %v1568_v10, 1 }
  0xf5   : > { %v1666_v11 = vpack.c.b16 %v1634_v6, %v1634_v6  ;;  %v1667_v30 = vpack.c.b16 %v1635_v3, %v1635_v3  ;;  %1889 = vst [vmem:[#allocation2 + $0x50] sm:$0xf] %v1825_v58  ;;  %v563_v13 = vpack.c.bf16 %v531_v55, %v531_v55  ;;  %v5980_v21 = vor.u32 %v5213_v15, %v4481_v8 }
  0xf6   : > { %1890 = vst [vmem:[#allocation2 + $0x5c] sm:$0xf] %v1826_v22  ;;  %v5978_v20 = vrot.slane %v1356_v32, 7  ;;  %2932 = vmatmul.bf16.gmra.mxu0 %v4468_v54  ;;  %v1447_v1 = vunpack.c.l.b16 %v5958_v46  ;;  %vm5990_vm13 = vcmp.eq.s32.totalorder %v777_v16, 0  ;;  %v1571_v26 = vsel %vm1487_vm3, %v5892_v18, %v1570_v41  ;;  %v6012_v59 = vpop.f32.mrf.mxu2 }
  0xf7   : > { %1730 = vst [vmem:[#allocation2 + $0x60] sm:$0xf] %v1666_v11  ;;  %v1076_v23 = vsel %vm1044_vm12, 0, %v563_v13  ;;  %v1172_v24 = vsel %vm5683_vm2, 0, %v563_v13  ;;  %2594 = vmatmul.bf16.gmra.mxu2 %v5980_v21  ;;  %vm1153_vm14 = vmpackc.low %vm5990_vm13, %vm5990_vm13  ;;  %v1807_v9 = vunpack.c.l.b16 %v1571_v26  ;;  %v1808_v33 = vunpack.c.h.b16 %v1571_v26 }
  0xf8   : > { %v467_v7 = vpop.f32.mrf.mxu0  ;;  %1731 = vst [vmem:[#allocation2 + $0x6c] sm:$0xf] %v1667_v30  ;;  %v1361_v28 = vor.u32 %v1359_v53, %v5978_v20  ;;  %v1236_v29 = vunpack.c.l.b16 %v1076_v23  ;;  %v1448_v34 = vunpack.c.l.b16 %v1172_v24  ;;  %v1089_v39 = vsel %vm5683_vm2, 0, %v576_v38 }
  0xf9   : > { %v468_v31 = vadd.f32 %v5663_v49, %v467_v7  ;;  %1765 = vst [vmem:[#allocation2 + $0x88] sm:$0xf] %v563_v13  ;;  %v6006_v18 = vor.u32 %v1572_v12, %v1570_v41  ;;  %v6008_v43 = vsel %vm1153_vm14, 0, %v576_v38  ;;  %v1839_v46 = vpack.c.b16 %v1807_v9, %v1807_v9 }
  0xfa   : > { %v1362_v40 = vsel %vm1275_vm6, %v5890_v17, %v1361_v28  ;;  %v1263_v42 = vpack.c.b16 %v1236_v29, %v1235_v61  ;;  %v1840_v47 = vpack.c.b16 %v1808_v33, %v1808_v33  ;;  %v1475_v36 = vpack.c.b16 %v1448_v34, %v1447_v1 }
  0xfb   : > { %v1648_v19 = vunpack.c.l.b16 %v1362_v40  ;;  %v1649_v44 = vunpack.c.h.b16 %v1362_v40  ;;  %v6010_v54 = vunpack.c.l.b16 %v1089_v39  ;;  %1903 = vst [vmem:[#allocation2 + $0xf8] sm:$0xf] %v1839_v46  ;;  %v532_v17 = vmax.f32 %v468_v31, 0.0 }
  0xfc   : > { %v1308_v51 = vshrl.u32 %v1263_v42, 16  ;;  %v1311_v52 = vshll.u32 %v1263_v42, 16  ;;  %v597_v61 = vadd.s32 80, %v5665_v50  ;;  %1904 = vst [vmem:[#allocation2 + $0x104] sm:$0xf] %v1840_v47  ;;  %v1520_v2 = vshll.u32 %v1475_v36, 16 }
  0xfd   : > { %v1680_v60 = vpack.c.b16 %v1648_v19, %v1648_v19  ;;  %v1681_v27 = vpack.c.b16 %v1649_v44, %v1649_v44  ;;  %v1461_v55 = vunpack.c.l.b16 %v6008_v43  ;;  %v500_v4 = vadd.f32 %v5663_v49, %v5935_v63 }
  0xfe   : > { %v6015_v62 = vrot.slane %v1308_v51, 7  ;;  %v564_v3 = vpack.c.bf16 %v532_v17, %v532_v17  ;;  %v693_v58 = vand.u32 15, %v597_v61  ;;  %v610_v22 = vadd.s32 184, %v5665_v50  ;;  %v4479_v26 = vld [vmem:[#allocation2 + $0x60] sm:$0xf]  ;;  %v6034_v19 = vpop.f32.mrf.mxu2 }
  0xff   : > { %1744 = vst [vmem:[#allocation2 + $0x108] sm:$0xf] %v1680_v60  ;;  %v1522_v53 = vrot.slane %v1520_v2, 1  ;;  %v1524_v10 = vshrl.u32 %v1475_v36, 16  ;;  %v545_v12 = vmax.f32 %v500_v4, 0.0  ;;  %v598_v63 = vadd.s32 88, %v5665_v50 }
 0x100   : > { %v469_v6 = vpop.f32.mrf.mxu0  ;;  %1745 = vst [vmem:[#allocation2 + $0x114] sm:$0xf] %v1681_v27  ;;  %v1313_v32 = vor.u32 %v1311_v52, %v6015_v62  ;;  %vm1109_vm15 = vcmp.eq.s32.totalorder %v693_v58, 0  ;;  %v784_v11 = vand.u32 15, %v610_v22  ;;  %v1077_v41 = vsel %vm5683_vm2, 0, %v564_v3 }
 0x101   : > { %v470_v8 = vadd.f32 %v5663_v49, %v469_v6  ;;  %1766 = vst [vmem:[#allocation2 + $0x94] sm:$0xf] %v564_v3  ;;  %v1523_v15 = vsel %vm1487_vm3, %v5968_v57, %v1522_v53  ;;  %v6028_v16 = vor.u32 %v1524_v10, %v1522_v53  ;;  %vm1141_vm0 = vmpackc.low %vm1109_vm15, %vm1109_vm15  ;;  %v577_v25 = vpack.c.bf16 %v545_v12, %v545_v12  ;;  %v5214_v29 = vld [vmem:[#allocation2 + $0x68] sm:$0xf0]  ;;  %v4493_v33 = vld [vmem:[#allocation2 + $0x84] sm:$0xf0] }
 0x102   : > { %v1314_v13 = vsel %vm1275_vm6, %v5949_v37, %v1313_v32  ;;  %v1795_v1 = vunpack.c.l.b16 %v1523_v15  ;;  %v1796_v23 = vunpack.c.h.b16 %v1523_v15  ;;  %v1173_v24 = vsel %vm1141_vm0, 0, %v564_v3  ;;  %v5216_v52 = vld [vmem:[#allocation2 + $0x7c] sm:$0xf] }
 0x103   : > { %v533_v30 = vmax.f32 %v470_v8, 0.0  ;;  %v1636_v38 = vunpack.c.l.b16 %v1314_v13  ;;  %v1637_v7 = vunpack.c.h.b16 %v1314_v13  ;;  %vm1026_vm1 = vcmp.eq.s32.totalorder %v784_v11, 15  ;;  %1779 = vst [vmem:[#allocation2 + $0x130] sm:$0xf] %v577_v25 }
 0x104   : > { %v1827_v9 = vpack.c.b16 %v1795_v1, %v1795_v1  ;;  %v1828_v57 = vpack.c.b16 %v1796_v23, %v1796_v23  ;;  %vm1058_vm4 = vmpackc.low %vm1026_vm1, %vm1026_vm1  ;;  %v1449_v34 = vunpack.c.l.b16 %v1173_v24  ;;  %v1186_v40 = vsel %vm5683_vm2, 0, %v577_v25 }
 0x105   : > { %v565_v28 = vpack.c.bf16 %v533_v30, %v533_v30  ;;  %v1668_v37 = vpack.c.b16 %v1636_v38, %v1636_v38  ;;  %v1669_v31 = vpack.c.b16 %v1637_v7, %v1637_v7  ;;  %v1090_v39 = vsel %vm1058_vm4, 0, %v577_v25 }
 0x106   : > { %v700_v42 = vand.u32 15, %v598_v63  ;;  %v1250_v44 = vunpack.c.l.b16 %v1090_v39  ;;  %v1462_v46 = vunpack.c.l.b16 %v1186_v40  ;;  %v4480_v51 = vor.u32 %v5214_v29, %v4479_v26  ;;  %1891 = vst [vmem:[#allocation2 + $0x68] sm:$0xf] %v1827_v9 }
 0x107   : > { %1732 = vst [vmem:[#allocation2 + $0x78] sm:$0xf] %v1668_v37  ;;  %v1174_v47 = vsel %vm5683_vm2, 0, %v565_v28  ;;  %v6038_v60 = vor.u32 %v5216_v52, %v4493_v33  ;;  %v503_v27 = vadd.f32 %v5663_v49, %v5973_v5  ;;  %v1237_v17 = vunpack.c.l.b16 %v1077_v41 }
 0x108   : > { %v472_v43 = vpop.f32.mrf.mxu0  ;;  %1733 = vst [vmem:[#allocation2 + $0x84] sm:$0xf] %v1669_v31  ;;  %vm1014_vm5 = vcmp.eq.s32.totalorder %v700_v42, 15  ;;  %v1450_v36 = vunpack.c.l.b16 %v1174_v47  ;;  %v1270_v61 = vpack.c.b16 %v1250_v44, %v6010_v54  ;;  %v1482_v2 = vpack.c.b16 %v1462_v46, %v1461_v55  ;;  %2505 = vmatmul.bf16.gmra.mxu1 %v4480_v51  ;;  %2937 = vmatmul.bf16.gmra.mxu0 %v4480_v51  ;;  %v6063_v31 = vpop.f32.mrf.mxu2 }
 0x109   : > { %vm1046_vm8 = vmpackc.low %vm1014_vm5, %vm1014_vm5  ;;  %v611_v4 = vadd.s32 192, %v5665_v50  ;;  %1892 = vst [vmem:[#allocation2 + $0x74] sm:$0xf] %v1828_v57  ;;  %2599 = vmatmul.bf16.gmra.mxu2 %v6038_v60  ;;  %v546_v58 = vmax.f32 %v503_v27, 0.0  ;;  %v473_v22 = vadd.f32 %v5663_v49, %v472_v43  ;;  %v599_v54 = vadd.s32 96, %v5665_v50 }
 0x10a   : > { %v1078_v6 = vsel %vm1046_vm8, 0, %v565_v28  ;;  %v1476_v3 = vpack.c.b16 %v1450_v36, %v1449_v34  ;;  %v1364_v8 = vshrl.u32 %v1270_v61, 16  ;;  %v1367_v5 = vshll.u32 %v1270_v61, 16  ;;  %1767 = vst [vmem:[#allocation2 + $0xa0] sm:$0xf] %v565_v28 }
 0x10b   : > { %v1576_v32 = vshll.u32 %v1482_v2, 16  ;;  %v1580_v55 = vshrl.u32 %v1482_v2, 16  ;;  %v1238_v53 = vunpack.c.l.b16 %v1078_v6  ;;  %v578_v12 = vpack.c.bf16 %v546_v58, %v546_v58  ;;  %v6084_v6 = vld [vmem:[%s7163_s2] ss:$0 sm:$0xff] }
 0x10c   : > { %v1528_v10 = vshll.u32 %v1476_v3, 16  ;;  %v6047_v11 = vrot.slane %v1364_v8, 7  ;;  %v1532_v63 = vshrl.u32 %v1476_v3, 16  ;;  %v791_v13 = vand.u32 15, %v611_v4 }
 0x10d   : > { %v1578_v30 = vrot.slane %v1576_v32, 1  ;;  %v1264_v15 = vpack.c.b16 %v1238_v53, %v1237_v17  ;;  %v1091_v49 = vsel %vm5683_vm2, 0, %v578_v12  ;;  %1780 = vst [vmem:[#allocation2 + $0x13c] sm:$0xf] %v578_v12  ;;  %v534_v38 = vmax.f32 %v473_v22, 0.0 }
 0x10e   : > { %v1530_v41 = vrot.slane %v1528_v10, 1  ;;  %v1369_v7 = vor.u32 %v1367_v5, %v6047_v11  ;;  %vm6054_vm9 = vcmp.eq.s32.totalorder %v791_v13, 0  ;;  %v707_v24 = vand.u32 15, %v599_v54 }
 0x10f   : > { %v1579_v1 = vsel %vm1487_vm3, %v6006_v18, %v1578_v30  ;;  %v6058_v28 = vor.u32 %v1580_v55, %v1578_v30  ;;  %v1316_v37 = vshrl.u32 %v1264_v15, 16  ;;  %vm1155_vm10 = vmpackc.low %vm6054_vm9, %vm6054_vm9  ;;  %v1319_v9 = vshll.u32 %v1264_v15, 16  ;;  %v5217_v2 = vld [vmem:[#allocation2 + $0x80] sm:$0xf0]  ;;  %v5219_v30 = vld [vmem:[#allocation2 + $0x94] sm:$0xf] }
 0x110   : > { %v474_v25 = vpop.f32.mrf.mxu0  ;;  %v1809_v26 = vunpack.c.l.b16 %v1579_v1  ;;  %v1810_v29 = vunpack.c.h.b16 %v1579_v1  ;;  %v1370_v18 = vsel %vm1275_vm6, %v5978_v20, %v1369_v7  ;;  %v1531_v57 = vsel %vm1487_vm3, %v6028_v16, %v1530_v41  ;;  %v4491_v16 = vld [vmem:[#allocation2 + $0x78] sm:$0xf]  ;;  %v6100_v23 = vpop.f32.mrf.mxu2 }
 0x111   : > { %v6069_v33 = vor.u32 %v1532_v63, %v1530_v41  ;;  %v1650_v34 = vunpack.c.l.b16 %v1370_v18  ;;  %v1651_v39 = vunpack.c.h.b16 %v1370_v18  ;;  %v6071_v43 = vrot.slane %v1316_v37, 7  ;;  %v4505_v8 = vld [vmem:[#allocation2 + $0x9c] sm:$0xf0] }
 0x112   : > { %v1841_v40 = vpack.c.b16 %v1809_v26, %v1809_v26  ;;  %v1842_v42 = vpack.c.b16 %v1810_v29, %v1810_v29  ;;  %v1797_v44 = vunpack.c.l.b16 %v1531_v57  ;;  %v1798_v46 = vunpack.c.h.b16 %v1531_v57 }
 0x113   : > { %v6073_v47 = vsel %vm1155_vm10, 0, %v578_v12  ;;  %v1682_v51 = vpack.c.b16 %v1650_v34, %v1650_v34  ;;  %v1683_v52 = vpack.c.b16 %v1651_v39, %v1651_v39  ;;  %v6075_v20 = vunpack.c.l.b16 %v1091_v49 }
 0x114   : > { %1905 = vst [vmem:[#allocation2 + $0x110] sm:$0xf] %v1841_v40  ;;  %v6077_v36 = vpack.c.bf16 %v534_v38, %v534_v38  ;;  %v1321_v27 = vor.u32 %v1319_v9, %v6071_v43  ;;  %v1829_v17 = vpack.c.b16 %v1797_v44, %v1797_v44  ;;  %v1830_v61 = vpack.c.b16 %v1798_v46, %v1798_v46 }
 0x115   : > { %1906 = vst [vmem:[#allocation2 + $0x11c] sm:$0xf] %v1842_v42  ;;  %vm1111_vm11 = vcmp.eq.s32.totalorder %v707_v24, 0  ;;  %v1463_v4 = vunpack.c.l.b16 %v6073_v47  ;;  %v505_v3 = vadd.f32 %v6084_v6, %v6012_v59  ;;  %v612_v58 = vadd.s32 200, %v5665_v50 }
 0x116   : > { %1746 = vst [vmem:[#allocation2 + $0x120] sm:$0xf] %v1682_v51  ;;  %vm1143_vm12 = vmpackc.low %vm1111_vm11, %vm1111_vm11  ;;  %v475_v22 = vadd.f32 %v6084_v6, %v474_v25  ;;  %v1322_v5 = vsel %vm1275_vm6, %v6015_v62, %v1321_v27  ;;  %v1079_v32 = vsel %vm5683_vm2, 0, %v6077_v36  ;;  %v600_v55 = vadd.s32 104, %v5665_v50 }
 0x117   : > { %1747 = vst [vmem:[#allocation2 + $0x12c] sm:$0xf] %v1683_v52  ;;  %v1175_v54 = vsel %vm1143_vm12, 0, %v6077_v36  ;;  %v1638_v53 = vunpack.c.l.b16 %v1322_v5  ;;  %v1639_v10 = vunpack.c.h.b16 %v1322_v5  ;;  %v547_v12 = vmax.f32 %v505_v3, 0.0 }
 0x118   : > { %1893 = vst [vmem:[#allocation2 + $0x80] sm:$0xf] %v1829_v17  ;;  %v1451_v59 = vunpack.c.l.b16 %v1175_v54  ;;  %v798_v63 = vand.u32 15, %v612_v58  ;;  %v535_v13 = vmax.f32 %v475_v22, 0.0  ;;  %v714_v15 = vand.u32 15, %v600_v55  ;;  %v477_v62 = vpop.f32.mrf.mxu0 }
 0x119   : > { %1894 = vst [vmem:[#allocation2 + $0x8c] sm:$0xf] %v1830_v61  ;;  %v4492_v41 = vor.u32 %v5217_v2, %v4491_v16  ;;  %v1670_v49 = vpack.c.b16 %v1638_v53, %v1638_v53  ;;  %v1671_v38 = vpack.c.b16 %v1639_v10, %v1639_v10  ;;  %v579_v7 = vpack.c.bf16 %v547_v12, %v547_v12 }
 0x11a   : > { %1768 = vst [vmem:[#allocation2 + $0xac] sm:$0xf] %v6077_v36  ;;  %v6098_v1 = vor.u32 %v5219_v30, %v4505_v8  ;;  %vm1028_vm13 = vcmp.eq.s32.totalorder %v798_v63, 15  ;;  %v567_v24 = vpack.c.bf16 %v535_v13, %v535_v13  ;;  %vm6102_vm14 = vcmp.eq.s32.totalorder %v714_v15, 15  ;;  %v6144_v63 = vpop.f32.mrf.mxu2 }
 0x11b   : > { %2510 = vmatmul.bf16.gmra.mxu1 %v4492_v41  ;;  %2942 = vmatmul.bf16.gmra.mxu0 %v4492_v41  ;;  %v508_v26 = vadd.f32 %v6084_v6, %v6034_v19  ;;  %1734 = vst [vmem:[#allocation2 + $0x90] sm:$0xf] %v1670_v49  ;;  %vm1060_vm15 = vmpackc.low %vm1028_vm13, %vm1028_vm13  ;;  %v1188_v29 = vsel %vm5683_vm2, 0, %v579_v7  ;;  %v613_v37 = vadd.s32 208, %v5665_v50  ;;  %v478_v18 = vadd.f32 %v6084_v6, %v477_v62  ;;  %v5264_v49 = vld [vmem:[%s7164_s3 + $0x78] sm:$0xff] }
 0x11c   : > { %2604 = vmatmul.bf16.gmra.mxu2 %v6098_v1  ;;  %v6114_v9 = vadd.s32 112, %v5665_v50  ;;  %1735 = vst [vmem:[#allocation2 + $0x9c] sm:$0xf] %v1671_v38  ;;  %v1092_v57 = vsel %vm1060_vm15, 0, %v579_v7  ;;  %v1464_v34 = vunpack.c.l.b16 %v1188_v29  ;;  %vm1048_vm0 = vmpackc.low %vm6102_vm14, %vm6102_vm14  ;;  %v1176_v19 = vsel %vm5683_vm2, 0, %v567_v24  ;;  %2998 = vmatpush.bf16.msrb.mxu1 %v5264_v49 }
 0x11d   : > { %v548_v39 = vmax.f32 %v508_v26, 0.0  ;;  %v1252_v40 = vunpack.c.l.b16 %v1092_v57  ;;  %1781 = vst [vmem:[#allocation2 + $0x148] sm:$0xf] %v579_v7  ;;  %v1080_v42 = vsel %vm1048_vm0, 0, %v567_v24  ;;  %v1452_v44 = vunpack.c.l.b16 %v1176_v19 }
 0x11e   : > { %v805_v46 = vand.u32 15, %v613_v37  ;;  %v1239_v47 = vunpack.c.l.b16 %v1079_v32  ;;  %v1483_v51 = vpack.c.b16 %v1464_v34, %v1463_v4  ;;  %v1240_v52 = vunpack.c.l.b16 %v1080_v42  ;;  %1769 = vst [vmem:[#allocation2 + $0xb8] sm:$0xf] %v567_v24  ;;  %v5263_v42 = vld [vmem:[%s7164_s3 + $0x70] sm:$0xff] }
 0x11f   : > { %v580_v36 = vpack.c.bf16 %v548_v39, %v548_v39  ;;  %v1271_v16 = vpack.c.b16 %v1252_v40, %v6075_v20  ;;  %v6122_v27 = vpack.c.b16 %v1452_v44, %v1451_v59  ;;  %v536_v61 = vmax.f32 %v478_v18, 0.0 }
 0x120   : > { %vm6124_vm1 = vcmp.eq.s32.totalorder %v805_v46, 0  ;;  %v1584_v2 = vshll.u32 %v1483_v51, 16  ;;  %v1265_v3 = vpack.c.b16 %v1240_v52, %v1239_v47  ;;  %v721_v4 = vand.u32 15, %v6114_v9  ;;  %2999 = vmatpush.bf16.msrb.mxu1 %v5263_v42 }
 0x121   : > { %v1093_v58 = vsel %vm5683_vm2, 0, %v580_v36  ;;  %vm1157_vm4 = vmpackc.low %vm6124_vm1, %vm6124_vm1  ;;  %1782 = vst [vmem:[#allocation2 + $0x154] sm:$0xf] %v580_v36  ;;  %v1372_v20 = vshrl.u32 %v1271_v16, 16  ;;  %v1375_v22 = vshll.u32 %v1271_v16, 16  ;;  %v1588_v8 = vshrl.u32 %v1483_v51, 16  ;;  %v479_v51 = vpop.f32.mrf.mxu0 }
 0x122   : > { %v1536_v5 = vshll.u32 %v6122_v27, 16  ;;  %v1586_v32 = vrot.slane %v1584_v2, 1  ;;  %v1324_v54 = vshrl.u32 %v1265_v3, 16  ;;  %v1540_v55 = vshrl.u32 %v6122_v27, 16  ;;  %v4503_v52 = vld [vmem:[#allocation2 + $0x90] sm:$0xf] }
 0x123   : > { %v6136_v53 = vsel %vm1157_vm4, 0, %v580_v36  ;;  %v6138_v10 = vrot.slane %v1372_v20, 7  ;;  %v1327_v59 = vshll.u32 %v1265_v3, 16  ;;  %v6142_v30 = vunpack.c.l.b16 %v1093_v58 }
 0x124   : > { %v6140_v12 = vrot.slane %v1536_v5, 1  ;;  %v1587_v13 = vsel %vm1487_vm3, %v6058_v28, %v1586_v32  ;;  %v6148_v15 = vrot.slane %v1324_v54, 7  ;;  %v1465_v41 = vunpack.c.l.b16 %v6136_v53 }
 0x125   : > { %v568_v62 = vpack.c.bf16 %v536_v61, %v536_v61  ;;  %v1377_v38 = vor.u32 %v1375_v22, %v6138_v10  ;;  %v1811_v7 = vunpack.c.l.b16 %v1587_v13  ;;  %v1812_v24 = vunpack.c.h.b16 %v1587_v13  ;;  %v5220_v61 = vld [vmem:[#allocation2 + $0x98] sm:$0xf0]  ;;  %v4517_v2 = vld [vmem:[#allocation2 + $0xb4] sm:$0xf0]  ;;  %v5222_v22 = vld [vmem:[#allocation2 + $0xac] sm:$0xf] }
 0x126   : > { %v1539_v25 = vsel %vm1487_vm3, %v6069_v33, %v6140_v12  ;;  %v6158_v26 = vor.u32 %v1588_v8, %v1586_v32  ;;  %v1329_v28 = vor.u32 %v1327_v59, %v6148_v15  ;;  %vm6170_vm5 = vcmp.eq.s32.totalorder %v721_v4, 0 }
 0x127   : > { %v1799_v29 = vunpack.c.l.b16 %v1539_v25  ;;  %v1800_v37 = vunpack.c.h.b16 %v1539_v25  ;;  %1770 = vst [vmem:[#allocation2 + $0xc4] sm:$0xf] %v568_v62  ;;  %v1378_v18 = vsel %vm1275_vm6, %v6047_v11, %v1377_v38  ;;  %v1843_v9 = vpack.c.b16 %v1811_v7, %v1811_v7  ;;  %vm1145_vm8 = vmpackc.low %vm6170_vm5, %vm6170_vm5  ;;  %v6191_v38 = vpop.f32.mrf.mxu2 }
 0x128   : > { %v1844_v57 = vpack.c.b16 %v1812_v24, %v1812_v24  ;;  %v1081_v34 = vsel %vm5683_vm2, 0, %v568_v62  ;;  %v1652_v19 = vunpack.c.l.b16 %v1378_v18  ;;  %v1653_v39 = vunpack.c.h.b16 %v1378_v18 }
 0x129   : > { %v1330_v33 = vsel %vm1275_vm6, %v6071_v43, %v1329_v28  ;;  %v1831_v40 = vpack.c.b16 %v1799_v29, %v1799_v29  ;;  %1907 = vst [vmem:[#allocation2 + $0x128] sm:$0xf] %v1843_v9  ;;  %v1832_v47 = vpack.c.b16 %v1800_v37, %v1800_v37  ;;  %v6177_v43 = vunpack.c.l.b16 %v1081_v34  ;;  %v5261_v34 = vld [vmem:[%s7164_s3 + $0x60] sm:$0xff] }
 0x12a   : > { %v1640_v44 = vunpack.c.l.b16 %v1330_v33  ;;  %v1641_v46 = vunpack.c.h.b16 %v1330_v33  ;;  %v1684_v36 = vpack.c.b16 %v1652_v19, %v1652_v19  ;;  %v1685_v16 = vpack.c.b16 %v1653_v39, %v1653_v39  ;;  %1908 = vst [vmem:[#allocation2 + $0x134] sm:$0xf] %v1844_v57 }
 0x12b   : > { %v510_v17 = vadd.f32 %v6084_v6, %v6063_v31  ;;  %1895 = vst [vmem:[#allocation2 + $0x98] sm:$0xf] %v1831_v40  ;;  %v1177_v4 = vsel %vm1145_vm8, 0, %v568_v62  ;;  %v614_v20 = vadd.s32 216, %v5665_v50  ;;  %v480_v32 = vadd.f32 %v6084_v6, %v479_v51  ;;  %v5262_v31 = vld [vmem:[%s7164_s3 + $0x68] sm:$0xff] }
 0x12c   : > { %v1672_v3 = vpack.c.b16 %v1640_v44, %v1640_v44  ;;  %v1673_v58 = vpack.c.b16 %v1641_v46, %v1641_v46  ;;  %1748 = vst [vmem:[#allocation2 + $0x138] sm:$0xf] %v1684_v36  ;;  %v1453_v8 = vunpack.c.l.b16 %v1177_v4  ;;  %v602_v54 = vadd.s32 120, %v5665_v50  ;;  %3000 = vmatpush.bf16.msrb.mxu1 %v5262_v31 }
 0x12d   : > { %v549_v5 = vmax.f32 %v510_v17, 0.0  ;;  %1749 = vst [vmem:[#allocation2 + $0x144] sm:$0xf] %v1685_v16  ;;  %v812_v59 = vand.u32 15, %v614_v20  ;;  %v4504_v13 = vor.u32 %v5220_v61, %v4503_v52  ;;  %v6187_v49 = vor.u32 %v5222_v22, %v4517_v2 }
 0x12e   : > { %v513_v62 = vadd.f32 %v6084_v6, %v6100_v23  ;;  %1736 = vst [vmem:[#allocation2 + $0xa8] sm:$0xf] %v1672_v3  ;;  %v537_v24 = vmax.f32 %v480_v32, 0.0  ;;  %v728_v25 = vand.u32 15, %v602_v54  ;;  %v615_v28 = vadd.s32 224, %v5665_v50 }
 0x12f   : > { %v581_v7 = vpack.c.bf16 %v549_v5, %v549_v5  ;;  %1737 = vst [vmem:[#allocation2 + $0xb4] sm:$0xf] %v1673_v58  ;;  %vm1030_vm9 = vcmp.eq.s32.totalorder %v812_v59, 15  ;;  %2515 = vmatmul.bf16.gmra.mxu1 %v4504_v13  ;;  %2609 = vmatmul.bf16.gmra.mxu2 %v6187_v49  ;;  %v515_v37 = vadd.f32 %v6084_v6, %v6144_v63  ;;  %v616_v23 = vadd.s32 232, %v5665_v50  ;;  %v6228_v22 = vpop.f32.mrf.mxu2 }
 0x130   : > { %v550_v29 = vmax.f32 %v513_v62, 0.0  ;;  %1896 = vst [vmem:[#allocation2 + $0xa4] sm:$0xf] %v1832_v47  ;;  %vm1062_vm10 = vmpackc.low %vm1030_vm9, %vm1030_vm9  ;;  %v569_v9 = vpack.c.bf16 %v537_v24, %v537_v24  ;;  %vm1018_vm11 = vcmp.eq.s32.totalorder %v728_v25, 15  ;;  %2947 = vmatmul.bf16.gmra.mxu0 %v4504_v13  ;;  %v819_v57 = vand.u32 15, %v615_v28  ;;  %3001 = vmatpush.bf16.msrb.mxu1 %v5261_v34 }
 0x131   : > { %v1190_v18 = vsel %vm5683_vm2, 0, %v581_v7  ;;  %v1094_v19 = vsel %vm1062_vm10, 0, %v581_v7  ;;  %1783 = vst [vmem:[#allocation2 + $0x160] sm:$0xf] %v581_v7  ;;  %vm1050_vm12 = vmpackc.low %vm1018_vm11, %vm1018_vm11  ;;  %v551_v33 = vmax.f32 %v515_v37, 0.0  ;;  %v1542_v52 = vor.u32 %v1540_v55, %v6140_v12 }
 0x132   : > { %v1466_v39 = vunpack.c.l.b16 %v1190_v18  ;;  %v582_v63 = vpack.c.bf16 %v550_v29, %v550_v29  ;;  %v1254_v40 = vunpack.c.l.b16 %v1094_v19  ;;  %v1082_v42 = vsel %vm1050_vm12, 0, %v569_v9  ;;  %1771 = vst [vmem:[#allocation2 + $0xd0] sm:$0xf] %v569_v9 }
 0x133   : > { %v1178_v44 = vsel %vm5683_vm2, 0, %v569_v9  ;;  %vm1127_vm13 = vcmp.eq.s32.totalorder %v819_v57, 0  ;;  %v1242_v47 = vunpack.c.l.b16 %v1082_v42  ;;  %v6217_v17 = vpack.c.bf16 %v551_v33, %v551_v33 }
 0x134   : > { %v6207_v46 = vpack.c.b16 %v1466_v39, %v1465_v41  ;;  %v1454_v11 = vunpack.c.l.b16 %v1178_v44  ;;  %v1095_v51 = vsel %vm5683_vm2, 0, %v582_v63  ;;  %vm1159_vm14 = vmpackc.low %vm1127_vm13, %vm1127_vm13  ;;  %1784 = vst [vmem:[#allocation2 + $0x16c] sm:$0xf] %v582_v63  ;;  %v1272_v36 = vpack.c.b16 %v1254_v40, %v6142_v30 }
 0x135   : > { %v6215_v16 = vsel %vm1159_vm14, 0, %v582_v63  ;;  %v1266_v41 = vpack.c.b16 %v1242_v47, %v6177_v43  ;;  %v6221_v2 = vunpack.c.l.b16 %v1095_v51  ;;  %v826_v20 = vand.u32 15, %v616_v23  ;;  %1785 = vst [vmem:[#allocation2 + $0x178] sm:$0xf] %v6217_v17  ;;  %v4515_v42 = vld [vmem:[#allocation2 + $0xa8] sm:$0xf] }
 0x136   : > { %v1592_v53 = vshll.u32 %v6207_v46, 16  ;;  %v1478_v61 = vpack.c.b16 %v1454_v11, %v1453_v8  ;;  %v1380_v3 = vshrl.u32 %v1272_v36, 16  ;;  %v1383_v58 = vshll.u32 %v1272_v36, 16  ;;  %v5223_v44 = vld [vmem:[#allocation2 + $0xb0] sm:$0xf0] }
 0x137   : > { %v1596_v4 = vshrl.u32 %v6207_v46, 16  ;;  %v1332_v55 = vshrl.u32 %v1266_v41, 16  ;;  %v1467_v30 = vunpack.c.l.b16 %v6215_v16  ;;  %v1335_v43 = vshll.u32 %v1266_v41, 16 }
 0x138   : > { %v6225_v27 = vrot.slane %v1592_v53, 1  ;;  %v1544_v12 = vshll.u32 %v1478_v61, 16  ;;  %v6230_v5 = vrot.slane %v1380_v3, 7  ;;  %v1548_v8 = vshrl.u32 %v1478_v61, 16 }
 0x139   : > { %vm1032_vm15 = vcmp.eq.s32.totalorder %v826_v20, 15  ;;  %v1334_v54 = vrot.slane %v1332_v55, 7  ;;  %v1192_v59 = vsel %vm5683_vm2, 0, %v6217_v17  ;;  %v5225_v55 = vld [vmem:[#allocation2 + $0xc4] sm:$0xf] }
 0x13a   : > { %v1595_v32 = vsel %vm1487_vm3, %v6158_v26, %v6225_v27  ;;  %v1546_v31 = vrot.slane %v1544_v12, 1  ;;  %vm1064_vm0 = vmpackc.low %vm1032_vm15, %vm1032_vm15  ;;  %v1385_v13 = vor.u32 %v1383_v58, %v6230_v5 }
 0x13b   : > { %v1813_v62 = vunpack.c.l.b16 %v1595_v32  ;;  %v1814_v7 = vunpack.c.h.b16 %v1595_v32  ;;  %v1096_v24 = vsel %vm1064_vm0, 0, %v6217_v17  ;;  %v1337_v25 = vor.u32 %v1335_v43, %v1334_v54  ;;  %v5259_v43 = vld [vmem:[%s7164_s3 + $0x50] sm:$0xff] }
 0x13c   : > { %v1346_v28 = vsel %vm1275_vm6, %v1334_v54, %v5791_v35  ;;  %v1547_v29 = vsel %vm1487_vm3, %v1542_v52, %v1546_v31  ;;  %v1550_v26 = vor.u32 %v1548_v8, %v1546_v31  ;;  %v1386_v37 = vsel %vm1275_vm6, %v6138_v10, %v1385_v13  ;;  %v4529_v52 = vld [vmem:[#allocation2 + $0xcc] sm:$0xf0] }
 0x13d   : > { %v1845_v23 = vpack.c.b16 %v1813_v62, %v1813_v62  ;;  %v1846_v18 = vpack.c.b16 %v1814_v7, %v1814_v7  ;;  %v1644_v9 = vunpack.c.l.b16 %v1346_v28  ;;  %v1654_v57 = vunpack.c.l.b16 %v1386_v37  ;;  %v5298_v13 = vld [vmem:[%s7164_s3 + $0x170] sm:$0xff] }
 0x13e   : > { %v1655_v34 = vunpack.c.h.b16 %v1386_v37  ;;  %v1338_v19 = vsel %vm1275_vm6, %v6148_v15, %v1337_v25  ;;  %v1555_v39 = vsel %vm1487_vm3, %v1550_v26, %v5800_v45  ;;  %v1645_v33 = vunpack.c.h.b16 %v1346_v28  ;;  %v5299_v15 = vld [vmem:[%s7164_s3 + $0x178] sm:$0xff]  ;;  %v6269_v28 = vpop.f32.mrf.mxu0 }
 0x13f   : > { %1909 = vst [vmem:[#allocation2 + $0x140] sm:$0xf] %v1845_v23  ;;  %v1642_v63 = vunpack.c.l.b16 %v1338_v19  ;;  %v1643_v35 = vunpack.c.h.b16 %v1338_v19  ;;  %v1676_v40 = vpack.c.b16 %v1644_v9, %v1644_v9  ;;  %v1686_v47 = vpack.c.b16 %v1654_v57, %v1654_v57  ;;  %v5260_v45 = vld [vmem:[%s7164_s3 + $0x58] sm:$0xff]  ;;  %2660 = vmatpush.bf16.msrb.mxu3 %v5299_v15 }
 0x140   : > { %v1687_v10 = vpack.c.b16 %v1655_v34, %v1655_v34  ;;  %1910 = vst [vmem:[#allocation2 + $0x14c] sm:$0xf] %v1846_v18  ;;  %v1801_v11 = vunpack.c.l.b16 %v1547_v29  ;;  %v1802_v51 = vunpack.c.h.b16 %v1547_v29  ;;  %v1677_v53 = vpack.c.b16 %v1645_v33, %v1645_v33  ;;  %3002 = vmatpush.bf16.msrb.mxu1 %v5260_v45 }
 0x141   : > { %v1674_v36 = vpack.c.b16 %v1642_v63, %v1642_v63  ;;  %v1675_v17 = vpack.c.b16 %v1643_v35, %v1643_v35  ;;  %1740 = vst [vmem:[#allocation2 + $0xd8] sm:$0xf] %v1676_v40  ;;  %v1803_v41 = vunpack.c.l.b16 %v1555_v39  ;;  %v1804_v61 = vunpack.c.h.b16 %v1555_v39  ;;  %v5257_v39 = vld [vmem:[%s7164_s3 + $0x40] sm:$0xff] }
 0x142   : > { %1750 = vst [vmem:[#allocation2 + $0x150] sm:$0xf] %v1686_v47  ;;  %v1833_v3 = vpack.c.b16 %v1801_v11, %v1801_v11  ;;  %v1834_v58 = vpack.c.b16 %v1802_v51, %v1802_v51  ;;  %v1256_v20 = vunpack.c.l.b16 %v1096_v24  ;;  %v1468_v32 = vunpack.c.l.b16 %v1192_v59 }
 0x143   : > { %1751 = vst [vmem:[#allocation2 + $0x15c] sm:$0xf] %v1687_v10  ;;  %v1835_v8 = vpack.c.b16 %v1803_v41, %v1803_v41  ;;  %v4516_v54 = vor.u32 %v5223_v44, %v4515_v42  ;;  %v6260_v31 = vor.u32 %v5225_v55, %v4529_v52  ;;  %v1836_v62 = vpack.c.b16 %v1804_v61, %v1804_v61 }
 0x144   : > { %v6255_v12 = vpop.f32.mrf.mxu2  ;;  %1738 = vst [vmem:[#allocation2 + $0xc0] sm:$0xf] %v1674_v36  ;;  %v1273_v7 = vpack.c.b16 %v1256_v20, %v6221_v2  ;;  %v518_v24 = vadd.f32 %v6084_v6, %v6191_v38  ;;  %v617_v25 = vadd.s32 240, %v5665_v50  ;;  %v6273_v59 = vpack.c.b16 %v1468_v32, %v1467_v30  ;;  %v5258_v38 = vld [vmem:[%s7164_s3 + $0x48] sm:$0xff]  ;;  %3003 = vmatpush.bf16.msrb.mxu1 %v5259_v43  ;;  %v5228_v32 = vld [vmem:[#allocation2 + $0xdc] sm:$0xf] }
 0x145   : > { %1739 = vst [vmem:[#allocation2 + $0xcc] sm:$0xf] %v1675_v17  ;;  %2520 = vmatmul.bf16.gmra.mxu1 %v4516_v54  ;;  %2614 = vmatmul.bf16.gmra.mxu2 %v6260_v31  ;;  %v520_v29 = vadd.f32 %v6084_v6, %v6228_v22  ;;  %v618_v2 = vadd.s32 248, %v5665_v50  ;;  %v1598_v30 = vor.u32 %v1596_v4, %v6225_v27 }
 0x146   : > { %1741 = vst [vmem:[#allocation2 + $0xe4] sm:$0xf] %v1677_v53  ;;  %v1388_v26 = vshrl.u32 %v1273_v7, 16  ;;  %v1391_v37 = vshll.u32 %v1273_v7, 16  ;;  %2952 = vmatmul.bf16.gmra.mxu0 %v4516_v54  ;;  %v552_v23 = vmax.f32 %v518_v24, 0.0  ;;  %v833_v16 = vand.u32 15, %v617_v25  ;;  %2661 = vmatpush.bf16.msrb.mxu3 %v5298_v13 }
 0x147   : > { %1897 = vst [vmem:[#allocation2 + $0xb0] sm:$0xf] %v1833_v3  ;;  %v1600_v6 = vshll.u32 %v6273_v59, 16  ;;  %v553_v22 = vmax.f32 %v520_v29, 0.0  ;;  %v840_v50 = vand.u32 15, %v618_v2  ;;  %v1604_v17 = vshrl.u32 %v6273_v59, 16 }
 0x148   : > { %1898 = vst [vmem:[#allocation2 + $0xbc] sm:$0xf] %v1834_v58  ;;  %v6286_v18 = vrot.slane %v1388_v26, 7  ;;  %v584_v9 = vpack.c.bf16 %v552_v23, %v552_v23  ;;  %vm1129_vm1 = vcmp.eq.s32.totalorder %v833_v16, 0  ;;  %3004 = vmatpush.bf16.msrb.mxu1 %v5258_v38  ;;  %v4539_v40 = vld [vmem:[#allocation2 + $0xd8] sm:$0xf] }
 0x149   : > { %1899 = vst [vmem:[#allocation2 + $0xc8] sm:$0xf] %v1835_v8  ;;  %v1602_v57 = vrot.slane %v1600_v6, 1  ;;  %vm1161_vm4 = vmpackc.low %vm1129_vm1, %vm1129_vm1  ;;  %v585_v34 = vpack.c.bf16 %v553_v22, %v553_v22  ;;  %vm6288_vm5 = vcmp.eq.s32.totalorder %v840_v50, 15  ;;  %v4541_v13 = vld [vmem:[#allocation2 + $0xe4] sm:$0xf0] }
 0x14a   : > { %1900 = vst [vmem:[#allocation2 + $0xd4] sm:$0xf] %v1836_v62  ;;  %v1393_v46 = vor.u32 %v1391_v37, %v6286_v18  ;;  %v1097_v4 = vsel %vm5683_vm2, 0, %v584_v9  ;;  %v1193_v27 = vsel %vm1161_vm4, 0, %v584_v9  ;;  %vm1066_vm8 = vmpackc.low %vm6288_vm5, %vm6288_vm5  ;;  %v5297_v7 = vld [vmem:[%s7164_s3 + $0x168] sm:$0xff]  ;;  %v6320_v37 = vor.u32 %v5228_v32, %v4541_v13 }
 0x14b   : > { %v1603_v63 = vsel %vm1487_vm3, %v1598_v30, %v1602_v57  ;;  %v1257_v35 = vunpack.c.l.b16 %v1097_v4  ;;  %v1469_v33 = vunpack.c.l.b16 %v1193_v27  ;;  %1786 = vst [vmem:[#allocation2 + $0x184] sm:$0xf] %v584_v9  ;;  %v1098_v11 = vsel %vm1066_vm8, 0, %v585_v34  ;;  %v4527_v3 = vld [vmem:[#allocation2 + $0xc0] sm:$0xf]  ;;  %2662 = vmatpush.bf16.msrb.mxu3 %v5297_v7 }
 0x14c   : > { %v6302_v42 = vpop.f32.mrf.mxu2  ;;  %v1394_v44 = vsel %vm1275_vm6, %v6230_v5, %v1393_v46  ;;  %v1815_v47 = vunpack.c.l.b16 %v1603_v63  ;;  %v1816_v10 = vunpack.c.h.b16 %v1603_v63  ;;  %1787 = vst [vmem:[#allocation2 + $0x190] sm:$0xf] %v585_v34  ;;  %v1194_v15 = vsel %vm5683_vm2, 0, %v585_v34  ;;  %v5226_v58 = vld [vmem:[#allocation2 + $0xc8] sm:$0xf0]  ;;  %v6311_v5 = vpop.f32.mrf.mxu0  ;;  %3005 = vmatpush.bf16.msrb.mxu1 %v5257_v39 }
 0x14d   : > { %v1656_v51 = vunpack.c.l.b16 %v1394_v44  ;;  %v1657_v52 = vunpack.c.h.b16 %v1394_v44  ;;  %v1258_v45 = vunpack.c.l.b16 %v1098_v11  ;;  %v5229_v36 = vld [vmem:[#allocation2 + $0xe0] sm:$0xf0]  ;;  %v1470_v41 = vunpack.c.l.b16 %v1194_v15  ;;  %v5235_v32 = vld [vmem:[#allocation2 + $0x110] sm:$0xf0]  ;;  %v5234_v13 = vld [vmem:[#allocation2 + $0x10c] sm:$0xf] }
 0x14e   : > { %v1847_v53 = vpack.c.b16 %v1815_v47, %v1815_v47  ;;  %v6309_v61 = vor.u32 %v5229_v36, %v4539_v40  ;;  %v1848_v43 = vpack.c.b16 %v1816_v10, %v1816_v10  ;;  %v4528_v59 = vor.u32 %v5226_v58, %v4527_v3  ;;  %v4551_v47 = vld [vmem:[#allocation2 + $0xf0] sm:$0xf]  ;;  %v5232_v10 = vld [vmem:[#allocation2 + $0xf8] sm:$0xf0]  ;;  %v4553_v36 = vld [vmem:[#allocation2 + $0xfc] sm:$0xf0] }
 0x14f   : > { %v1688_v20 = vpack.c.b16 %v1656_v51, %v1656_v51  ;;  %v1689_v55 = vpack.c.b16 %v1657_v52, %v1657_v52  ;;  %v1274_v8 = vpack.c.b16 %v1258_v45, %v1257_v35  ;;  %v2491_v0 = vpop.f32.mrf.mxu1  ;;  %v1486_v54 = vpack.c.b16 %v1470_v41, %v1469_v33  ;;  %v5201_v51 = vld [vmem:[#allocation2 + $0x4] sm:$0xf]  ;;  %v4733_v52 = vld [vmem:[#allocation2 + $0xc] sm:$0xf0]  ;;  %v5231_v45 = vld [vmem:[#allocation2 + $0xf4] sm:$0xf] }
 0x150   : > { %1911 = vst [vmem:[#allocation2 + $0x158] sm:$0xf] %v1847_v53  ;;  %2530 = vmatmul.bf16.vlgmr.msra.gmra.mxu3 %v6309_v61  ;;  %v6315_v62 = vadd.f32 %v6255_v12, %v2491_v0  ;;  %v1606_v29 = vor.u32 %v1604_v17, %v1602_v57  ;;  %vm1616_vm2 = vcmask 1047552   ;;  %v4552_v11 = vor.u32 %v5232_v10, %v4551_v47  ;;  %v5296_v17 = vld [vmem:[%s7164_s3 + $0x160] sm:$0xff]  ;;  %v4565_v7 = vld [vmem:[#allocation2 + $0x114] sm:$0xf0] }
 0x151   : > { %1752 = vst [vmem:[#allocation2 + $0x168] sm:$0xf] %v1688_v20  ;;  %v1396_v24 = vshrl.u32 %v1274_v8, 16  ;;  %v1399_v25 = vshll.u32 %v1274_v8, 16  ;;  %v1608_v2 = vshll.u32 %v1486_v54, 16  ;;  %v1612_v38 = vshrl.u32 %v1486_v54, 16  ;;  %vm1617_vm9 = vmand %vm1616_vm2, %vm1487_vm3  ;;  %2663 = vmatpush.bf16.msrb.mxu3 %v5296_v17 }
 0x152   : > { %1753 = vst [vmem:[#allocation2 + $0x174] sm:$0xf] %v1689_v55  ;;  %v4736_v53 = vor.u32 %v5201_v51, %v4733_v52  ;;  %v6338_v58 = vor.u32 %v5231_v45, %v4553_v36  ;;  %v4563_v8 = vld [vmem:[#allocation2 + $0x108] sm:$0xf]  ;;  %v5363_v51 = vld [vmem:[%s7164_s3 + $0x1f8] sm:$0xff]  ;;  %v5271_v45 = vld [vmem:[%s7164_s3 + $0xb0] sm:$0xff] }
 0x153   : > { %1912 = vst [vmem:[#allocation2 + $0x164] sm:$0xf] %v1848_v43  ;;  %v1398_v26 = vrot.slane %v1396_v24, 7  ;;  %v1610_v12 = vrot.slane %v1608_v2, 1  ;;  %v4564_v54 = vor.u32 %v5235_v32, %v4563_v8  ;;  %v5295_v24 = vld [vmem:[%s7164_s3 + $0x158] sm:$0xff]  ;;  %v5293_v47 = vld [vmem:[%s7164_s3 + $0x148] sm:$0xff]  ;;  %3778 = vmatpush.bf16.msra.mxu0 %v5363_v51 }
 0x154   : > { %v6327_v46 = vpop.f32.mrf.mxu0  ;;  %v4599_v17 = vld [vmem:[#allocation2 + $0x150] sm:$0xf]  ;;  %v4613_v51 = vld [vmem:[#allocation2 + $0x174] sm:$0xf0] }
 0x155   : > { %v1401_v23 = vor.u32 %v1399_v25, %v1398_v26  ;;  %2525 = vmatmul.bf16.gmra.mxu1 %v4528_v59  ;;  %2619 = vmatmul.bf16.gmra.mxu2 %v6320_v37  ;;  %v1611_v30 = vsel %vm1487_vm3, %v1606_v29, %v1610_v12  ;;  %v1614_v6 = vor.u32 %v1612_v38, %v1610_v12  ;;  %v4575_v38 = vld [vmem:[#allocation2 + $0x120] sm:$0xf]  ;;  %v5238_v26 = vld [vmem:[#allocation2 + $0x128] sm:$0xf0] }
 0x156   : > { %v2585_v16 = vpop.f32.mrf.mxu2  ;;  %2957 = vmatmul.bf16.gmra.mxu0 %v4528_v59  ;;  %v1817_v50 = vunpack.c.l.b16 %v1611_v30  ;;  %v1818_v9 = vunpack.c.h.b16 %v1611_v30  ;;  %2664 = vmatpush.bf16.msrb.mxu3 %v5295_v24 }
 0x157   : > { %v1402_v22 = vsel %vm1275_vm6, %v6286_v18, %v1401_v23  ;;  %v1618_v57 = vsel %vm1617_vm9, %v1614_v6, 0  ;;  %v6329_v4 = vpop.f32.mrf.mxu1  ;;  %v5237_v6 = vld [vmem:[#allocation2 + $0x124] sm:$0xf] }
 0x158   : > { %v1658_v34 = vunpack.c.l.b16 %v1402_v22  ;;  %v1659_v19 = vunpack.c.h.b16 %v1402_v22  ;;  %v1819_v27 = vunpack.c.l.b16 %v1618_v57  ;;  %v1820_v39 = vunpack.c.h.b16 %v1618_v57  ;;  %v4577_v22 = vld [vmem:[#allocation2 + $0x12c] sm:$0xf0] }
 0x159   : > { %v1849_v63 = vpack.c.b16 %v1817_v50, %v1817_v50  ;;  %v1850_v40 = vpack.c.b16 %v1818_v9, %v1818_v9  ;;  %v5294_v50 = vld [vmem:[%s7164_s3 + $0x150] sm:$0xff] }
 0x15a   : > { %v1690_v35 = vpack.c.b16 %v1658_v34, %v1658_v34  ;;  %v1691_v33 = vpack.c.b16 %v1659_v19, %v1659_v19  ;;  %v1851_v44 = vpack.c.b16 %v1819_v27, %v1819_v27  ;;  %v1852_v18 = vpack.c.b16 %v1820_v39, %v1820_v39  ;;  %2665 = vmatpush.bf16.msrb.mxu3 %v5294_v50  ;;  %v4587_v27 = vld [vmem:[#allocation2 + $0x138] sm:$0xf]  ;;  %v5241_v39 = vld [vmem:[#allocation2 + $0x140] sm:$0xf0] }
 0x15b   : > { %1913 = vst [vmem:[#allocation2 + $0x170] sm:$0xf] %v1849_v63 }
 0x15c   : > { %1754 = vst [vmem:[#allocation2 + $0x180] sm:$0xf] %v1690_v35  ;;  %v6336_v41 = vpop.f32.mrf.mxu0  ;;  %v4588_v35 = vor.u32 %v5241_v39, %v4587_v27  ;;  %v5247_v27 = vld [vmem:[#allocation2 + $0x170] sm:$0xf0] }
 0x15d   : > { %1755 = vst [vmem:[#allocation2 + $0x18c] sm:$0xf] %v1691_v33  ;;  %v5358_v39 = vld [vmem:[%s7164_s3 + $0x1d0] sm:$0xff] }
 0x15e   : > { %1914 = vst [vmem:[#allocation2 + $0x17c] sm:$0xf] %v1850_v40  ;;  %v6331_v15 = vpop.f32.mrf.mxu2  ;;  %v5240_v40 = vld [vmem:[#allocation2 + $0x13c] sm:$0xf]  ;;  %2666 = vmatpush.bf16.msrb.mxu3 %v5293_v47  ;;  %v5357_v47 = vld [vmem:[%s7164_s3 + $0x1c8] sm:$0xff] }
 0x15f   : > { %1915 = vst [vmem:[#allocation2 + $0x188] sm:$0xf] %v1851_v44  ;;  %v4589_v44 = vld [vmem:[#allocation2 + $0x144] sm:$0xf0] }
 0x160   : > { %1916 = vst [vmem:[#allocation2 + $0x194] sm:$0xf] %v1852_v18  ;;  %2535 = vmatmul.bf16.gmra.mxu3 %v4552_v11 }
 0x161   : > { %v2496_v3 = vpop.f32.mrf.mxu1 }
 0x162   : > { %v6340_v20 = vadd.f32 %v2585_v16, %v2496_v3  ;;  %v4576_v16 = vor.u32 %v5238_v26, %v4575_v38  ;;  %v5270_v3 = vld [vmem:[%s7164_s3 + $0xa8] sm:$0xff]  ;;  %v5269_v38 = vld [vmem:[%s7164_s3 + $0xa0] sm:$0xff] }
 0x163   : > { %v5360_v26 = vld [vmem:[%s7164_s3 + $0x1e0] sm:$0xff] }
 0x164   : > { %v6346_v0 = vpop.f32.mrf.mxu0 }
 0x165   : > { %2624 = vmatmul.bf16.gmra.mxu2 %v6338_v58  ;;  %3006 = vmatmul.bf16.vlgmr.msrb.gmra.mxu1 %v4736_v53  ;;  %v5244_v53 = vld [vmem:[#allocation2 + $0x158] sm:$0xf0] }
 0x166   : > { %2962 = vmatmul.bf16.gmra.mxu0 %v6309_v61  ;;  %v6353_v61 = vor.u32 %v5234_v13, %v4565_v7  ;;  %v4600_v32 = vor.u32 %v5244_v53, %v4599_v17  ;;  %v4601_v13 = vld [vmem:[#allocation2 + $0x15c] sm:$0xf0]  ;;  %v5355_v53 = vld [vmem:[%s7164_s3 + $0x1b8] sm:$0xff] }
 0x167   : > { %v2590_v55 = vpop.f32.mrf.mxu2  ;;  %v5356_v17 = vld [vmem:[%s7164_s3 + $0x1c0] sm:$0xff] }
 0x169   : > { %v6344_v43 = vpop.f32.mrf.mxu1 }
 0x16c   : > { %v6359_v2 = vpop.f32.mrf.mxu0 }
 0x16f   : > { %v6351_v25 = vpop.f32.mrf.mxu2 }
 0x170   : > { %2540 = vmatmul.bf16.gmra.mxu3 %v4564_v54 }
 0x171   : > { %v2501_v59 = vpop.f32.mrf.mxu1 }
 0x172   : > { %v6355_v29 = vadd.f32 %v2590_v55, %v2501_v59  ;;  %v5361_v55 = vld [vmem:[%s7164_s3 + $0x1e8] sm:$0xff] }
 0x174   : > { %v6363_v30 = vpop.f32.mrf.mxu0 }
 0x175   : > { %2629 = vmatmul.bf16.gmra.mxu2 %v6353_v61  ;;  %3011 = vmatmul.bf16.gmra.mxu1 %v5733_v48  ;;  %v6368_v48 = vor.u32 %v5237_v6, %v4577_v22  ;;  %v5359_v6 = vld [vmem:[%s7164_s3 + $0x1d8] sm:$0xff] }
 0x176   : > { %2967 = vmatmul.bf16.gmra.mxu0 %v4552_v11  ;;  %v5272_v11 = vld [vmem:[%s7164_s3 + $0xb8] sm:$0xff] }
 0x177   : > { %3087 = vmatpush.bf16.msra.mxu2 %v5272_v11  ;;  %v5246_v11 = vld [vmem:[#allocation2 + $0x16c] sm:$0xf] }
 0x179   : > { %v6361_v23 = vpop.f32.mrf.mxu1 }
 0x17a   : > { %v2595_v12 = vpop.f32.mrf.mxu2 }
 0x17b   : > { %3088 = vmatpush.bf16.msra.mxu2 %v5271_v45  ;;  %v6452_v45 = vor.u32 %v5246_v11, %v4613_v51  ;;  %v4739_v51 = vld [vmem:[#allocation2 + $0x8] sm:$0xf] }
 0x17c   : > { %v6376_v19 = vpop.f32.mrf.mxu0 }
 0x17f   : > { %3089 = vmatpush.bf16.msra.mxu2 %v5270_v3 }
 0x180   : > { %2545 = vmatmul.bf16.gmra.mxu3 %v4576_v16 }
 0x182   : > { %v6370_v9 = vpop.f32.mrf.mxu2 }
 0x183   : > { %3090 = vmatpush.bf16.msra.mxu2 %v5269_v38  ;;  %v5371_v38 = vld [vmem:[%s7164_s3 + $0x238] sm:$0xff] }
 0x184   : > { %3867 = vmatpush.bf16.msra.mxu1 %v5371_v38  ;;  %v5354_v38 = vld [vmem:[%s7164_s3 + $0x1b0] sm:$0xff] }
 0x185   : > { %2634 = vmatmul.bf16.gmra.mxu2 %v6368_v48  ;;  %3016 = vmatmul.bf16.gmra.mxu1 %v5836_v14  ;;  %v2506_v57 = vpop.f32.mrf.mxu1  ;;  %v6383_v14 = vor.u32 %v5240_v40, %v4589_v44  ;;  %v6385_v10 = vpop.f32.mrf.mxu0  ;;  %v5266_v44 = vld [vmem:[%s7164_s3 + $0x88] sm:$0xff] }
 0x186   : > { %2972 = vmatmul.bf16.gmra.mxu0 %v4564_v54  ;;  %v6374_v34 = vadd.f32 %v2595_v12, %v2506_v57  ;;  %7211 = vst [vmem:[#allocation3_spill] sm:$0xff] %v6385_v10  ;;  %v5243_v54 = vld [vmem:[#allocation2 + $0x154] sm:$0xf]  ;;  %v5292_v12 = vld [vmem:[%s7164_s3 + $0x140] sm:$0xff]  ;;  %v4611_v57 = vld [vmem:[#allocation2 + $0x168] sm:$0xf] }
 0x187   : > { %v6413_v24 = vor.u32 %v5243_v54, %v4601_v13  ;;  %2667 = vmatpush.bf16.msrb.mxu3 %v5292_v12  ;;  %v4612_v40 = vor.u32 %v5247_v27, %v4611_v57  ;;  %v4623_v13 = vld [vmem:[#allocation2 + $0x180] sm:$0xf] }
 0x188   : > { %v5368_v10 = vld [vmem:[%s7164_s3 + $0x220] sm:$0xff] }
 0x18b   : > { %3689 = vmatpush.bf16.msra.mxu3 %v5355_v53 }
 0x18c   : > { %v2600_v63 = vpop.f32.mrf.mxu2 }
 0x18d   : > { %v6378_v33 = vpop.f32.mrf.mxu1  ;;  %v6411_v8 = vpop.f32.mrf.mxu0 }
 0x18e   : > { %7212 = vst [vmem:[#allocation4_spill] sm:$0xff] %v6411_v8  ;;  %v5221_v8 = vld [vmem:[#allocation2 + $0xa0] sm:$0xf0] }
 0x18f   : > { %3690 = vmatpush.bf16.msra.mxu3 %v5354_v38 }
 0x190   : > { %2550 = vmatmul.bf16.gmra.mxu3 %v4588_v35 }
 0x194   : > { %v6389_v18 = vpop.f32.mrf.mxu2 }
 0x195   : > { %2639 = vmatmul.bf16.gmra.mxu2 %v6383_v14  ;;  %3021 = vmatmul.bf16.gmra.mxu1 %v5911_v56  ;;  %v5362_v56 = vld [vmem:[%s7164_s3 + $0x1f0] sm:$0xff] }
 0x196   : > { %2977 = vmatmul.bf16.gmra.mxu0 %v4576_v16  ;;  %v5268_v16 = vld [vmem:[%s7164_s3 + $0x98] sm:$0xff] }
 0x197   : > { %3779 = vmatpush.bf16.msra.mxu0 %v5362_v56  ;;  %3091 = vmatpush.bf16.msra.mxu2 %v5268_v16  ;;  %v5265_v56 = vld [vmem:[%s7164_s3 + $0x80] sm:$0xff] }
 0x198   : > { %v2511_v52 = vpop.f32.mrf.mxu1  ;;  %v6434_v22 = vpop.f32.mrf.mxu0 }
 0x199   : > { %v6403_v36 = vadd.f32 %v2600_v63, %v2511_v52  ;;  %7213 = vst [vmem:[#allocation5_spill] sm:$0xff] %v6434_v22 }
 0x19b   : > { %3780 = vmatpush.bf16.msra.mxu0 %v5361_v55 }
 0x19f   : > { %v2605_v7 = vpop.f32.mrf.mxu2  ;;  %3781 = vmatpush.bf16.msra.mxu0 %v5360_v26 }
 0x1a0   : > { %2555 = vmatmul.bf16.gmra.mxu3 %v4600_v32  ;;  %v6415_v59 = vpop.f32.mrf.mxu1  ;;  %v6450_v52 = vpop.f32.mrf.mxu0 }
 0x1a1   : > { %7214 = vst [vmem:[#allocation6_spill] sm:$0xff] %v6450_v52 }
 0x1a3   : > { %3782 = vmatpush.bf16.msra.mxu0 %v5359_v6  ;;  %v4625_v6 = vld [vmem:[#allocation2 + $0x18c] sm:$0xf0] }
 0x1a5   : > { %2644 = vmatmul.bf16.gmra.mxu2 %v6413_v24  ;;  %3026 = vmatmul.bf16.gmra.mxu1 %v5980_v21  ;;  %v5267_v21 = vld [vmem:[%s7164_s3 + $0x90] sm:$0xff] }
 0x1a6   : > { %2982 = vmatmul.bf16.gmra.mxu0 %v4588_v35  ;;  %3092 = vmatpush.bf16.msra.mxu2 %v5267_v21 }
 0x1a7   : > { %v2607_v50 = vpop.f32.mrf.mxu2  ;;  %3783 = vmatpush.bf16.msra.mxu0 %v5358_v39 }
 0x1aa   : > { %3093 = vmatpush.bf16.msra.mxu2 %v5266_v44  ;;  %v4451_v44 = vld [vmem:[#allocation2 + $0x20] sm:$0xf] }
 0x1ab   : > { %3784 = vmatpush.bf16.msra.mxu0 %v5357_v47  ;;  %v5206_v47 = vld [vmem:[#allocation2 + $0x28] sm:$0xf0] }
 0x1ac   : > { %v2516_v63 = vpop.f32.mrf.mxu1  ;;  %v4452_v11 = vor.u32 %v5206_v47, %v4451_v44  ;;  %v5209_v44 = vld [vmem:[#allocation2 + $0x40] sm:$0xf0]  ;;  %v5370_v47 = vld [vmem:[%s7164_s3 + $0x230] sm:$0xff] }
 0x1ad   : > { %v6442_v35 = vadd.f32 %v2605_v7, %v2516_v63  ;;  %v5274_v7 = vld [vmem:[#allocation2 + $0x188] sm:$0xf0]  ;;  %v6470_v26 = vpop.f32.mrf.mxu0  ;;  %3868 = vmatpush.bf16.msra.mxu1 %v5370_v47 }
 0x1ae   : > { %3094 = vmatpush.bf16.msra.mxu2 %v5265_v56  ;;  %7215 = vst [vmem:[#allocation7_spill] sm:$0xff] %v6470_v26  ;;  %v4624_v16 = vor.u32 %v5274_v7, %v4623_v13  ;;  %v5203_v56 = vld [vmem:[#allocation2 + $0x10] sm:$0xf0] }
 0x1af   : > { %3785 = vmatpush.bf16.msra.mxu0 %v5356_v17  ;;  %v5300_v7 = vld [vmem:[#allocation2 + $0x34] sm:$0xf] }
 0x1b0   : > { %2560 = vmatmul.bf16.gmra.mxu3 %v4612_v40 }
 0x1b2   : > { %v2610_v3 = vpop.f32.mrf.mxu2 }
 0x1b4   : > { %v2518_v55 = vpop.f32.mrf.mxu1 }
 0x1b5   : > { %2649 = vmatmul.bf16.gmra.mxu2 %v6452_v45  ;;  %3031 = vmatmul.bf16.gmra.mxu1 %v6038_v60  ;;  %v6465_v54 = vadd.f32 %v2607_v50, %v2518_v55  ;;  %v5273_v60 = vld [vmem:[#allocation2 + $0x184] sm:$0xf]  ;;  %v6475_v27 = vpop.f32.mrf.mxu0  ;;  %v4889_v55 = vld [vmem:[#allocation2 + $0x3c] sm:$0xf0] }
 0x1b6   : > { %2987 = vmatmul.bf16.gmra.mxu0 %v4600_v32  ;;  %v4628_v57 = vor.u32 %v5273_v60, %v4625_v6  ;;  %7216 = vst [vmem:[#allocation8_spill] sm:$0xff] %v6475_v27 }
 0x1ba   : > { %v2612_v12 = vpop.f32.mrf.mxu2 }
 0x1c0   : > { %2565 = vmatmul.bf16.gmra.mxu3 %v4624_v16 }
 0x1c2   : > { %v2521_v32 = vpop.f32.mrf.mxu1 }
 0x1c3   : > { %v6472_v50 = vadd.f32 %v2610_v3, %v2521_v32  ;;  %v6479_v17 = vpop.f32.mrf.mxu0  ;;  %v4740_v3 = vor.u32 %v5203_v56, %v4739_v51 }
 0x1c4   : > { %7217 = vst [vmem:[#allocation9_spill] sm:$0xff] %v6479_v17  ;;  %v5369_v17 = vld [vmem:[%s7164_s3 + $0x228] sm:$0xff] }
 0x1c5   : > { %2654 = vmatmul.bf16.gmra.mxu2 %v4628_v57  ;;  %3036 = vmatmul.bf16.gmra.mxu1 %v6098_v1 }
 0x1c6   : > { %2992 = vmatmul.bf16.gmra.mxu0 %v4612_v40  ;;  %3869 = vmatpush.bf16.msra.mxu1 %v5369_v17 }
 0x1c8   : > { %v2615_v21 = vpop.f32.mrf.mxu2 }
 0x1ca   : > { %v2523_v39 = vpop.f32.mrf.mxu1  ;;  %3870 = vmatpush.bf16.msra.mxu1 %v5368_v10 }
 0x1cb   : > { %v6477_v63 = vadd.f32 %v2612_v12, %v2523_v39  ;;  %v4892_v12 = vor.u32 %v5300_v7, %v4889_v55  ;;  %v6489_v6 = vpop.f32.mrf.mxu0  ;;  %v4463_v39 = vld [vmem:[#allocation2 + $0x38] sm:$0xf] }
 0x1cc   : > { %7218 = vst [vmem:[#allocation10_spill] sm:$0xff] %v6489_v6 }
 0x1d0   : > { %v2617_v53 = vpop.f32.mrf.mxu2  ;;  %2668 = vmatmul.bf16.vlgmr.msrb.gmra.mxu3 %v4452_v11 }
 0x1d2   : > { %v2526_v13 = vpop.f32.mrf.mxu1 }
 0x1d3   : > { %v6481_v1 = vadd.f32 %v2615_v21, %v2526_v13  ;;  %v2531_v40 = vpop.f32.mrf.mxu3  ;;  %v5303_v13 = vld [vmem:[#allocation2 + $0x4c] sm:$0xf] }
 0x1d5   : > { %3041 = vmatmul.bf16.gmra.mxu1 %v6187_v49  ;;  %3095 = vmatmul.bf16.vlgmr.msra.gmra.mxu2 %v4740_v3  ;;  %v4464_v49 = vor.u32 %v5209_v44, %v4463_v39  ;;  %v4901_v3 = vld [vmem:[#allocation2 + $0x54] sm:$0xf0]  ;;  %v5212_v39 = vld [vmem:[#allocation2 + $0x58] sm:$0xf0] }
 0x1d6   : > { %3786 = vmatmul.bf16.vlgmr.msra.gmra.mxu0 %v4892_v12 }
 0x1d8   : > { %v2620_v16 = vpop.f32.mrf.mxu2 }
 0x1d9   : > { %v6487_v60 = vadd.f32 %v2620_v16, %v2531_v40  ;;  %v4904_v40 = vor.u32 %v5303_v13, %v4901_v3  ;;  %v4913_v3 = vld [vmem:[#allocation2 + $0x6c] sm:$0xf0] }
 0x1da   : > { %v2528_v32 = vpop.f32.mrf.mxu1 }
 0x1db   : > { %v6491_v57 = vadd.f32 %v2617_v53, %v2528_v32  ;;  %v2533_v21 = vpop.f32.mrf.mxu3  ;;  %v6500_v53 = vpop.f32.mrf.mxu0 }
 0x1dc   : > { %7219 = vst [vmem:[#allocation11_spill] sm:$0xff] %v6500_v53  ;;  %v5215_v53 = vld [vmem:[#allocation2 + $0x70] sm:$0xf0] }
 0x1e0   : > { %v2622_v51 = vpop.f32.mrf.mxu2  ;;  %2673 = vmatmul.bf16.gmra.mxu3 %v4464_v49 }
 0x1e1   : > { %v6496_v56 = vadd.f32 %v2622_v51, %v2533_v21  ;;  %v4475_v21 = vld [vmem:[#allocation2 + $0x50] sm:$0xf] }
 0x1e2   : > { %v6498_v55 = vpop.f32.mrf.mxu1  ;;  %v4476_v47 = vor.u32 %v5212_v39, %v4475_v21 }
 0x1e3   : > { %v2536_v7 = vpop.f32.mrf.mxu3  ;;  %v6507_v44 = vpop.f32.mrf.mxu0 }
 0x1e4   : > { %7220 = vst [vmem:[#allocation12_spill] sm:$0xff] %v6507_v44  ;;  %v4487_v44 = vld [vmem:[#allocation2 + $0x68] sm:$0xf] }
 0x1e5   : > { %3046 = vmatmul.bf16.gmra.mxu1 %v6260_v31  ;;  %3100 = vmatmul.bf16.gmra.mxu2 %v4452_v11  ;;  %v5306_v31 = vld [vmem:[#allocation2 + $0x64] sm:$0xf] }
 0x1e6   : > { %3791 = vmatmul.bf16.gmra.mxu0 %v4904_v40  ;;  %v4916_v40 = vor.u32 %v5306_v31, %v4913_v3  ;;  %v4488_v3 = vor.u32 %v5215_v53, %v4487_v44  ;;  %v4925_v31 = vld [vmem:[#allocation2 + $0x84] sm:$0xf0]  ;;  %v4499_v44 = vld [vmem:[#allocation2 + $0x80] sm:$0xf] }
 0x1e8   : > { %v2625_v38 = vpop.f32.mrf.mxu2 }
 0x1e9   : > { %v6503_v12 = vadd.f32 %v2625_v38, %v2536_v7  ;;  %v5353_v7 = vld [vmem:[%s7164_s3 + $0x1a8] sm:$0xff] }
 0x1ea   : > { %v6505_v16 = vpop.f32.mrf.mxu1  ;;  %3691 = vmatpush.bf16.msra.mxu3 %v5353_v7 }
 0x1eb   : > { %v2538_v32 = vpop.f32.mrf.mxu3  ;;  %v6517_v38 = vpop.f32.mrf.mxu0 }
 0x1ec   : > { %7221 = vst [vmem:[#allocation13_spill] sm:$0xff] %v6517_v38 }
 0x1f0   : > { %v2627_v51 = vpop.f32.mrf.mxu2  ;;  %2678 = vmatmul.bf16.gmra.mxu3 %v4476_v47 }
 0x1f1   : > { %v6509_v6 = vadd.f32 %v2627_v51, %v2538_v32 }
 0x1f2   : > { %v6511_v13 = vpop.f32.mrf.mxu1 }
 0x1f3   : > { %v2541_v11 = vpop.f32.mrf.mxu3  ;;  %v6528_v7 = vpop.f32.mrf.mxu0 }
 0x1f4   : > { %7222 = vst [vmem:[#allocation14_spill] sm:$0xff] %v6528_v7 }
 0x1f5   : > { %3051 = vmatmul.bf16.gmra.mxu1 %v6320_v37  ;;  %3105 = vmatmul.bf16.gmra.mxu2 %v4464_v49 }
 0x1f6   : > { %3796 = vmatmul.bf16.gmra.mxu0 %v4916_v40  ;;  %v5309_v40 = vld [vmem:[#allocation2 + $0x7c] sm:$0xf] }
 0x1f7   : > { %v4928_v38 = vor.u32 %v5309_v40, %v4925_v31  ;;  %v4937_v31 = vld [vmem:[#allocation2 + $0x9c] sm:$0xf0] }
 0x1f8   : > { %v2630_v21 = vpop.f32.mrf.mxu2 }
 0x1f9   : > { %v6519_v32 = vadd.f32 %v2630_v21, %v2541_v11 }
 0x1fa   : > { %v6521_v39 = vpop.f32.mrf.mxu1 }
 0x1fb   : > { %v2543_v51 = vpop.f32.mrf.mxu3 }
 0x200   : > { %v2632_v37 = vpop.f32.mrf.mxu2  ;;  %2683 = vmatmul.bf16.gmra.mxu3 %v4488_v3 }
 0x201   : > { %v6526_v49 = vadd.f32 %v2632_v37, %v2543_v51  ;;  %v5218_v51 = vld [vmem:[#allocation2 + $0x88] sm:$0xf0]  ;;  %v6537_v37 = vpop.f32.mrf.mxu0 }
 0x202   : > { %v6530_v11 = vpop.f32.mrf.mxu1  ;;  %7223 = vst [vmem:[#allocation15_spill] sm:$0xff] %v6537_v37  ;;  %v4500_v7 = vor.u32 %v5218_v51, %v4499_v44  ;;  %v4511_v37 = vld [vmem:[#allocation2 + $0x98] sm:$0xf] }
 0x203   : > { %v2546_v21 = vpop.f32.mrf.mxu3 }
 0x205   : > { %3056 = vmatmul.bf16.gmra.mxu1 %v6338_v58  ;;  %3110 = vmatmul.bf16.gmra.mxu2 %v4476_v47  ;;  %v5312_v58 = vld [vmem:[#allocation2 + $0x94] sm:$0xf] }
 0x206   : > { %3801 = vmatmul.bf16.gmra.mxu0 %v4928_v38  ;;  %v4940_v38 = vor.u32 %v5312_v58, %v4937_v31  ;;  %v4512_v31 = vor.u32 %v5221_v8, %v4511_v37  ;;  %v4523_v37 = vld [vmem:[#allocation2 + $0xb0] sm:$0xf] }
 0x208   : > { %v2635_v27 = vpop.f32.mrf.mxu2 }
 0x209   : > { %v6533_v26 = vadd.f32 %v2635_v27, %v2546_v21  ;;  %v5352_v27 = vld [vmem:[%s7164_s3 + $0x1a0] sm:$0xff]  ;;  %v6547_v21 = vpop.f32.mrf.mxu0 }
 0x20a   : > { %v6535_v17 = vpop.f32.mrf.mxu1  ;;  %7225 = vst [vmem:[#allocation17_spill] sm:$0xff] %v6547_v21  ;;  %3692 = vmatpush.bf16.msra.mxu3 %v5352_v27  ;;  %v4949_v27 = vld [vmem:[#allocation2 + $0xb4] sm:$0xf0] }
 0x20b   : > { %v2548_v53 = vpop.f32.mrf.mxu3 }
 0x210   : > { %v2637_v52 = vpop.f32.mrf.mxu2  ;;  %2688 = vmatmul.bf16.gmra.mxu3 %v4500_v7 }
 0x211   : > { %v6539_v22 = vadd.f32 %v2637_v52, %v2548_v53 }
 0x212   : > { %v6541_v40 = vpop.f32.mrf.mxu1 }
 0x213   : > { %7224 = vst [vmem:[#allocation16_spill] sm:$0xff] %v6539_v22  ;;  %v2551_v47 = vpop.f32.mrf.mxu3 }
 0x215   : > { %3061 = vmatmul.bf16.gmra.mxu1 %v6353_v61  ;;  %3115 = vmatmul.bf16.gmra.mxu2 %v4488_v3  ;;  %v6556_v61 = vpop.f32.mrf.mxu0 }
 0x216   : > { %3806 = vmatmul.bf16.gmra.mxu0 %v4940_v38  ;;  %7227 = vst [vmem:[#allocation19_spill] sm:$0xff] %v6556_v61  ;;  %v5315_v38 = vld [vmem:[#allocation2 + $0xac] sm:$0xf]  ;;  %v5224_v61 = vld [vmem:[#allocation2 + $0xb8] sm:$0xf0] }
 0x217   : > { %v4952_v21 = vor.u32 %v5315_v38, %v4949_v27  ;;  %v4961_v27 = vld [vmem:[#allocation2 + $0xcc] sm:$0xf0]  ;;  %v5318_v38 = vld [vmem:[#allocation2 + $0xc4] sm:$0xf] }
 0x218   : > { %v2640_v44 = vpop.f32.mrf.mxu2 }
 0x219   : > { %v6549_v52 = vadd.f32 %v2640_v44, %v2551_v47 }
 0x21a   : > { %v6551_v53 = vpop.f32.mrf.mxu1 }
 0x21b   : > { %7226 = vst [vmem:[#allocation18_spill] sm:$0xff] %v6549_v52  ;;  %v2553_v51 = vpop.f32.mrf.mxu3 }
 0x21d   : > { %v6565_v10 = vpop.f32.mrf.mxu0 }
 0x21e   : > { %7230 = vst [vmem:[#allocation22_spill] sm:$0xff] %v6565_v10  ;;  %v4535_v10 = vld [vmem:[#allocation2 + $0xc8] sm:$0xf] }
 0x220   : > { %v2642_v3 = vpop.f32.mrf.mxu2  ;;  %2693 = vmatmul.bf16.gmra.mxu3 %v4512_v31 }
 0x221   : > { %v6558_v58 = vadd.f32 %v2642_v3, %v2553_v51  ;;  %v4524_v3 = vor.u32 %v5224_v61, %v4523_v37  ;;  %v5367_v61 = vld [vmem:[%s7164_s3 + $0x218] sm:$0xff] }
 0x222   : > { %v6560_v47 = vpop.f32.mrf.mxu1  ;;  %3871 = vmatpush.bf16.msra.mxu1 %v5367_v61  ;;  %v5321_v61 = vld [vmem:[#allocation2 + $0xdc] sm:$0xf] }
 0x223   : > { %7228 = vst [vmem:[#allocation20_spill] sm:$0xff] %v6558_v58  ;;  %v2556_v44 = vpop.f32.mrf.mxu3 }
 0x224   : > { %7229 = vst [vmem:[#allocation21_spill] sm:$0xff] %v6560_v47 }
 0x225   : > { %3066 = vmatmul.bf16.gmra.mxu1 %v6368_v48  ;;  %3120 = vmatmul.bf16.gmra.mxu2 %v4500_v7  ;;  %v5351_v7 = vld [vmem:[%s7164_s3 + $0x198] sm:$0xff] }
 0x226   : > { %3811 = vmatmul.bf16.gmra.mxu0 %v4952_v21  ;;  %v6574_v21 = vpop.f32.mrf.mxu0  ;;  %3693 = vmatpush.bf16.msra.mxu3 %v5351_v7 }
 0x227   : > { %7233 = vst [vmem:[#allocation25_spill] sm:$0xff] %v6574_v21 }
 0x228   : > { %v2645_v52 = vpop.f32.mrf.mxu2 }
 0x229   : > { %v6563_v22 = vadd.f32 %v2645_v52, %v2556_v44  ;;  %v4964_v52 = vor.u32 %v5318_v38, %v4961_v27  ;;  %v5365_v38 = vld [vmem:[%s7164_s3 + $0x208] sm:$0xff] }
 0x22a   : > { %v6567_v51 = vpop.f32.mrf.mxu1 }
 0x22b   : > { %v2558_v8 = vpop.f32.mrf.mxu3  ;;  %7231 = vst [vmem:[#allocation23_spill] sm:$0xff] %v6567_v51  ;;  %v5227_v51 = vld [vmem:[#allocation2 + $0xd0] sm:$0xf0] }
 0x22c   : > { %v4536_v27 = vor.u32 %v5227_v51, %v4535_v10 }
 0x230   : > { %v2647_v58 = vpop.f32.mrf.mxu2  ;;  %2698 = vmatmul.bf16.gmra.mxu3 %v4524_v3 }
 0x231   : > { %v6569_v47 = vadd.f32 %v2647_v58, %v2558_v8 }
 0x232   : > { %v6580_v58 = vpop.f32.mrf.mxu1 }
 0x233   : > { %7232 = vst [vmem:[#allocation24_spill] sm:$0xff] %v6569_v47  ;;  %v2561_v48 = vpop.f32.mrf.mxu3 }
 0x234   : > { %7234 = vst [vmem:[#allocation26_spill] sm:$0xff] %v6580_v58  ;;  %v5230_v58 = vld [vmem:[#allocation2 + $0xe8] sm:$0xf0] }
 0x235   : > { %3071 = vmatmul.bf16.gmra.mxu1 %v6383_v14  ;;  %3125 = vmatmul.bf16.gmra.mxu2 %v4512_v31  ;;  %v5366_v14 = vld [vmem:[%s7164_s3 + $0x210] sm:$0xff]  ;;  %v6587_v31 = vpop.f32.mrf.mxu0 }
 0x236   : > { %3816 = vmatmul.bf16.gmra.mxu0 %v4964_v52  ;;  %3872 = vmatpush.bf16.msra.mxu1 %v5366_v14  ;;  %7236 = vst [vmem:[#allocation28_spill] sm:$0xff] %v6587_v31  ;;  %v5364_v14 = vld [vmem:[%s7164_s3 + $0x200] sm:$0xff] }
 0x238   : > { %v2650_v44 = vpop.f32.mrf.mxu2 }
 0x239   : > { %v6582_v8 = vadd.f32 %v2650_v44, %v2561_v48  ;;  %v4973_v44 = vld [vmem:[#allocation2 + $0xe4] sm:$0xf0] }
 0x23a   : > { %v6592_v52 = vpop.f32.mrf.mxu1  ;;  %3873 = vmatpush.bf16.msra.mxu1 %v5365_v38  ;;  %v4976_v31 = vor.u32 %v5321_v61, %v4973_v44  ;;  %v4547_v38 = vld [vmem:[#allocation2 + $0xe0] sm:$0xf]  ;;  %v5324_v61 = vld [vmem:[#allocation2 + $0xf4] sm:$0xf] }
 0x23b   : > { %7235 = vst [vmem:[#allocation27_spill] sm:$0xff] %v6582_v8  ;;  %v2563_v37 = vpop.f32.mrf.mxu3 }
 0x23c   : > { %7237 = vst [vmem:[#allocation29_spill] sm:$0xff] %v6592_v52 }
 0x23d   : > { %v6600_v10 = vpop.f32.mrf.mxu0 }
 0x23e   : > { %3874 = vmatpush.bf16.msra.mxu1 %v5364_v14  ;;  %7239 = vst [vmem:[#allocation31_spill] sm:$0xff] %v6600_v10 }
 0x240   : > { %v2652_v7 = vpop.f32.mrf.mxu2  ;;  %2703 = vmatmul.bf16.gmra.mxu3 %v4536_v27 }
 0x241   : > { %v6594_v48 = vadd.f32 %v2652_v7, %v2563_v37 }
 0x242   : > { %v6604_v37 = vpop.f32.mrf.mxu1 }
 0x243   : > { %7238 = vst [vmem:[#allocation30_spill] sm:$0xff] %v6594_v48  ;;  %v2566_v21 = vpop.f32.mrf.mxu3  ;;  %v4548_v48 = vor.u32 %v5230_v58, %v4547_v38  ;;  %v2583_v38 = vadd.f32 %v6302_v42, %v6329_v4  ;;  %v5327_v42 = vld [vmem:[#allocation2 + $0x10c] sm:$0xf]  ;;  %v4997_v4 = vld [vmem:[#allocation2 + $0x114] sm:$0xf0] }
 0x245   : > { %3076 = vmatmul.bf16.gmra.mxu1 %v6413_v24  ;;  %3130 = vmatmul.bf16.gmra.mxu2 %v4524_v3  ;;  %v4985_v24 = vld [vmem:[#allocation2 + $0xfc] sm:$0xf0]  ;;  %v6608_v3 = vpop.f32.mrf.mxu0 }
 0x246   : > { %3821 = vmatmul.bf16.gmra.mxu0 %v4976_v31  ;;  %7240 = vst [vmem:[#allocation32_spill] sm:$0xff] %v6608_v3  ;;  %v4988_v44 = vor.u32 %v5324_v61, %v4985_v24  ;;  %v4559_v24 = vld [vmem:[#allocation2 + $0xf8] sm:$0xf] }
 0x248   : > { %v2655_v51 = vpop.f32.mrf.mxu2 }
 0x249   : > { %v6602_v52 = vadd.f32 %v2655_v51, %v2566_v21  ;;  %v5350_v21 = vld [vmem:[%s7164_s3 + $0x190] sm:$0xff] }
 0x24a   : > { %v6614_v51 = vpop.f32.mrf.mxu1  ;;  %3694 = vmatpush.bf16.msra.mxu3 %v5350_v21  ;;  %v4895_v21 = vld [vmem:[#allocation2 + $0x38] sm:$0xf] }
 0x24b   : > { %v2568_v7 = vpop.f32.mrf.mxu3  ;;  %7241 = vst [vmem:[#allocation33_spill] sm:$0xff] %v6614_v51  ;;  %v5000_v51 = vor.u32 %v5327_v42, %v4997_v4  ;;  %v4907_v42 = vld [vmem:[#allocation2 + $0x50] sm:$0xf]  ;;  %v5305_v4 = vld [vmem:[#allocation2 + $0x58] sm:$0xf0] }
 0x250   : > { %v2657_v8 = vpop.f32.mrf.mxu2  ;;  %2708 = vmatmul.bf16.gmra.mxu3 %v4548_v48 }
 0x251   : > { %v6606_v47 = vadd.f32 %v2657_v8, %v2568_v7 }
 0x253   : > { %v2669_v31 = vpop.f32.mrf.mxu3 }
 0x254   : > { %v2670_v14 = vadd.f32 %v2669_v31, %v6315_v62  ;;  %v5233_v62 = vld [vmem:[#allocation2 + $0x100] sm:$0xf0]  ;;  %v6623_v31 = vpop.f32.mrf.mxu0 }
 0x255   : > { %3081 = vmatmul.bf16.gmra.mxu1 %v6452_v45  ;;  %3135 = vmatmul.bf16.gmra.mxu2 %v4536_v27  ;;  %7242 = vst [vmem:[#allocation34_spill] sm:$0xff] %v6623_v31  ;;  %v4560_v27 = vor.u32 %v5233_v62, %v4559_v24  ;;  %v2588_v62 = vadd.f32 %v6331_v15, %v6344_v43 }
 0x256   : > { %3826 = vmatmul.bf16.gmra.mxu0 %v4988_v44  ;;  %v2919_v58 = vadd.f32 %v6269_v28, %v2670_v14  ;;  %v6626_v44 = vpop.f32.mrf.mxu1  ;;  %v5302_v14 = vld [vmem:[#allocation2 + $0x40] sm:$0xf0] }
 0x258   : > { %v3008_v8 = vadd.f32 %v6498_v55, %v2919_v58  ;;  %v3096_v7 = vpop.f32.mrf.mxu2 }
 0x25a   : > { %v6621_v3 = vadd.f32 %v3096_v7, %v3008_v8  ;;  %v4896_v8 = vor.u32 %v5302_v14, %v4895_v21 }
 0x25b   : > { %v2671_v61 = vpop.f32.mrf.mxu3 }
 0x25c   : > { %v2672_v10 = vadd.f32 %v2671_v61, %v2583_v38 }
 0x25e   : > { %v2921_v45 = vadd.f32 %v6311_v5, %v2672_v10  ;;  %v6632_v5 = vpop.f32.mrf.mxu0  ;;  %v6636_v24 = vpop.f32.mrf.mxu1 }
 0x25f   : > { %7243 = vst [vmem:[#allocation35_spill] sm:$0xff] %v6632_v5 }
 0x260   : > { %v3010_v28 = vadd.f32 %v6505_v16, %v2921_v45  ;;  %v3098_v55 = vpop.f32.mrf.mxu2  ;;  %2713 = vmatmul.bf16.gmra.mxu3 %v4560_v27 }
 0x262   : > { %v6629_v58 = vadd.f32 %v3098_v55, %v3010_v28  ;;  %v4571_v55 = vld [vmem:[#allocation2 + $0x110] sm:$0xf] }
 0x263   : > { %v2674_v7 = vpop.f32.mrf.mxu3 }
 0x264   : > { %v2675_v38 = vadd.f32 %v2674_v7, %v6340_v20  ;;  %v5236_v20 = vld [vmem:[#allocation2 + $0x118] sm:$0xf0]  ;;  %v5009_v7 = vld [vmem:[#allocation2 + $0x12c] sm:$0xf0] }
 0x265   : > { %3140 = vmatmul.bf16.gmra.mxu2 %v4548_v48  ;;  %3875 = vmatmul.bf16.vlgmr.msra.gmra.mxu1 %v4896_v8  ;;  %v4572_v14 = vor.u32 %v5236_v20, %v4571_v55  ;;  %v5330_v8 = vld [vmem:[#allocation2 + $0x124] sm:$0xf]  ;;  %v2593_v55 = vadd.f32 %v6351_v25, %v6361_v23  ;;  %v5333_v25 = vld [vmem:[#allocation2 + $0x13c] sm:$0xf]  ;;  %v5021_v23 = vld [vmem:[#allocation2 + $0x144] sm:$0xf0] }
 0x266   : > { %3831 = vmatmul.bf16.gmra.mxu0 %v5000_v51  ;;  %v2924_v16 = vadd.f32 %v6327_v46, %v2675_v38  ;;  %v6643_v51 = vpop.f32.mrf.mxu0  ;;  %v6648_v43 = vpop.f32.mrf.mxu1  ;;  %v4908_v38 = vor.u32 %v5305_v4, %v4907_v42 }
 0x267   : > { %7244 = vst [vmem:[#allocation36_spill] sm:$0xff] %v6643_v51 }
 0x268   : > { %v3013_v10 = vadd.f32 %v6511_v13, %v2924_v16  ;;  %v3101_v61 = vpop.f32.mrf.mxu2 }
 0x26a   : > { %v6640_v45 = vadd.f32 %v3101_v61, %v3013_v10  ;;  %v5012_v10 = vor.u32 %v5330_v8, %v5009_v7  ;;  %v4919_v8 = vld [vmem:[#allocation2 + $0x68] sm:$0xf]  ;;  %v5308_v7 = vld [vmem:[#allocation2 + $0x70] sm:$0xf0] }
 0x26b   : > { %v2676_v28 = vpop.f32.mrf.mxu3 }
 0x26c   : > { %v2677_v48 = vadd.f32 %v2676_v28, %v2588_v62 }
 0x26e   : > { %v2926_v21 = vadd.f32 %v6336_v41, %v2677_v48  ;;  %v5349_v41 = vld [vmem:[%s7164_s3 + $0x188] sm:$0xff]  ;;  %v6658_v20 = vpop.f32.mrf.mxu0 }
 0x26f   : > { %3695 = vmatpush.bf16.msra.mxu3 %v5349_v41  ;;  %7245 = vst [vmem:[#allocation37_spill] sm:$0xff] %v6658_v20  ;;  %v5307_v20 = vld [vmem:[#allocation2 + $0x68] sm:$0xf0] }
 0x270   : > { %v3015_v46 = vadd.f32 %v6521_v39, %v2926_v21  ;;  %v3103_v13 = vpop.f32.mrf.mxu2  ;;  %2718 = vmatmul.bf16.gmra.mxu3 %v4572_v14 }
 0x272   : > { %v6646_v15 = vadd.f32 %v3103_v13, %v3015_v46  ;;  %v4583_v46 = vld [vmem:[#allocation2 + $0x128] sm:$0xf]  ;;  %v5239_v13 = vld [vmem:[#allocation2 + $0x130] sm:$0xf0] }
 0x273   : > { %v2679_v16 = vpop.f32.mrf.mxu3 }
 0x274   : > { %v2680_v61 = vadd.f32 %v2679_v16, %v6355_v29  ;;  %v4920_v16 = vor.u32 %v5308_v7, %v4919_v8 }
 0x275   : > { %3145 = vmatmul.bf16.gmra.mxu2 %v4560_v27  ;;  %3880 = vmatmul.bf16.gmra.mxu1 %v4908_v38  ;;  %v6662_v27 = vpop.f32.mrf.mxu1 }
 0x276   : > { %3836 = vmatmul.bf16.gmra.mxu0 %v5012_v10  ;;  %v2929_v39 = vadd.f32 %v6346_v0, %v2680_v61  ;;  %v4584_v0 = vor.u32 %v5239_v13, %v4583_v46  ;;  %v6668_v10 = vpop.f32.mrf.mxu0  ;;  %v5024_v61 = vor.u32 %v5333_v25, %v5021_v23  ;;  %v4595_v13 = vld [vmem:[#allocation2 + $0x140] sm:$0xf] }
 0x278   : > { %v3018_v62 = vadd.f32 %v6530_v11, %v2929_v39  ;;  %v3106_v28 = vpop.f32.mrf.mxu2 }
 0x27a   : > { %v6660_v48 = vadd.f32 %v3106_v28, %v3018_v62 }
 0x27b   : > { %v2681_v21 = vpop.f32.mrf.mxu3 }
 0x27c   : > { %v2682_v29 = vadd.f32 %v2681_v21, %v2593_v55  ;;  %v2598_v55 = vadd.f32 %v6370_v9, %v6378_v33  ;;  %v5336_v9 = vld [vmem:[#allocation2 + $0x154] sm:$0xf]  ;;  %v5033_v33 = vld [vmem:[#allocation2 + $0x15c] sm:$0xf0] }
 0x27e   : > { %v2931_v42 = vadd.f32 %v6359_v2, %v2682_v29  ;;  %v5242_v29 = vld [vmem:[#allocation2 + $0x148] sm:$0xf0] }
 0x280   : > { %v3020_v4 = vadd.f32 %v6535_v17, %v2931_v42  ;;  %v3108_v11 = vpop.f32.mrf.mxu2  ;;  %2723 = vmatmul.bf16.gmra.mxu3 %v4584_v0  ;;  %v6672_v17 = vpop.f32.mrf.mxu1 }
 0x282   : > { %v6666_v38 = vadd.f32 %v3108_v11, %v3020_v4  ;;  %v4596_v4 = vor.u32 %v5242_v29, %v4595_v13  ;;  %v4931_v11 = vld [vmem:[#allocation2 + $0x80] sm:$0xf]  ;;  %v5314_v29 = vld [vmem:[#allocation2 + $0xa0] sm:$0xf0] }
 0x283   : > { %v2684_v41 = vpop.f32.mrf.mxu3 }
 0x284   : > { %v2685_v39 = vadd.f32 %v2684_v41, %v6374_v34  ;;  %v6679_v34 = vpop.f32.mrf.mxu0  ;;  %v5348_v41 = vld [vmem:[%s7164_s3 + $0x180] sm:$0xff] }
 0x285   : > { %3150 = vmatmul.bf16.gmra.mxu2 %v4572_v14  ;;  %3885 = vmatmul.bf16.gmra.mxu1 %v4920_v16 }
 0x286   : > { %3841 = vmatmul.bf16.gmra.mxu0 %v5024_v61  ;;  %v2934_v2 = vadd.f32 %v6363_v30, %v2685_v39  ;;  %3696 = vmatpush.bf16.msra.mxu3 %v5348_v41  ;;  %v2603_v39 = vadd.f32 %v6389_v18, %v6415_v59 }
 0x288   : > { %v3023_v62 = vadd.f32 %v6541_v40, %v2934_v2  ;;  %v3111_v28 = vpop.f32.mrf.mxu2  ;;  %v5311_v40 = vld [vmem:[#allocation2 + $0x88] sm:$0xf0]  ;;  %v6683_v8 = vpop.f32.mrf.mxu1 }
 0x289   : > { %v4932_v23 = vor.u32 %v5311_v40, %v4931_v11 }
 0x28a   : > { %v6677_v21 = vadd.f32 %v3111_v28, %v3023_v62  ;;  %v4607_v28 = vld [vmem:[#allocation2 + $0x158] sm:$0xf] }
 0x28b   : > { %v2686_v46 = vpop.f32.mrf.mxu3 }
 0x28c   : > { %v2687_v42 = vadd.f32 %v2686_v46, %v2598_v55  ;;  %v5245_v55 = vld [vmem:[#allocation2 + $0x160] sm:$0xf0] }
 0x28d   : > { %v4608_v13 = vor.u32 %v5245_v55, %v4607_v28  ;;  %v5057_v28 = vld [vmem:[#allocation2 + $0x18c] sm:$0xf0] }
 0x28e   : > { %v2936_v14 = vadd.f32 %v6376_v19, %v2687_v42  ;;  %v5036_v19 = vor.u32 %v5336_v9, %v5033_v33  ;;  %v5045_v42 = vld [vmem:[#allocation2 + $0x174] sm:$0xf0]  ;;  %v4619_v9 = vld [vmem:[#allocation2 + $0x170] sm:$0xf]  ;;  %v5248_v33 = vld [vmem:[#allocation2 + $0x178] sm:$0xf0] }
 0x28f   : > { %v4620_v41 = vor.u32 %v5248_v33, %v4619_v9  ;;  %v4967_v9 = vld [vmem:[#allocation2 + $0xc8] sm:$0xf]  ;;  %v5320_v33 = vld [vmem:[#allocation2 + $0xd0] sm:$0xf0] }
 0x290   : > { %v3025_v30 = vadd.f32 %v6551_v53, %v2936_v14  ;;  %2728 = vmatmul.bf16.gmra.mxu3 %v4596_v4  ;;  %v3113_v7 = vpop.f32.mrf.mxu2  ;;  %v6693_v53 = vpop.f32.mrf.mxu0 }
 0x291   : > { %v6697_v2 = vpop.f32.mrf.mxu1 }
 0x292   : > { %v6685_v25 = vadd.f32 %v3113_v7, %v3025_v30 }
 0x293   : > { %v2689_v16 = vpop.f32.mrf.mxu3 }
 0x294   : > { %v6691_v61 = vadd.f32 %v2689_v16, %v6403_v36  ;;  %v4943_v36 = vld [vmem:[#allocation2 + $0x98] sm:$0xf] }
 0x295   : > { %3155 = vmatmul.bf16.gmra.mxu2 %v4584_v0  ;;  %3890 = vmatmul.bf16.gmra.mxu1 %v4932_v23  ;;  %v5339_v0 = vld [vmem:[#allocation2 + $0x16c] sm:$0xf]  ;;  %v4944_v30 = vor.u32 %v5314_v29, %v4943_v36 }
 0x296   : > { %3846 = vmatmul.bf16.gmra.mxu0 %v5036_v19  ;;  %v5048_v40 = vor.u32 %v5339_v0, %v5045_v42 }
 0x298   : > { %v6701_v14 = vpop.f32.mrf.mxu0 }
 0x299   : > { %v6706_v59 = vpop.f32.mrf.mxu1 }
 0x29b   : > { %v2691_v62 = vpop.f32.mrf.mxu3 }
 0x29c   : > { %v6699_v46 = vadd.f32 %v2691_v62, %v2603_v39  ;;  %v4955_v39 = vld [vmem:[#allocation2 + $0xb0] sm:$0xf]  ;;  %v5342_v62 = vld [vmem:[#allocation2 + $0x184] sm:$0xf] }
 0x29d   : > { %v5060_v36 = vor.u32 %v5342_v62, %v5057_v28  ;;  %v4887_v28 = vld [vmem:[#allocation2 + $0x30] sm:$0xf] }
 0x2a0   : > { %2733 = vmatmul.bf16.gmra.mxu3 %v4608_v13  ;;  %v6708_v23 = vpop.f32.mrf.mxu0 }
 0x2a1   : > { %v6713_v19 = vpop.f32.mrf.mxu1 }
 0x2a2   : > { %7246 = vst [vmem:[#allocation38_spill] sm:$0xff] %v6713_v19 }
 0x2a3   : > { %v2694_v11 = vpop.f32.mrf.mxu3 }
 0x2a4   : > { %v6704_v18 = vadd.f32 %v2694_v11, %v6442_v35  ;;  %v5317_v35 = vld [vmem:[#allocation2 + $0xb8] sm:$0xf0]  ;;  %v5275_v11 = vld [vmem:[#allocation2 + $0x190] sm:$0xf0] }
 0x2a5   : > { %3160 = vmatmul.bf16.gmra.mxu2 %v4596_v4  ;;  %3895 = vmatmul.bf16.gmra.mxu1 %v4944_v30  ;;  %v4956_v55 = vor.u32 %v5317_v35, %v4955_v39  ;;  %v4631_v30 = vld [vmem:[#allocation2 + $0x188] sm:$0xf] }
 0x2a6   : > { %3851 = vmatmul.bf16.gmra.mxu0 %v5048_v40 }
 0x2a8   : > { %v6718_v0 = vpop.f32.mrf.mxu0 }
 0x2ab   : > { %v2696_v7 = vpop.f32.mrf.mxu3 }
 0x2ac   : > { %v6711_v16 = vadd.f32 %v2696_v7, %v6465_v54  ;;  %v6720_v54 = vpop.f32.mrf.mxu1  ;;  %v4632_v7 = vor.u32 %v5275_v11, %v4631_v30  ;;  %v5323_v30 = vld [vmem:[#allocation2 + $0xe8] sm:$0xf0] }
 0x2ad   : > { %7247 = vst [vmem:[#allocation39_spill] sm:$0xff] %v6720_v54 }
 0x2b0   : > { %2738 = vmatmul.bf16.gmra.mxu3 %v4620_v41 }
 0x2b3   : > { %v2699_v4 = vpop.f32.mrf.mxu3 }
 0x2b4   : > { %v6716_v29 = vadd.f32 %v2699_v4, %v6472_v50  ;;  %v6725_v39 = vpop.f32.mrf.mxu1  ;;  %v4968_v50 = vor.u32 %v5320_v33, %v4967_v9  ;;  %v4899_v33 = vld [vmem:[#allocation2 + $0x48] sm:$0xf] }
 0x2b5   : > { %3165 = vmatmul.bf16.gmra.mxu2 %v4608_v13  ;;  %3900 = vmatmul.bf16.gmra.mxu1 %v4956_v55  ;;  %7248 = vst [vmem:[#allocation40_spill] sm:$0xff] %v6725_v39  ;;  %v5301_v55 = vld [vmem:[#allocation2 + $0x38] sm:$0xf0] }
 0x2b6   : > { %3856 = vmatmul.bf16.gmra.mxu0 %v5060_v36  ;;  %v4888_v36 = vor.u32 %v5301_v55, %v4887_v28  ;;  %v5326_v28 = vld [vmem:[#allocation2 + $0x100] sm:$0xf0] }
 0x2bb   : > { %v2701_v42 = vpop.f32.mrf.mxu3 }
 0x2bc   : > { %v6723_v40 = vadd.f32 %v2701_v42, %v6477_v63  ;;  %v6733_v63 = vpop.f32.mrf.mxu1  ;;  %v4979_v42 = vld [vmem:[#allocation2 + $0xe0] sm:$0xf] }
 0x2bd   : > { %7249 = vst [vmem:[#allocation41_spill] sm:$0xff] %v6733_v63  ;;  %v4980_v11 = vor.u32 %v5323_v30, %v4979_v42  ;;  %v7262_v63 = vld [vmem:[#allocation24_spill] sm:$0xff] }
 0x2c0   : > { %2743 = vmatmul.bf16.gmra.mxu3 %v4632_v7 }
 0x2c3   : > { %v2704_v13 = vpop.f32.mrf.mxu3 }
 0x2c4   : > { %v6728_v35 = vadd.f32 %v2704_v13, %v6481_v1  ;;  %v6738_v1 = vpop.f32.mrf.mxu1 }
 0x2c5   : > { %3170 = vmatmul.bf16.gmra.mxu2 %v4620_v41  ;;  %3905 = vmatmul.bf16.gmra.mxu1 %v4968_v50  ;;  %7250 = vst [vmem:[#allocation42_spill] sm:$0xff] %v6738_v1  ;;  %v5304_v50 = vld [vmem:[#allocation2 + $0x50] sm:$0xf0] }
 0x2c6   : > { %v4900_v13 = vor.u32 %v5304_v50, %v4899_v33  ;;  %v5003_v33 = vld [vmem:[#allocation2 + $0x110] sm:$0xf]  ;;  %v5329_v50 = vld [vmem:[#allocation2 + $0x118] sm:$0xf0] }
 0x2cb   : > { %v2706_v62 = vpop.f32.mrf.mxu3 }
 0x2cc   : > { %v6731_v4 = vadd.f32 %v2706_v62, %v6491_v57  ;;  %v4991_v62 = vld [vmem:[#allocation2 + $0xf8] sm:$0xf]  ;;  %v6743_v55 = vpop.f32.mrf.mxu1 }
 0x2cd   : > { %7251 = vst [vmem:[#allocation43_spill] sm:$0xff] %v6743_v55 }
 0x2d0   : > { %3697 = vmatmul.bf16.vlgmr.msra.gmra.mxu3 %v4888_v36  ;;  %v4992_v36 = vor.u32 %v5326_v28, %v4991_v62 }
 0x2d3   : > { %v2709_v7 = vpop.f32.mrf.mxu3 }
 0x2d4   : > { %v6736_v9 = vadd.f32 %v2709_v7, %v6487_v60  ;;  %v6748_v30 = vpop.f32.mrf.mxu1  ;;  %v4911_v7 = vld [vmem:[#allocation2 + $0x60] sm:$0xf] }
 0x2d5   : > { %3910 = vmatmul.bf16.gmra.mxu1 %v4980_v11  ;;  %7252 = vst [vmem:[#allocation44_spill] sm:$0xff] %v6748_v30  ;;  %v7256_v30 = vld [vmem:[#allocation16_spill] sm:$0xff] }
 0x2db   : > { %v2711_v41 = vpop.f32.mrf.mxu3 }
 0x2dc   : > { %v6741_v57 = vadd.f32 %v2711_v41, %v6496_v56  ;;  %v4912_v41 = vor.u32 %v5307_v20, %v4911_v7  ;;  %v5015_v20 = vld [vmem:[#allocation2 + $0x128] sm:$0xf]  ;;  %v5332_v7 = vld [vmem:[#allocation2 + $0x130] sm:$0xf0] }
 0x2e0   : > { %3702 = vmatmul.bf16.gmra.mxu3 %v4900_v13  ;;  %v5004_v13 = vor.u32 %v5329_v50, %v5003_v33 }
 0x2e3   : > { %v2714_v42 = vpop.f32.mrf.mxu3 }
 0x2e4   : > { %v6746_v60 = vadd.f32 %v2714_v42, %v6503_v12  ;;  %v6756_v12 = vpop.f32.mrf.mxu1  ;;  %v5310_v42 = vld [vmem:[#allocation2 + $0x80] sm:$0xf0] }
 0x2e5   : > { %3915 = vmatmul.bf16.gmra.mxu1 %v4992_v36  ;;  %7253 = vst [vmem:[#allocation45_spill] sm:$0xff] %v6756_v12  ;;  %v4923_v36 = vld [vmem:[#allocation2 + $0x78] sm:$0xf]  ;;  %v5313_v12 = vld [vmem:[#allocation2 + $0x98] sm:$0xf0] }
 0x2eb   : > { %v2716_v11 = vpop.f32.mrf.mxu3 }
 0x2ec   : > { %v6751_v56 = vadd.f32 %v2716_v11, %v6509_v6  ;;  %v4924_v6 = vor.u32 %v5310_v42, %v4923_v36  ;;  %v6761_v11 = vpop.f32.mrf.mxu1  ;;  %v5027_v36 = vld [vmem:[#allocation2 + $0x140] sm:$0xf]  ;;  %v5335_v42 = vld [vmem:[#allocation2 + $0x148] sm:$0xf0] }
 0x2ed   : > { %7254 = vst [vmem:[#allocation46_spill] sm:$0xff] %v6761_v11  ;;  %v5028_v11 = vor.u32 %v5335_v42, %v5027_v36 }
 0x2f0   : > { %3707 = vmatmul.bf16.gmra.mxu3 %v4912_v41  ;;  %v5016_v41 = vor.u32 %v5332_v7, %v5015_v20  ;;  %v7257_v7 = vld [vmem:[#allocation18_spill] sm:$0xff] }
 0x2f3   : > { %v2719_v51 = vpop.f32.mrf.mxu3 }
 0x2f4   : > { %v6754_v62 = vadd.f32 %v2719_v51, %v6519_v32  ;;  %v6766_v51 = vpop.f32.mrf.mxu1 }
 0x2f5   : > { %3920 = vmatmul.bf16.gmra.mxu1 %v5004_v13  ;;  %7255 = vst [vmem:[#allocation47_spill] sm:$0xff] %v6766_v51  ;;  %v4935_v13 = vld [vmem:[#allocation2 + $0x90] sm:$0xf]  ;;  %v7259_v51 = vld [vmem:[#allocation20_spill] sm:$0xff] }
 0x2fb   : > { %v2721_v28 = vpop.f32.mrf.mxu3 }
 0x2fc   : > { %v6759_v5 = vadd.f32 %v2721_v28, %v6526_v49  ;;  %v4936_v28 = vor.u32 %v5313_v12, %v4935_v13  ;;  %v5039_v12 = vld [vmem:[#allocation2 + $0x158] sm:$0xf] }
 0x300   : > { %3712 = vmatmul.bf16.gmra.mxu3 %v4924_v6  ;;  %v3876_v6 = vpop.f32.mrf.mxu1 }
 0x303   : > { %v2724_v33 = vpop.f32.mrf.mxu3 }
 0x304   : > { %v6764_v32 = vadd.f32 %v2724_v33, %v6533_v26  ;;  %v5316_v33 = vld [vmem:[#allocation2 + $0xb0] sm:$0xf0] }
 0x305   : > { %3925 = vmatmul.bf16.gmra.mxu1 %v5016_v41  ;;  %v4947_v41 = vld [vmem:[#allocation2 + $0xa8] sm:$0xf] }
 0x308   : > { %v3878_v1 = vpop.f32.mrf.mxu1 }
 0x30b   : > { %v2726_v50 = vpop.f32.mrf.mxu3 }
 0x30c   : > { %v6769_v49 = vadd.f32 %v2726_v50, %v7256_v30  ;;  %v4948_v30 = vor.u32 %v5316_v33, %v4947_v41  ;;  %v5338_v50 = vld [vmem:[#allocation2 + $0x160] sm:$0xf0]  ;;  %v5341_v41 = vld [vmem:[#allocation2 + $0x178] sm:$0xf0] }
 0x30d   : > { %v5040_v13 = vor.u32 %v5338_v50, %v5039_v12  ;;  %v7264_v12 = vld [vmem:[#allocation27_spill] sm:$0xff] }
 0x310   : > { %3717 = vmatmul.bf16.gmra.mxu3 %v4936_v28  ;;  %v3881_v42 = vpop.f32.mrf.mxu1 }
 0x313   : > { %v2729_v20 = vpop.f32.mrf.mxu3 }
 0x314   : > { %v6772_v31 = vadd.f32 %v2729_v20, %v7257_v7  ;;  %v5319_v7 = vld [vmem:[#allocation2 + $0xc8] sm:$0xf0] }
 0x315   : > { %3930 = vmatmul.bf16.gmra.mxu1 %v5028_v11  ;;  %v4959_v11 = vld [vmem:[#allocation2 + $0xc0] sm:$0xf] }
 0x316   : > { %7258 = vst [vmem:[#allocation16_spill] sm:$0xff] %v6772_v31  ;;  %v7266_v31 = vld [vmem:[#allocation30_spill] sm:$0xff] }
 0x318   : > { %v3883_v33 = vpop.f32.mrf.mxu1 }
 0x31b   : > { %v2731_v26 = vpop.f32.mrf.mxu3 }
 0x31c   : > { %v6775_v55 = vadd.f32 %v2731_v26, %v7259_v51  ;;  %v4960_v51 = vor.u32 %v5319_v7, %v4959_v11  ;;  %v5051_v26 = vld [vmem:[#allocation2 + $0x170] sm:$0xf]  ;;  %v5344_v11 = vld [vmem:[#allocation2 + $0x190] sm:$0xf0] }
 0x31e   : > { %7260 = vst [vmem:[#allocation18_spill] sm:$0xff] %v6775_v55 }
 0x320   : > { %3722 = vmatmul.bf16.gmra.mxu3 %v4948_v30  ;;  %v5052_v30 = vor.u32 %v5341_v41, %v5051_v26 }
 0x323   : > { %v2734_v28 = vpop.f32.mrf.mxu3 }
 0x324   : > { %v6778_v36 = vadd.f32 %v2734_v28, %v6563_v22  ;;  %v3886_v22 = vpop.f32.mrf.mxu1  ;;  %v4971_v28 = vld [vmem:[#allocation2 + $0xd8] sm:$0xf] }
 0x325   : > { %3935 = vmatmul.bf16.gmra.mxu1 %v5040_v13 }
 0x326   : > { %7261 = vst [vmem:[#allocation20_spill] sm:$0xff] %v6778_v36  ;;  %v5322_v36 = vld [vmem:[#allocation2 + $0xe0] sm:$0xf0] }
 0x32b   : > { %v2736_v20 = vpop.f32.mrf.mxu3 }
 0x32c   : > { %v6781_v39 = vadd.f32 %v2736_v20, %v7262_v63  ;;  %v4972_v63 = vor.u32 %v5322_v36, %v4971_v28  ;;  %v5063_v20 = vld [vmem:[#allocation2 + $0x188] sm:$0xf]  ;;  %v3888_v41 = vpop.f32.mrf.mxu1 }
 0x32d   : > { %v5064_v7 = vor.u32 %v5344_v11, %v5063_v20  ;;  %v4995_v11 = vld [vmem:[#allocation2 + $0x108] sm:$0xf] }
 0x32e   : > { %7263 = vst [vmem:[#allocation24_spill] sm:$0xff] %v6781_v39 }
 0x330   : > { %3727 = vmatmul.bf16.gmra.mxu3 %v4960_v51 }
 0x333   : > { %v2739_v55 = vpop.f32.mrf.mxu3 }
 0x334   : > { %v6784_v50 = vadd.f32 %v2739_v55, %v7264_v12  ;;  %v5325_v12 = vld [vmem:[#allocation2 + $0xf8] sm:$0xf0]  ;;  %v3891_v28 = vpop.f32.mrf.mxu1 }
 0x335   : > { %3940 = vmatmul.bf16.gmra.mxu1 %v5052_v30  ;;  %v4983_v30 = vld [vmem:[#allocation2 + $0xf0] sm:$0xf] }
 0x336   : > { %7265 = vst [vmem:[#allocation27_spill] sm:$0xff] %v6784_v50  ;;  %v4984_v39 = vor.u32 %v5325_v12, %v4983_v30 }
 0x33b   : > { %v2741_v13 = vpop.f32.mrf.mxu3 }
 0x33c   : > { %v6787_v54 = vadd.f32 %v2741_v13, %v7266_v31  ;;  %v3802_v31 = vpop.f32.mrf.mxu0  ;;  %v3893_v30 = vpop.f32.mrf.mxu1 }
 0x33e   : > { %7267 = vst [vmem:[#allocation30_spill] sm:$0xff] %v6787_v54 }
 0x340   : > { %3732 = vmatmul.bf16.gmra.mxu3 %v4972_v63 }
 0x343   : > { %v2744_v51 = vpop.f32.mrf.mxu3 }
 0x344   : > { %v6790_v26 = vadd.f32 %v2744_v51, %v6602_v52 }
 0x345   : > { %3945 = vmatmul.bf16.gmra.mxu1 %v5064_v7  ;;  %v5328_v7 = vld [vmem:[#allocation2 + $0x110] sm:$0xf0] }
 0x346   : > { %7268 = vst [vmem:[#allocation48_spill] sm:$0xff] %v6790_v26  ;;  %v3804_v26 = vpop.f32.mrf.mxu0 }
 0x34b   : > { %v2746_v55 = vpop.f32.mrf.mxu3 }
 0x34c   : > { %v6793_v50 = vadd.f32 %v2746_v55, %v6606_v47  ;;  %v4996_v55 = vor.u32 %v5328_v7, %v4995_v11 }
 0x34e   : > { %7269 = vst [vmem:[#allocation49_spill] sm:$0xff] %v6793_v50 }
 0x350   : > { %3737 = vmatmul.bf16.gmra.mxu3 %v4984_v39 }
 0x353   : > { %v3698_v36 = vpop.f32.mrf.mxu3 }
 0x354   : > { %v3788_v13 = vadd.f32 %v6668_v10, %v3698_v36  ;;  %v6819_v36 = vpop.f32.mrf.mxu1 }
 0x356   : > { %v3877_v63 = vadd.f32 %v3876_v6, %v3788_v13 }
 0x358   : > { %v6797_v52 = vadd.f32 %v3877_v63, %v6621_v3  ;;  %v5007_v63 = vld [vmem:[#allocation2 + $0x120] sm:$0xf] }
 0x35b   : > { %v3700_v20 = vpop.f32.mrf.mxu3 }
 0x35c   : > { %v3790_v51 = vadd.f32 %v6679_v34, %v3700_v20  ;;  %v5331_v20 = vld [vmem:[#allocation2 + $0x128] sm:$0xf0] }
 0x35e   : > { %v3879_v47 = vadd.f32 %v3878_v1, %v3790_v51  ;;  %v6814_v1 = vpop.f32.mrf.mxu2  ;;  %v5008_v51 = vor.u32 %v5331_v20, %v5007_v63  ;;  %v5334_v63 = vld [vmem:[#allocation2 + $0x140] sm:$0xf0] }
 0x360   : > { %v6801_v39 = vadd.f32 %v3879_v47, %v6629_v58  ;;  %3742 = vmatmul.bf16.gmra.mxu3 %v4996_v55  ;;  %v3807_v58 = vpop.f32.mrf.mxu0 }
 0x362   : > { %v5375_v3 = vpack.c.bf16 %v6801_v39, %v6797_v52 }
 0x363   : > { %v3703_v10 = vpop.f32.mrf.mxu3 }
 0x364   : > { %5376 = vst [vmem:[%s6808_s11] sm:$0xff] %v5375_v3   ;;  %v3793_v34 = vadd.f32 %v6693_v53, %v3703_v10 }
 0x366   : > { %v3882_v6 = vadd.f32 %v3881_v42, %v3793_v34  ;;  %v3118_v47 = vpop.f32.mrf.mxu2 }
 0x368   : > { %v6817_v12 = vadd.f32 %v3882_v6, %v6640_v45  ;;  %v3809_v42 = vpop.f32.mrf.mxu0  ;;  %v3898_v45 = vpop.f32.mrf.mxu1 }
 0x36b   : > { %v3705_v13 = vpop.f32.mrf.mxu3 }
 0x36c   : > { %v3795_v11 = vadd.f32 %v6701_v14, %v3705_v13  ;;  %v5019_v13 = vld [vmem:[#allocation2 + $0x138] sm:$0xf] }
 0x36e   : > { %v3884_v7 = vadd.f32 %v3883_v33, %v3795_v11  ;;  %v6832_v33 = vpop.f32.mrf.mxu2 }
 0x370   : > { %v6823_v53 = vadd.f32 %v3884_v7, %v6646_v15  ;;  %3747 = vmatmul.bf16.gmra.mxu3 %v5008_v51  ;;  %v6834_v6 = vpop.f32.mrf.mxu0  ;;  %v6837_v11 = vpop.f32.mrf.mxu1  ;;  %v5020_v51 = vor.u32 %v5334_v63, %v5019_v13 }
 0x372   : > { %v5380_v55 = vpack.c.bf16 %v6823_v53, %v6817_v12 }
 0x373   : > { %v3708_v3 = vpop.f32.mrf.mxu3 }
 0x374   : > { %5452 = vst [vmem:[%s6808_s11 + $0x8] sm:$0xff] %v5380_v55   ;;  %v3798_v10 = vadd.f32 %v6708_v23, %v3708_v3 }
 0x376   : > { %v3887_v34 = vadd.f32 %v3886_v22, %v3798_v10  ;;  %v6844_v55 = vpop.f32.mrf.mxu2 }
 0x378   : > { %v6830_v14 = vadd.f32 %v3887_v34, %v6660_v48  ;;  %v6847_v3 = vpop.f32.mrf.mxu0  ;;  %v6849_v10 = vpop.f32.mrf.mxu1 }
 0x37b   : > { %v3710_v15 = vpop.f32.mrf.mxu3 }
 0x37c   : > { %v3800_v20 = vadd.f32 %v6718_v0, %v3710_v15  ;;  %v5337_v15 = vld [vmem:[#allocation2 + $0x158] sm:$0xf0] }
 0x37e   : > { %v3889_v7 = vadd.f32 %v3888_v41, %v3800_v20  ;;  %v5031_v41 = vld [vmem:[#allocation2 + $0x150] sm:$0xf]  ;;  %v6851_v63 = vpop.f32.mrf.mxu2 }
 0x380   : > { %v6840_v23 = vadd.f32 %v3889_v7, %v6666_v38  ;;  %3752 = vmatmul.bf16.gmra.mxu3 %v5020_v51  ;;  %v5032_v7 = vor.u32 %v5337_v15, %v5031_v41  ;;  %v6853_v51 = vpop.f32.mrf.mxu0 }
 0x382   : > { %v5385_v48 = vpack.c.bf16 %v6840_v23, %v6830_v14 }
 0x383   : > { %v3713_v22 = vpop.f32.mrf.mxu3 }
 0x384   : > { %5453 = vst [vmem:[%s6808_s11 + $0x10] sm:$0xff] %v5385_v48   ;;  %v3803_v0 = vadd.f32 %v3802_v31, %v3713_v22  ;;  %v6861_v31 = vpop.f32.mrf.mxu1 }
 0x386   : > { %v3892_v13 = vadd.f32 %v3891_v28, %v3803_v0  ;;  %v7273_v0 = vld [vmem:[#allocation4_spill] sm:$0xff]  ;;  %v6870_v41 = vpop.f32.mrf.mxu2 }
 0x388   : > { %v6856_v50 = vadd.f32 %v3892_v13, %v6677_v21  ;;  %v6872_v15 = vpop.f32.mrf.mxu0 }
 0x38a   : > { %7270 = vst [vmem:[#allocation50_spill] sm:$0xff] %v6856_v50 }
 0x38b   : > { %v3715_v34 = vpop.f32.mrf.mxu3 }
 0x38c   : > { %v3805_v38 = vadd.f32 %v3804_v26, %v3715_v34  ;;  %v7272_v26 = vld [vmem:[#allocation3_spill] sm:$0xff]  ;;  %v2941_v34 = vadd.f32 %v7273_v0, %v6699_v46 }
 0x38e   : > { %v3894_v20 = vadd.f32 %v3893_v30, %v3805_v38  ;;  %v2939_v30 = vadd.f32 %v7272_v26, %v6691_v61  ;;  %v7275_v38 = vld [vmem:[#allocation23_spill] sm:$0xff] }
 0x390   : > { %v6859_v48 = vadd.f32 %v3894_v20, %v6685_v25  ;;  %3757 = vmatmul.bf16.gmra.mxu3 %v5032_v7  ;;  %v7274_v25 = vld [vmem:[#allocation21_spill] sm:$0xff]  ;;  %v3030_v20 = vadd.f32 %v7275_v38, %v2941_v34  ;;  %v6876_v7 = vpop.f32.mrf.mxu1 }
 0x391   : > { %v3028_v13 = vadd.f32 %v7274_v25, %v2939_v30  ;;  %v6884_v30 = vpop.f32.mrf.mxu2  ;;  %v6888_v25 = vpop.f32.mrf.mxu0 }
 0x392   : > { %7271 = vst [vmem:[#allocation51_spill] sm:$0xff] %v6859_v48  ;;  %v5390_v22 = vpack.c.bf16 %v6859_v48, %v6856_v50  ;;  %v5340_v48 = vld [vmem:[#allocation2 + $0x170] sm:$0xf0]  ;;  %v3119_v0 = vadd.f32 %v3118_v47, %v3030_v20 }
 0x393   : > { %v3718_v28 = vpop.f32.mrf.mxu3  ;;  %v3117_v46 = vadd.f32 %v6814_v1, %v3028_v13  ;;  %v5347_v13 = vld [vmem:[#allocation2 + $0x1a8] sm:$0xf0] }
 0x394   : > { %5454 = vst [vmem:[%s6808_s11 + $0x18] sm:$0xff] %v5390_v22   ;;  %v3808_v21 = vadd.f32 %v3807_v58, %v3718_v28  ;;  %v5043_v22 = vld [vmem:[#allocation2 + $0x168] sm:$0xf] }
 0x395   : > { %v5044_v58 = vor.u32 %v5340_v48, %v5043_v22  ;;  %v7277_v48 = vld [vmem:[#allocation6_spill] sm:$0xff] }
 0x396   : > { %v3897_v61 = vadd.f32 %v6819_v36, %v3808_v21  ;;  %v5069_v36 = vld [vmem:[#allocation2 + $0x1a4] sm:$0xf0]  ;;  %v2946_v21 = vadd.f32 %v7277_v48, %v6711_v16 }
 0x398   : > { %v6880_v28 = vadd.f32 %v3897_v61, %v3117_v46  ;;  %v6891_v1 = vpop.f32.mrf.mxu1  ;;  %v7278_v61 = vld [vmem:[#allocation26_spill] sm:$0xff]  ;;  %v7279_v46 = vld [vmem:[#allocation29_spill] sm:$0xff] }
 0x399   : > { %v3824_v16 = vpop.f32.mrf.mxu0 }
 0x39b   : > { %v3720_v54 = vpop.f32.mrf.mxu3 }
 0x39c   : > { %v3810_v26 = vadd.f32 %v3809_v42, %v3720_v54  ;;  %v5345_v54 = vld [vmem:[#allocation2 + $0x19c] sm:$0xf]  ;;  %v5075_v42 = vld [vmem:[#allocation2 + $0x1a0] sm:$0xf] }
 0x39d   : > { %v5072_v47 = vor.u32 %v5345_v54, %v5069_v36  ;;  %v5076_v20 = vor.u32 %v5347_v13, %v5075_v42  ;;  %v5343_v54 = vld [vmem:[#allocation2 + $0x188] sm:$0xf0]  ;;  %v3133_v36 = vpop.f32.mrf.mxu2 }
 0x39e   : > { %v3899_v19 = vadd.f32 %v3898_v45, %v3810_v26  ;;  %v7276_v45 = vld [vmem:[#allocation5_spill] sm:$0xff] }
 0x39f   : > { %3861 = vmatmul.bf16.gmra.mxu0 %v5072_v47  ;;  %3950 = vmatmul.bf16.gmra.mxu1 %v5076_v20 }
 0x3a0   : > { %v6882_v50 = vadd.f32 %v3899_v19, %v3119_v0  ;;  %3762 = vmatmul.bf16.gmra.mxu3 %v5044_v58  ;;  %v2944_v19 = vadd.f32 %v7276_v45, %v6704_v18  ;;  %v3035_v0 = vadd.f32 %v7279_v46, %v2946_v21  ;;  %v5067_v46 = vld [vmem:[#allocation2 + $0x198] sm:$0xf] }
 0x3a2   : > { %v5395_v34 = vpack.c.bf16 %v6882_v50, %v6880_v28  ;;  %v3033_v26 = vadd.f32 %v7278_v61, %v2944_v19  ;;  %v3124_v42 = vadd.f32 %v6844_v55, %v3035_v0  ;;  %v3913_v19 = vpop.f32.mrf.mxu1  ;;  %v5346_v0 = vld [vmem:[#allocation2 + $0x1a0] sm:$0xf0] }
 0x3a3   : > { %v3723_v38 = vpop.f32.mrf.mxu3 }
 0x3a4   : > { %5455 = vst [vmem:[%s6808_s11 + $0x20] sm:$0xff] %v5395_v34   ;;  %v3813_v22 = vadd.f32 %v6834_v6, %v3723_v38  ;;  %v5055_v34 = vld [vmem:[#allocation2 + $0x180] sm:$0xf]  ;;  %v3122_v47 = vadd.f32 %v6832_v33, %v3033_v26  ;;  %v7281_v33 = vld [vmem:[#allocation8_spill] sm:$0xff] }
 0x3a5   : > { %v5056_v38 = vor.u32 %v5343_v54, %v5055_v34  ;;  %v2951_v55 = vadd.f32 %v7281_v33, %v6723_v40  ;;  %v7282_v34 = vld [vmem:[#allocation33_spill] sm:$0xff] }
 0x3a6   : > { %v3902_v18 = vadd.f32 %v6837_v11, %v3813_v22  ;;  %v3136_v22 = vpop.f32.mrf.mxu2 }
 0x3a7   : > { %v3040_v54 = vadd.f32 %v7282_v34, %v2951_v55 }
 0x3a8   : > { %v6905_v48 = vadd.f32 %v3902_v18, %v3122_v47  ;;  %v5068_v47 = vor.u32 %v5346_v0, %v5067_v46 }
 0x3aa   : > { %v3916_v26 = vpop.f32.mrf.mxu1 }
 0x3ab   : > { %v3725_v58 = vpop.f32.mrf.mxu3 }
 0x3ac   : > { %v3815_v45 = vadd.f32 %v6847_v3, %v3725_v58  ;;  %v7280_v3 = vld [vmem:[#allocation7_spill] sm:$0xff] }
 0x3ad   : > { %v2949_v20 = vadd.f32 %v7280_v3, %v6716_v29 }
 0x3ae   : > { %v3904_v6 = vadd.f32 %v6849_v10, %v3815_v45  ;;  %v3827_v10 = vpop.f32.mrf.mxu0 }
 0x3af   : > { %v3038_v58 = vadd.f32 %v6604_v37, %v2949_v20 }
 0x3b0   : > { %v6907_v21 = vadd.f32 %v3904_v6, %v3124_v42  ;;  %3767 = vmatmul.bf16.gmra.mxu3 %v5056_v38  ;;  %v3129_v42 = vadd.f32 %v6870_v41, %v3040_v54  ;;  %v3138_v6 = vpop.f32.mrf.mxu2  ;;  %v7284_v41 = vld [vmem:[#allocation10_spill] sm:$0xff] }
 0x3b1   : > { %v3127_v40 = vadd.f32 %v6851_v63, %v3038_v58  ;;  %v2956_v20 = vadd.f32 %v7284_v41, %v6731_v4 }
 0x3b2   : > { %v5400_v13 = vpack.c.bf16 %v6907_v21, %v6905_v48 }
 0x3b3   : > { %v3728_v11 = vpop.f32.mrf.mxu3  ;;  %v3045_v55 = vadd.f32 %v6636_v24, %v2956_v20 }
 0x3b4   : > { %5456 = vst [vmem:[%s6808_s11 + $0x28] sm:$0xff] %v5400_v13   ;;  %v3818_v61 = vadd.f32 %v6853_v51, %v3728_v11 }
 0x3b6   : > { %v3907_v45 = vadd.f32 %v6861_v31, %v3818_v61  ;;  %v3829_v37 = vpop.f32.mrf.mxu0  ;;  %v3918_v31 = vpop.f32.mrf.mxu1 }
 0x3b8   : > { %v6924_v38 = vadd.f32 %v3907_v45, %v3127_v40  ;;  %v3141_v61 = vpop.f32.mrf.mxu2  ;;  %v7285_v40 = vld [vmem:[#allocation11_spill] sm:$0xff] }
 0x3bb   : > { %v3730_v18 = vpop.f32.mrf.mxu3 }
 0x3bc   : > { %v3820_v29 = vadd.f32 %v6872_v15, %v3730_v18  ;;  %v7283_v15 = vld [vmem:[#allocation9_spill] sm:$0xff] }
 0x3bd   : > { %v2954_v63 = vadd.f32 %v7283_v15, %v6728_v35  ;;  %v3134_v35 = vadd.f32 %v3133_v36, %v3045_v55 }
 0x3be   : > { %v3909_v51 = vadd.f32 %v6876_v7, %v3820_v29  ;;  %v3832_v46 = vpop.f32.mrf.mxu0  ;;  %v3921_v54 = vpop.f32.mrf.mxu1 }
 0x3bf   : > { %v3043_v33 = vadd.f32 %v6626_v44, %v2954_v63 }
 0x3c0   : > { %v6926_v13 = vadd.f32 %v3909_v51, %v3129_v42  ;;  %3772 = vmatmul.bf16.gmra.mxu3 %v5068_v47  ;;  %v3143_v24 = vpop.f32.mrf.mxu2 }
 0x3c1   : > { %v3132_v18 = vadd.f32 %v6884_v30, %v3043_v33 }
 0x3c2   : > { %v5405_v11 = vpack.c.bf16 %v6926_v13, %v6924_v38 }
 0x3c3   : > { %v3733_v3 = vpop.f32.mrf.mxu3 }
 0x3c4   : > { %5457 = vst [vmem:[%s6808_s11 + $0x30] sm:$0xff] %v5405_v11   ;;  %v3823_v7 = vadd.f32 %v6888_v25, %v3733_v3 }
 0x3c6   : > { %v3912_v58 = vadd.f32 %v6891_v1, %v3823_v7  ;;  %v3834_v47 = vpop.f32.mrf.mxu0  ;;  %v2959_v1 = vadd.f32 %v7285_v40, %v6736_v9  ;;  %v3923_v30 = vpop.f32.mrf.mxu1 }
 0x3c8   : > { %v6940_v29 = vadd.f32 %v3912_v58, %v3132_v18  ;;  %v3146_v20 = vpop.f32.mrf.mxu2 }
 0x3cb   : > { %v3735_v0 = vpop.f32.mrf.mxu3 }
 0x3cc   : > { %v3825_v34 = vadd.f32 %v3824_v16, %v3735_v0  ;;  %v7286_v16 = vld [vmem:[#allocation12_spill] sm:$0xff] }
 0x3cd   : > { %v2961_v42 = vadd.f32 %v7286_v16, %v6741_v57 }
 0x3ce   : > { %v3914_v45 = vadd.f32 %v3913_v19, %v3825_v34  ;;  %v3048_v19 = vadd.f32 %v6648_v43, %v2959_v1  ;;  %v3837_v33 = vpop.f32.mrf.mxu0  ;;  %v3926_v57 = vpop.f32.mrf.mxu1  ;;  %v7287_v43 = vld [vmem:[#allocation13_spill] sm:$0xff] }
 0x3cf   : > { %v3050_v51 = vadd.f32 %v6662_v27, %v2961_v42  ;;  %v2964_v27 = vadd.f32 %v7287_v43, %v6746_v60 }
 0x3d0   : > { %v6942_v4 = vadd.f32 %v3914_v45, %v3134_v35  ;;  %v3137_v63 = vadd.f32 %v3136_v22, %v3048_v19 }
 0x3d1   : > { %v3139_v41 = vadd.f32 %v3138_v6, %v3050_v51  ;;  %v3148_v6 = vpop.f32.mrf.mxu2  ;;  %v3053_v58 = vadd.f32 %v6672_v17, %v2964_v27  ;;  %v7291_v27 = vld [vmem:[#allocation19_spill] sm:$0xff] }
 0x3d2   : > { %v5410_v44 = vpack.c.bf16 %v6942_v4, %v6940_v29 }
 0x3d3   : > { %v3738_v25 = vpop.f32.mrf.mxu3 }
 0x3d4   : > { %5458 = vst [vmem:[%s6808_s11 + $0x38] sm:$0xff] %v5410_v44   ;;  %v3828_v36 = vadd.f32 %v3827_v10, %v3738_v25  ;;  %v3142_v25 = vadd.f32 %v3141_v61, %v3053_v58 }
 0x3d6   : > { %v3917_v3 = vadd.f32 %v3916_v26, %v3828_v36  ;;  %v7288_v26 = vld [vmem:[#allocation14_spill] sm:$0xff]  ;;  %v3928_v18 = vpop.f32.mrf.mxu1 }
 0x3d7   : > { %v2966_v22 = vadd.f32 %v7288_v26, %v6751_v56  ;;  %v2974_v26 = vadd.f32 %v7291_v27, %v6764_v32  ;;  %v7301_v27 = vld [vmem:[#allocation40_spill] sm:$0xff] }
 0x3d8   : > { %v6953_v55 = vadd.f32 %v3917_v3, %v3137_v63 }
 0x3d9   : > { %v3055_v34 = vadd.f32 %v6683_v8, %v2966_v22  ;;  %v3151_v56 = vpop.f32.mrf.mxu2  ;;  %v7289_v8 = vld [vmem:[#allocation15_spill] sm:$0xff]  ;;  %v7292_v22 = vld [vmem:[#allocation22_spill] sm:$0xff] }
 0x3da   : > { %v2969_v19 = vadd.f32 %v7289_v8, %v6754_v62 }
 0x3db   : > { %v3740_v11 = vpop.f32.mrf.mxu3  ;;  %v3144_v40 = vadd.f32 %v3143_v24, %v3055_v34  ;;  %v7293_v34 = vld [vmem:[#allocation50_spill] sm:$0xff] }
 0x3dc   : > { %v3830_v15 = vadd.f32 %v3829_v37, %v3740_v11 }
 0x3de   : > { %v3919_v7 = vadd.f32 %v3918_v31, %v3830_v15  ;;  %v3839_v31 = vpop.f32.mrf.mxu0  ;;  %v3931_v17 = vpop.f32.mrf.mxu1 }
 0x3e0   : > { %v6955_v9 = vadd.f32 %v3919_v7, %v3139_v41 }
 0x3e1   : > { %v3153_v11 = vpop.f32.mrf.mxu2 }
 0x3e2   : > { %v5415_v10 = vpack.c.bf16 %v6955_v9, %v6953_v55 }
 0x3e3   : > { %v3743_v0 = vpop.f32.mrf.mxu3 }
 0x3e4   : > { %5459 = vst [vmem:[%s6808_s11 + $0x40] sm:$0xff] %v5415_v10   ;;  %v3833_v37 = vadd.f32 %v3832_v46, %v3743_v0  ;;  %v4052_v10 = vadd.f32 %v6801_v39, %v6797_v52 }
 0x3e6   : > { %v3922_v45 = vadd.f32 %v3921_v54, %v3833_v37  ;;  %v3842_v42 = vpop.f32.mrf.mxu0  ;;  %v7290_v54 = vld [vmem:[#allocation17_spill] sm:$0xff]  ;;  %v3933_v0 = vpop.f32.mrf.mxu1 }
 0x3e7   : > { %v2971_v61 = vadd.f32 %v7290_v54, %v6759_v5  ;;  %v4053_v5 = vadd.f32 %v4052_v10, %v6817_v12  ;;  %v7298_v10 = vld [vmem:[#allocation25_spill] sm:$0xff] }
 0x3e8   : > { %v6966_v16 = vadd.f32 %v3922_v45, %v3142_v25 }
 0x3e9   : > { %v3156_v37 = vpop.f32.mrf.mxu2 }
 0x3eb   : > { %v3745_v35 = vpop.f32.mrf.mxu3 }
 0x3ec   : > { %v3835_v44 = vadd.f32 %v3834_v47, %v3745_v35  ;;  %v3058_v47 = vadd.f32 %v6697_v2, %v2969_v19 }
 0x3ee   : > { %v3924_v1 = vadd.f32 %v3923_v30, %v3835_v44  ;;  %v3060_v30 = vadd.f32 %v6706_v59, %v2971_v61  ;;  %v3844_v63 = vpop.f32.mrf.mxu0  ;;  %v3147_v41 = vadd.f32 %v3146_v20, %v3058_v47  ;;  %v4054_v59 = vadd.f32 %v4053_v5, %v6823_v53  ;;  %v3936_v45 = vpop.f32.mrf.mxu1  ;;  %v7294_v44 = vld [vmem:[#allocation38_spill] sm:$0xff]  ;;  %v7300_v5 = vld [vmem:[#allocation28_spill] sm:$0xff] }
 0x3ef   : > { %v3063_v25 = vadd.f32 %v7294_v44, %v2974_v26 }
 0x3f0   : > { %v6968_v60 = vadd.f32 %v3924_v1, %v3144_v40  ;;  %v3149_v7 = vadd.f32 %v3148_v6, %v3060_v30  ;;  %v4055_v20 = vadd.f32 %v4054_v59, %v6830_v14  ;;  %v2976_v6 = vadd.f32 %v7292_v22, %v6769_v49  ;;  %v7295_v40 = vld [vmem:[#allocation39_spill] sm:$0xff]  ;;  %v7302_v22 = vld [vmem:[#allocation41_spill] sm:$0xff] }
 0x3f1   : > { %v3152_v54 = vadd.f32 %v3151_v56, %v3063_v25  ;;  %v3158_v30 = vpop.f32.mrf.mxu2 }
 0x3f2   : > { %v5420_v46 = vpack.c.bf16 %v6968_v60, %v6966_v16  ;;  %v3065_v1 = vadd.f32 %v7295_v40, %v2976_v6 }
 0x3f3   : > { %v3748_v36 = vpop.f32.mrf.mxu3 }
 0x3f4   : > { %5460 = vst [vmem:[%s6808_s11 + $0x48] sm:$0xff] %v5420_v46   ;;  %v3838_v24 = vadd.f32 %v3837_v33, %v3748_v36  ;;  %v7296_v46 = vld [vmem:[#allocation51_spill] sm:$0xff]  ;;  %v3154_v61 = vadd.f32 %v3153_v11, %v3065_v1  ;;  %v7297_v11 = vld [vmem:[#allocation16_spill] sm:$0xff] }
 0x3f6   : > { %v3927_v3 = vadd.f32 %v3926_v57, %v3838_v24  ;;  %v3847_v58 = vpop.f32.mrf.mxu0 }
 0x3f8   : > { %v6982_v33 = vadd.f32 %v3927_v3, %v3147_v41 }
 0x3fb   : > { %v3750_v51 = vpop.f32.mrf.mxu3 }
 0x3fc   : > { %v3840_v15 = vadd.f32 %v3839_v31, %v3750_v51  ;;  %v4056_v31 = vadd.f32 %v4055_v20, %v6840_v23 }
 0x3fe   : > { %v3929_v62 = vadd.f32 %v3928_v18, %v3840_v15  ;;  %v4057_v18 = vadd.f32 %v4056_v31, %v7293_v34  ;;  %v3849_v15 = vpop.f32.mrf.mxu0  ;;  %v3161_v31 = vpop.f32.mrf.mxu2 }
 0x400   : > { %v6984_v2 = vadd.f32 %v3929_v62, %v3149_v7  ;;  %v4058_v36 = vadd.f32 %v4057_v18, %v7296_v46  ;;  %v3938_v7 = vpop.f32.mrf.mxu1  ;;  %v2979_v62 = vadd.f32 %v7298_v10, %v7297_v11  ;;  %v7306_v11 = vld [vmem:[#allocation24_spill] sm:$0xff] }
 0x401   : > { %v7307_v10 = vld [vmem:[#allocation32_spill] sm:$0xff] }
 0x402   : > { %v5425_v57 = vpack.c.bf16 %v6984_v2, %v6982_v33  ;;  %v4059_v32 = vadd.f32 %v4058_v36, %v6880_v28  ;;  %v3068_v26 = vadd.f32 %v7301_v27, %v2979_v62  ;;  %v2986_v62 = vadd.f32 %v7307_v10, %v7306_v11 }
 0x403   : > { %v3753_v43 = vpop.f32.mrf.mxu3 }
 0x404   : > { %5461 = vst [vmem:[%s6808_s11 + $0x50] sm:$0xff] %v5425_v57   ;;  %v3843_v35 = vadd.f32 %v3842_v42, %v3753_v43  ;;  %v4060_v24 = vadd.f32 %v4059_v32, %v6882_v50 }
 0x406   : > { %v3932_v19 = vadd.f32 %v3931_v17, %v3843_v35  ;;  %v4061_v42 = vadd.f32 %v4060_v24, %v6905_v48  ;;  %v3852_v35 = vpop.f32.mrf.mxu0  ;;  %v7303_v24 = vld [vmem:[#allocation20_spill] sm:$0xff] }
 0x408   : > { %v7003_v51 = vadd.f32 %v3932_v19, %v3152_v54  ;;  %v4062_v41 = vadd.f32 %v4061_v42, %v6907_v21  ;;  %v3941_v36 = vpop.f32.mrf.mxu1 }
 0x40a   : > { %v4063_v56 = vadd.f32 %v4062_v41, %v6924_v38 }
 0x40b   : > { %v3755_v8 = vpop.f32.mrf.mxu3 }
 0x40c   : > { %v3845_v49 = vadd.f32 %v3844_v63, %v3755_v8  ;;  %v4064_v57 = vadd.f32 %v4063_v56, %v6926_v13  ;;  %v3157_v8 = vadd.f32 %v3156_v37, %v3068_v26  ;;  %v3163_v37 = vpop.f32.mrf.mxu2 }
 0x40e   : > { %v3934_v47 = vadd.f32 %v3933_v0, %v3845_v49  ;;  %v7299_v0 = vld [vmem:[#allocation18_spill] sm:$0xff]  ;;  %v4065_v43 = vadd.f32 %v4064_v57, %v6940_v29 }
 0x40f   : > { %v2981_v59 = vadd.f32 %v7300_v5, %v7299_v0 }
 0x410   : > { %v7005_v3 = vadd.f32 %v3934_v47, %v3154_v61  ;;  %v4066_v18 = vadd.f32 %v4065_v43, %v6942_v4  ;;  %v7304_v47 = vld [vmem:[#allocation31_spill] sm:$0xff]  ;;  %v3943_v5 = vpop.f32.mrf.mxu1 }
 0x411   : > { %v3070_v6 = vadd.f32 %v7302_v22, %v2981_v59  ;;  %v2984_v42 = vadd.f32 %v7304_v47, %v7303_v24  ;;  %v7311_v24 = vld [vmem:[#allocation44_spill] sm:$0xff] }
 0x412   : > { %v5430_v17 = vpack.c.bf16 %v7005_v3, %v7003_v51  ;;  %v4067_v25 = vadd.f32 %v4066_v18, %v6953_v55 }
 0x413   : > { %v3758_v63 = vpop.f32.mrf.mxu3  ;;  %v3159_v32 = vadd.f32 %v3158_v30, %v3070_v6 }
 0x414   : > { %5462 = vst [vmem:[%s6808_s11 + $0x58] sm:$0xff] %v5430_v17   ;;  %v3848_v20 = vadd.f32 %v3847_v58, %v3758_v63  ;;  %v4068_v19 = vadd.f32 %v4067_v25, %v6955_v9  ;;  %v7305_v63 = vld [vmem:[#allocation42_spill] sm:$0xff]  ;;  %v7309_v25 = vld [vmem:[#allocation27_spill] sm:$0xff] }
 0x415   : > { %v3073_v56 = vadd.f32 %v7305_v63, %v2984_v42 }
 0x416   : > { %v3937_v40 = vadd.f32 %v3936_v45, %v3848_v20  ;;  %v4069_v49 = vadd.f32 %v4068_v19, %v6966_v16  ;;  %v7308_v20 = vld [vmem:[#allocation43_spill] sm:$0xff] }
 0x417   : > { %v3162_v43 = vadd.f32 %v3161_v31, %v3073_v56  ;;  %v3075_v27 = vadd.f32 %v7308_v20, %v2986_v62  ;;  %v7314_v62 = vld [vmem:[#allocation45_spill] sm:$0xff] }
 0x418   : > { %v7024_v54 = vadd.f32 %v3937_v40, %v3157_v8  ;;  %v4070_v41 = vadd.f32 %v4069_v49, %v6968_v60  ;;  %v7310_v40 = vld [vmem:[#allocation34_spill] sm:$0xff]  ;;  %v3166_v8 = vpop.f32.mrf.mxu2  ;;  %v3946_v49 = vpop.f32.mrf.mxu1 }
 0x41a   : > { %v4071_v30 = vadd.f32 %v4070_v41, %v6982_v33 }
 0x41b   : > { %v3760_v44 = vpop.f32.mrf.mxu3 }
 0x41c   : > { %v3850_v1 = vadd.f32 %v3849_v15, %v3760_v44  ;;  %v4072_v0 = vadd.f32 %v4071_v30, %v6984_v2  ;;  %v3164_v44 = vadd.f32 %v3163_v37, %v3075_v27  ;;  %v7312_v30 = vld [vmem:[#allocation30_spill] sm:$0xff]  ;;  %v7315_v27 = vld [vmem:[#allocation48_spill] sm:$0xff] }
 0x41e   : > { %v3939_v58 = vadd.f32 %v3938_v7, %v3850_v1  ;;  %v3854_v7 = vpop.f32.mrf.mxu0  ;;  %v4073_v59 = vadd.f32 %v4072_v0, %v7003_v51  ;;  %v2989_v1 = vadd.f32 %v7310_v40, %v7309_v25  ;;  %v7317_v25 = vld [vmem:[#allocation46_spill] sm:$0xff] }
 0x420   : > { %v7026_v61 = vadd.f32 %v3939_v58, %v3159_v32  ;;  %v4074_v26 = vadd.f32 %v4073_v59, %v7005_v3  ;;  %v3078_v47 = vadd.f32 %v7311_v24, %v2989_v1  ;;  %v3168_v56 = vpop.f32.mrf.mxu2  ;;  %v3948_v59 = vpop.f32.mrf.mxu1  ;;  %v7318_v24 = vld [vmem:[#allocation49_spill] sm:$0xff] }
 0x422   : > { %v5435_v45 = vpack.c.bf16 %v7026_v61, %v7024_v54  ;;  %v4075_v6 = vadd.f32 %v4074_v26, %v7024_v54  ;;  %v3167_v37 = vadd.f32 %v3166_v8, %v3078_v47  ;;  %v7316_v26 = vld [vmem:[#allocation36_spill] sm:$0xff]  ;;  %v7319_v47 = vld [vmem:[#allocation37_spill] sm:$0xff] }
 0x423   : > { %v3763_v15 = vpop.f32.mrf.mxu3 }
 0x424   : > { %5463 = vst [vmem:[%s6808_s11 + $0x60] sm:$0xff] %v5435_v45   ;;  %v3853_v17 = vadd.f32 %v3852_v35, %v3763_v15  ;;  %v4076_v32 = vadd.f32 %v4075_v6, %v7026_v61 }
 0x426   : > { %v3942_v57 = vadd.f32 %v3941_v36, %v3853_v17  ;;  %v3857_v31 = vpop.f32.mrf.mxu0  ;;  %v7313_v17 = vld [vmem:[#allocation35_spill] sm:$0xff] }
 0x428   : > { %v7043_v18 = vadd.f32 %v3942_v57, %v3162_v43  ;;  %v3171_v1 = vpop.f32.mrf.mxu2 }
 0x42a   : > { %v4077_v19 = vadd.f32 %v4076_v32, %v7043_v18 }
 0x42b   : > { %v3765_v22 = vpop.f32.mrf.mxu3 }
 0x42c   : > { %v3855_v35 = vadd.f32 %v3854_v7, %v3765_v22  ;;  %v2991_v7 = vadd.f32 %v7313_v17, %v7312_v30  ;;  %v2994_v22 = vadd.f32 %v7316_v26, %v7315_v27  ;;  %v5508_v17 = vmov 256.0  }
 0x42d   : > { %5495 = vrcp.f32 %v5508_v17 }
 0x42e   : > { %v3944_v36 = vadd.f32 %v3943_v5, %v3855_v35  ;;  %v3859_v10 = vpop.f32.mrf.mxu0  ;;  %v3080_v0 = vadd.f32 %v7314_v62, %v2991_v7  ;;  %v3083_v40 = vadd.f32 %v7317_v25, %v2994_v22 }
 0x430   : > { %v7049_v58 = vadd.f32 %v3944_v36, %v3164_v44  ;;  %v3169_v20 = vadd.f32 %v3168_v56, %v3080_v0  ;;  %v3951_v36 = vpop.f32.mrf.mxu1 }
 0x432   : > { %v5440_v42 = vpack.c.bf16 %v7049_v58, %v7043_v18  ;;  %v4078_v41 = vadd.f32 %v4077_v19, %v7049_v58 }
 0x433   : > { %v3768_v45 = vpop.f32.mrf.mxu3 }
 0x434   : > { %5464 = vst [vmem:[%s6808_s11 + $0x68] sm:$0xff] %v5440_v42   ;;  %v3858_v15 = vadd.f32 %v3857_v31, %v3768_v45  ;;  %v2996_v42 = vadd.f32 %v7319_v47, %v7318_v24 }
 0x436   : > { %v3947_v63 = vadd.f32 %v3946_v49, %v3858_v15  ;;  %v3862_v44 = vpop.f32.mrf.mxu0  ;;  %v3172_v49 = vadd.f32 %v3171_v1, %v3083_v40  ;;  %v7320_v15 = vld [vmem:[#allocation47_spill] sm:$0xff] }
 0x438   : > { %v7058_v11 = vadd.f32 %v3947_v63, %v3167_v37  ;;  %v3085_v37 = vadd.f32 %v7320_v15, %v2996_v42  ;;  %v3953_v62 = vpop.f32.mrf.mxu1 }
 0x43a   : > { %v4079_v5 = vadd.f32 %v4078_v41, %v7058_v11 }
 0x43b   : > { %v3770_v57 = vpop.f32.mrf.mxu3 }
 0x43c   : > { %v3860_v43 = vadd.f32 %v3859_v10, %v3770_v57  ;;  %v3173_v10 = vpop.f32.mrf.mxu2 }
 0x43d   : > { %v3174_v0 = vadd.f32 %v3173_v10, %v3085_v37 }
 0x43e   : > { %v3949_v6 = vadd.f32 %v3948_v59, %v3860_v43  ;;  %v3864_v7 = vpop.f32.mrf.mxu0  ;;  %v5496_v59 = vpop.eup %5495 }
 0x43f   : > { %v4090_v27 = vmul.f32 256.0, %v5496_v59  ;;  %vm4094_vm6 = vweird.f32 %v5496_v59 }
 0x440   : > { %v7064_v35 = vadd.f32 %v3949_v6, %v3169_v20 }
 0x441   : > { %v4091_v6 = vsub.f32 1.0, %v4090_v27 }
 0x442   : > { %v5445_v8 = vpack.c.bf16 %v7064_v35, %v7058_v11  ;;  %v4080_v32 = vadd.f32 %v4079_v5, %v7064_v35 }
 0x443   : > { %v3773_v31 = vpop.f32.mrf.mxu3  ;;  %v4092_v40 = vmul.f32 %v5496_v59, %v4091_v6 }
 0x444   : > { %5465 = vst [vmem:[%s6808_s11 + $0x70] sm:$0xff] %v5445_v8   ;;  %v3863_v19 = vadd.f32 %v3862_v44, %v3773_v31 }
 0x445   : > { %v4093_v8 = vadd.f32 %v5496_v59, %v4092_v40 }
 0x446   : > { %v3952_v41 = vadd.f32 %v3951_v36, %v3863_v19 }
 0x447   : > { %v4095_v36 = vsel %vm4094_vm6, %v5496_v59, %v4093_v8 }
 0x448   : > { %v7073_v45 = vadd.f32 %v3952_v41, %v3172_v49 }
 0x44a   : > { %v4081_v30 = vadd.f32 %v4080_v32, %v7073_v45 }
 0x44b   : > { %v3775_v63 = vpop.f32.mrf.mxu3 }
 0x44c   : > { %v3865_v56 = vadd.f32 %v3864_v7, %v3775_v63 }
 0x44e   : > { %v3954_v5 = vadd.f32 %v3953_v62, %v3865_v56 }
 0x450   : > { %v7077_v57 = vadd.f32 %v3954_v5, %v3174_v0 }
 0x452   : > { %v5450_v43 = vpack.c.bf16 %v7077_v57, %v7073_v45  ;;  %v4082_v20 = vadd.f32 %v4081_v30, %v7077_v57 }
 0x454   : > { %5466 = vst [vmem:[%s6808_s11 + $0x78] sm:$0xff] %v5450_v43   ;;  %v4083_v26 = vrot.slane %v4082_v20, 4 }
 0x456   : > { %v4084_v22 = vadd.f32 %v4083_v26, %v4082_v20 }
 0x458   : > { %v4085_v44 = vrot.slane %v4084_v22, 2 }
 0x45a   : > { %v4086_v25 = vadd.f32 %v4085_v44, %v4084_v22 }
 0x45c   : > { %v4087_v1 = vrot.slane %v4086_v25, 1 }
 0x45e   : > { %v7083_v32 = vadd.f32 %v4087_v1, %v4086_v25 }
 0x460   : > { %v7086_v31 = vmul.f32 %v4095_v36, %v7083_v32 }
 0x462   : > { %v4097_v19 = vsub.f32 %v6797_v52, %v7086_v31  ;;  %v4098_v49 = vsub.f32 %v6801_v39, %v7086_v31  ;;  %v4099_v24 = vsub.f32 %v6817_v12, %v7086_v31  ;;  %v4100_v41 = vsub.f32 %v6823_v53, %v7086_v31 }
 0x463   : > { %v4101_v15 = vsub.f32 %v6830_v14, %v7086_v31  ;;  %v4102_v17 = vsub.f32 %v6840_v23, %v7086_v31  ;;  %v4103_v39 = vsub.f32 %v7293_v34, %v7086_v31  ;;  %v4104_v56 = vsub.f32 %v7296_v46, %v7086_v31 }
 0x464   : > { %v4129_v47 = vmul.f32 %v4097_v19, %v4097_v19  ;;  %v4130_v42 = vmul.f32 %v4098_v49, %v4098_v49  ;;  %v4131_v37 = vmul.f32 %v4099_v24, %v4099_v24  ;;  %v4132_v52 = vmul.f32 %v4100_v41, %v4100_v41 }
 0x465   : > { %v4133_v63 = vmul.f32 %v4101_v15, %v4101_v15  ;;  %v4134_v10 = vmul.f32 %v4102_v17, %v4102_v17  ;;  %v4105_v14 = vsub.f32 %v6880_v28, %v7086_v31  ;;  %v4135_v62 = vmul.f32 %v4103_v39, %v4103_v39 }
 0x466   : > { %v4161_v30 = vadd.f32 %v4130_v42, %v4129_v47  ;;  %v4106_v23 = vsub.f32 %v6882_v50, %v7086_v31  ;;  %v4136_v5 = vmul.f32 %v4104_v56, %v4104_v56  ;;  %v4107_v34 = vsub.f32 %v6905_v48, %v7086_v31 }
 0x467   : > { %v4137_v43 = vmul.f32 %v4105_v14, %v4105_v14  ;;  %v4108_v46 = vsub.f32 %v6907_v21, %v7086_v31  ;;  %v4109_v28 = vsub.f32 %v6924_v38, %v7086_v31  ;;  %v4110_v50 = vsub.f32 %v6926_v13, %v7086_v31 }
 0x468   : > { %v4162_v7 = vadd.f32 %v4161_v30, %v4131_v37  ;;  %v4138_v27 = vmul.f32 %v4106_v23, %v4106_v23  ;;  %v4139_v22 = vmul.f32 %v4107_v34, %v4107_v34  ;;  %v4111_v48 = vsub.f32 %v6940_v29, %v7086_v31 }
 0x469   : > { %v4140_v44 = vmul.f32 %v4108_v46, %v4108_v46  ;;  %v4141_v40 = vmul.f32 %v4109_v28, %v4109_v28  ;;  %v4112_v21 = vsub.f32 %v6942_v4, %v7086_v31  ;;  %v4142_v8 = vmul.f32 %v4110_v50, %v4110_v50 }
 0x46a   : > { %v4163_v12 = vadd.f32 %v4162_v7, %v4132_v52  ;;  %v4113_v38 = vsub.f32 %v6953_v55, %v7086_v31  ;;  %v4143_v19 = vmul.f32 %v4111_v48, %v4111_v48  ;;  %v4114_v13 = vsub.f32 %v6955_v9, %v7086_v31 }
 0x46b   : > { %v4144_v24 = vmul.f32 %v4112_v21, %v4112_v21  ;;  %v4115_v29 = vsub.f32 %v6966_v16, %v7086_v31  ;;  %v4116_v4 = vsub.f32 %v6968_v60, %v7086_v31  ;;  %v4117_v55 = vsub.f32 %v6982_v33, %v7086_v31 }
 0x46c   : > { %v4164_v53 = vadd.f32 %v4163_v12, %v4133_v63  ;;  %v4145_v42 = vmul.f32 %v4113_v38, %v4113_v38  ;;  %v4146_v15 = vmul.f32 %v4114_v13, %v4114_v13  ;;  %v4118_v9 = vsub.f32 %v6984_v2, %v7086_v31 }
 0x46d   : > { %v4147_v30 = vmul.f32 %v4115_v29, %v4115_v29  ;;  %v4148_v52 = vmul.f32 %v4116_v4, %v4116_v4  ;;  %v4119_v16 = vsub.f32 %v7003_v51, %v7086_v31  ;;  %v4149_v39 = vmul.f32 %v4117_v55, %v4117_v55 }
 0x46e   : > { %v4165_v0 = vadd.f32 %v4164_v53, %v4134_v10  ;;  %v4120_v60 = vsub.f32 %v7005_v3, %v7086_v31  ;;  %v4150_v12 = vmul.f32 %v4118_v9, %v4118_v9  ;;  %v4121_v33 = vsub.f32 %v7024_v54, %v7086_v31 }
 0x46f   : > { %v4151_v10 = vmul.f32 %v4119_v16, %v4119_v16  ;;  %v4122_v2 = vsub.f32 %v7026_v61, %v7086_v31  ;;  %v4123_v51 = vsub.f32 %v7043_v18, %v7086_v31  ;;  %v4124_v3 = vsub.f32 %v7049_v58, %v7086_v31 }
 0x470   : > { %v4166_v59 = vadd.f32 %v4165_v0, %v4135_v62  ;;  %v4152_v14 = vmul.f32 %v4120_v60, %v4120_v60  ;;  %v4153_v0 = vmul.f32 %v4121_v33, %v4121_v33  ;;  %v4125_v54 = vsub.f32 %v7058_v11, %v7086_v31 }
 0x471   : > { %v4155_v34 = vmul.f32 %v4123_v51, %v4123_v51  ;;  %v4126_v61 = vsub.f32 %v7064_v35, %v7086_v31  ;;  %v4127_v18 = vsub.f32 %v7073_v45, %v7086_v31  ;;  %v4128_v58 = vsub.f32 %v7077_v57, %v7086_v31 }
 0x472   : > { %v4167_v20 = vadd.f32 %v4166_v59, %v4136_v5  ;;  %v4154_v5 = vmul.f32 %v4122_v2, %v4122_v2 }
 0x473   : > { %v4158_v28 = vmul.f32 %v4126_v61, %v4126_v61  ;;  %v4160_v50 = vmul.f32 %v4128_v58, %v4128_v58 }
 0x474   : > { %v4168_v26 = vadd.f32 %v4167_v20, %v4137_v43  ;;  %v4156_v20 = vmul.f32 %v4124_v3, %v4124_v3 }
 0x476   : > { %v4169_v6 = vadd.f32 %v4168_v26, %v4138_v27  ;;  %v4157_v27 = vmul.f32 %v4125_v54, %v4125_v54 }
 0x478   : > { %v4170_v25 = vadd.f32 %v4169_v6, %v4139_v22  ;;  %v4159_v6 = vmul.f32 %v4127_v18, %v4127_v18 }
 0x47a   : > { %v4171_v1 = vadd.f32 %v4170_v25, %v4140_v44 }
 0x47c   : > { %v4172_v36 = vadd.f32 %v4171_v1, %v4141_v40 }
 0x47e   : > { %v4173_v49 = vadd.f32 %v4172_v36, %v4142_v8 }
 0x480   : > { %v4174_v47 = vadd.f32 %v4173_v49, %v4143_v19 }
 0x482   : > { %v4175_v41 = vadd.f32 %v4174_v47, %v4144_v24 }
 0x484   : > { %v4176_v37 = vadd.f32 %v4175_v41, %v4145_v42 }
 0x486   : > { %v4177_v17 = vadd.f32 %v4176_v37, %v4146_v15 }
 0x488   : > { %v4178_v7 = vadd.f32 %v4177_v17, %v4147_v30 }
 0x48a   : > { %v4179_v63 = vadd.f32 %v4178_v7, %v4148_v52 }
 0x48c   : > { %v4180_v56 = vadd.f32 %v4179_v63, %v4149_v39 }
 0x48e   : > { %v4181_v53 = vadd.f32 %v4180_v56, %v4150_v12 }
 0x490   : > { %v4182_v62 = vadd.f32 %v4181_v53, %v4151_v10 }
 0x492   : > { %v4183_v23 = vadd.f32 %v4182_v62, %v4152_v14 }
 0x494   : > { %v4184_v59 = vadd.f32 %v4183_v23, %v4153_v0 }
 0x496   : > { %v4185_v43 = vadd.f32 %v4184_v59, %v4154_v5 }
 0x498   : > { %v4186_v46 = vadd.f32 %v4185_v43, %v4155_v34 }
 0x49a   : > { %v4187_v26 = vadd.f32 %v4186_v46, %v4156_v20 }
 0x49c   : > { %v4188_v22 = vadd.f32 %v4187_v26, %v4157_v27 }
 0x49e   : > { %v4189_v11 = vadd.f32 %v4188_v22, %v4158_v28 }
 0x4a0   : > { %v4190_v44 = vadd.f32 %v4189_v11, %v4159_v6 }
 0x4a2   : > { %v4191_v25 = vadd.f32 %v4190_v44, %v4160_v50 }
 0x4a4   : > { %v4192_v48 = vrot.slane %v4191_v25, 4 }
 0x4a6   : > { %v4193_v35 = vadd.f32 %v4192_v48, %v4191_v25 }
 0x4a8   : > { %v4194_v40 = vrot.slane %v4193_v35, 2 }
 0x4aa   : > { %v4195_v1 = vadd.f32 %v4194_v40, %v4193_v35 }
 0x4ac   : > { %v4196_v21 = vrot.slane %v4195_v1, 1 }
 0x4ae   : > { %v4197_v45 = vadd.f32 %v4196_v21, %v4195_v1 }
 0x4b0   : > { %v4199_v57 = vsel %vm1404_vm7, %v7083_v32, %v4197_v45 }
 0x4b1   : > { %4200 = vst [vmem:[%s235_s15] sm:$0x3] %v4199_v57 }
 0x4b2 PF: > { %s16_s18 = sadd.s32 1, %s5504_s18  }
 0x4b3   : > { %p13_p4 = scmp.ge.s32.totalorder %s16_s18, 4  }
 0x4b5   :  { %15 = sbr.rel (!%p13_p4) target bundleno = 1 (0x1), region = 80 }

</bundles_post_ra>
